<compile_context>
chip_gen: v6e
topology: v6e:2x2x1
jax: 0.10.0
libtpu: 0.0.40
codegen_flags: <defaults>
</compile_context>

<pallas_src>
import functools

import jax
import jax.numpy as jnp
from jax import lax
from jax.experimental import pallas as pl
from jax.experimental.pallas import tpu as pltpu

BN_EPS = 1e-5
F32 = jnp.float32
BF16 = jnp.bfloat16
VMEM = pltpu.MemorySpace.VMEM
SMEM = pltpu.MemorySpace.SMEM

_VMEM_LIMIT = 48 * 1024 * 1024
_PAR_ARB = pltpu.CompilerParams(
    dimension_semantics=("parallel", "arbitrary"), vmem_limit_bytes=_VMEM_LIMIT)
_PAR_PAR = pltpu.CompilerParams(
    dimension_semantics=("parallel", "parallel"), vmem_limit_bytes=_VMEM_LIMIT)


# ---------------------------------------------------------------------------
# BlockSpec helpers
# ---------------------------------------------------------------------------
def _row_spec(trn, c):
    """(1, trn, c) tile of a (B, N_pad, c) activation."""
    return pl.BlockSpec((1, trn, c), lambda b, i: (b, i, 0))


def _const_spec(shape):
    """Whole array, resident across the grid (weights / folded scale-shift)."""
    nd = len(shape)
    return pl.BlockSpec(shape, lambda b, i: (0,) * nd)


def _acc_spec(c):
    """Per-batch resident (1, 1, c) accumulator block of a (B, 1, c) output."""
    return pl.BlockSpec((1, 1, c), lambda b, i: (b, 0, 0))


def _acc_shape(batch, c):
    return jax.ShapeDtypeStruct((batch, 1, c), F32)


# ---------------------------------------------------------------------------
# In-kernel helpers
# ---------------------------------------------------------------------------
def _init_stats(*refs):
    @pl.when(pl.program_id(1) == 0)
    def _():
        for r in refs:
            r[...] = jnp.zeros_like(r)


def _row_mask(trn, rows_valid):
    """(trn, 1) bool mask: True for rows that are real (not padding)."""
    start = pl.program_id(1) * trn
    rows = lax.broadcasted_iota(jnp.int32, (trn, 1), 0) + start
    return rows < rows_valid


def _bn_rows(x, gamma, beta):
    """Training-mode BatchNorm over the rows of a small fully-resident block."""
    n = x.shape[0]
    s = jnp.sum(x, axis=0, keepdims=True)
    q = jnp.sum(x * x, axis=0, keepdims=True)
    mu = s / n
    var = q / n - mu * mu
    return (x - mu) * lax.rsqrt(var + BN_EPS) * gamma + beta


def _bn_scale_shift(s, q, count, gamma, beta):
    """Fold global batch-stat BN into per-channel (scale, shift); tiny (1, C) math."""
    mu = s / count
    var = q / count - mu * mu
    scale = gamma * lax.rsqrt(var + BN_EPS)
    shift = beta - mu * scale
    return scale, shift


# ---------------------------------------------------------------------------
# Kernels
# ---------------------------------------------------------------------------
def _stage1_kernel(pts_ref, w_ref, h_ref, s_ref, q_ref, *, k):
    # conv1 (k -> 128): K=k contraction as broadcast FMAs on the VPU (bias dropped:
    # it is absorbed exactly by the following train-mode BatchNorm).
    pts = pts_ref[0]                               # (trn, k) f32
    w = w_ref[...]                                 # (k, 128) f32
    h = pts[:, 0:1] * w[0:1, :]
    for kk in range(1, k):
        h = h + pts[:, kk:kk + 1] * w[kk:kk + 1, :]
    h_ref[0] = h.astype(h_ref.dtype)               # bf16 store
    _init_stats(s_ref, q_ref)
    # padded point rows are zero -> they contribute nothing; no mask needed.
    s_ref[0] += jnp.sum(h, axis=0, keepdims=True)
    q_ref[0] += jnp.sum(h * h, axis=0, keepdims=True)


def _stage2_kernel(h1_ref, sc_ref, sh_ref, w_ref, h2_ref, s_ref, q_ref,
                   *, rows_valid, masked):
    # bn1 + relu + conv2 (128 -> 256) on the MXU in bf16, f32 accumulation.
    # Channel sum via the MXU: sum_rows(x @ W) == colsum(x) @ W  (bias dropped).
    x = jnp.maximum(h1_ref[0].astype(F32) * sc_ref[...] + sh_ref[...], 0.0)
    w = w_ref[...]                                 # (128, 256) bf16 (pre-cast)
    h = jnp.dot(x.astype(BF16), w, preferred_element_type=F32)
    h2_ref[0] = h.astype(h2_ref.dtype)
    _init_stats(s_ref, q_ref)
    if masked:
        mask = _row_mask(x.shape[0], rows_valid)
        xs = jnp.where(mask, x, 0.0)
        hq = jnp.where(mask, h, 0.0)
    else:
        xs, hq = x, h
    col = jnp.sum(xs, axis=0, keepdims=True)       # (1, 128)
    s_ref[0] += jnp.dot(col.astype(BF16), w, preferred_element_type=F32)
    q_ref[0] += jnp.sum(hq * hq, axis=0, keepdims=True)


def _stage3_kernel(h2_ref, sc_ref, sh_ref, w_ref, mx_ref, mn_ref, s_ref, q_ref,
                   *, rows_valid, masked):
    # bn2 + relu + conv3 (256 -> 1024, bf16 MXU); emit global sum/sumsq plus per-batch
    # running max/min so the (B*N, 1024) activation never hits HBM.  s is MXU-assisted.
    i = pl.program_id(1)
    x = jnp.maximum(h2_ref[0].astype(F32) * sc_ref[...] + sh_ref[...], 0.0)
    w = w_ref[...]                                 # (256, 1024) bf16 (pre-cast)
    h = jnp.dot(x.astype(BF16), w, preferred_element_type=F32)
    _init_stats(s_ref, q_ref)
    if masked:
        mask = _row_mask(x.shape[0], rows_valid)
        xs = jnp.where(mask, x, 0.0)
        hq = jnp.where(mask, h, 0.0)
        hmax = jnp.where(mask, h, -jnp.inf)
        hmin = jnp.where(mask, h, jnp.inf)
    else:
        xs, hq, hmax, hmin = x, h, h, h
    col = jnp.sum(xs, axis=0, keepdims=True)       # (1, 256)
    s_ref[0] += jnp.dot(col.astype(BF16), w, preferred_element_type=F32)
    q_ref[0] += jnp.sum(hq * hq, axis=0, keepdims=True)
    tmax = jnp.max(hmax, axis=0, keepdims=True)
    tmin = jnp.min(hmin, axis=0, keepdims=True)

    @pl.when(i == 0)
    def _():
        mx_ref[0] = tmax
        mn_ref[0] = tmin

    @pl.when(i > 0)
    def _():
        mx_ref[0] = jnp.maximum(mx_ref[0], tmax)
        mn_ref[0] = jnp.minimum(mn_ref[0], tmin)


def _stage4_kernel(mx_ref, mn_ref, sc3_ref, sh3_ref,
                   wf1_ref, g4_ref, be4_ref,
                   wf2_ref, g5_ref, be5_ref,
                   wf3_ref, bf3_ref, t_ref):
    # bn3 folded into the max pool (scale>=0 -> max, else min), then the small
    # (B, 1024) T-net tail: fc1/bn4/relu, fc2/bn5/relu, fc3 -> T (B, k*k).
    # fc1/fc2 biases are dropped (cancelled by bn4/bn5); fc3 bias kept.
    sc3 = sc3_ref[...]
    sh3 = sh3_ref[...]
    pooled = jnp.where(sc3 >= 0.0,
                       mx_ref[...] * sc3 + sh3,
                       mn_ref[...] * sc3 + sh3)
    t = jnp.dot(pooled.astype(BF16), wf1_ref[...], preferred_element_type=F32)
    t = jnp.maximum(_bn_rows(t, g4_ref[...], be4_ref[...]), 0.0)
    t = jnp.dot(t.astype(BF16), wf2_ref[...], preferred_element_type=F32)
    t = jnp.maximum(_bn_rows(t, g5_ref[...], be5_ref[...]), 0.0)
    t_ref[...] = jnp.dot(t, wf3_ref[...], preferred_element_type=F32) + bf3_ref[...]


def _stage5_kernel(pts_ref, weff_ref, y_ref, s_ref, q_ref, *, k):
    # Alignment bmm folded into MLP fc1: y = pts @ Weff_b where Weff_b = (T_b+I) @ Wm1
    # (K=k contraction -> broadcast FMAs on the VPU; MXU left free; bias bm1 dropped).
    pts = pts_ref[0]                               # (trn, k) f32
    we = weff_ref[0]                               # (k, hid) f32, per batch
    y = pts[:, 0:1] * we[0:1, :]
    for kk in range(1, k):
        y = y + pts[:, kk:kk + 1] * we[kk:kk + 1, :]
    y_ref[0] = y.astype(y_ref.dtype)
    _init_stats(s_ref, q_ref)
    # padded point rows are zero -> y rows are zero -> no mask needed for the stats.
    s_ref[0] += jnp.sum(y, axis=0, keepdims=True)
    q_ref[0] += jnp.sum(y * y, axis=0, keepdims=True)


def _stage6_kernel(a_ref, y1_ref, sc_ref, sh_ref, w_ref, y2_ref, s_ref, q_ref,
                   *, rows_valid, masked):
    # MLP bn1 + PReLU (slope scalar from SMEM) + fc2 (4*odim -> odim, bf16 MXU,
    # pre-cast weight, bias dropped).
    x = y1_ref[0].astype(F32) * sc_ref[...] + sh_ref[...]
    a = a_ref[0]
    x = jnp.where(x >= 0.0, x, a * x)
    y = jnp.dot(x.astype(BF16), w_ref[...], preferred_element_type=F32)
    y2_ref[0] = y.astype(y2_ref.dtype)
    _init_stats(s_ref, q_ref)
    if masked:
        ym = jnp.where(_row_mask(x.shape[0], rows_valid), y, 0.0)
    else:
        ym = y
    s_ref[0] += jnp.sum(ym, axis=0, keepdims=True)
    q_ref[0] += jnp.sum(ym * ym, axis=0, keepdims=True)


def _stage7_kernel(y2_ref, sc_ref, sh_ref, out_ref):
    # Final MLP BatchNorm (MLP's last FC has no activation: disable_last=True).
    out_ref[0] = (y2_ref[0].astype(F32) * sc_ref[...] + sh_ref[...]).astype(out_ref.dtype)


# ---------------------------------------------------------------------------
# Row-tile planning (pad rows to a tile multiple; padded rows are masked out of
# the statistics / max / min and out of the sample count).
# ---------------------------------------------------------------------------
def _round_up(x, m):
    return ((x + m - 1) // m) * m


def _plan_rows(n):
    """Return (n_pad, pick) with pick(c) -> per-stage row tile that divides n_pad."""
    if n <= 1024:
        n_pad = _round_up(n, 16)
        return n_pad, lambda c: n_pad
    n_pad = _round_up(n, 512)

    def pick(c):
        cap = max(512, min(4096, (1 << 20) // max(int(c), 1)))
        best = 512
        for cand in (1024, 2048, 4096):
            if cand <= cap and n_pad % cand == 0:
                best = cand
        return best

    return n_pad, pick


# ---------------------------------------------------------------------------
# Wrapper
# ---------------------------------------------------------------------------
def encoder_layer_leaf(points, params, odim):
    """points: (B, N, k) channels-last, same as the PyTorch module's input."""
    (w1, _b1, g1, be1,
     w2, _b2, g2, be2,
     w3, _b3, g3, be3,
     wf1, _bf1, g4, be4,
     wf2, _bf2, g5, be5,
     wf3, bf3,
     wm1, _bm1, gm1, bem1, a1,
     wm2, _bm2, gm2, bem2) = params
    # _b*/_bf*/_bm* biases feed a train-mode BatchNorm and cancel exactly -> unused.

    B, N, k = points.shape
    hid = wm1.shape[1]                        # 4 * odim
    c3 = w3.shape[1]                          # 1024

    # Pre-cast every MXU weight to bf16 once (outside the kernels).
    w2b = w2.astype(BF16)
    w3b = w3.astype(BF16)
    wf1b = wf1.astype(BF16)
    wf2b = wf2.astype(BF16)
    wm2b = wm2.astype(BF16)

    n_pad, pick = _plan_rows(N)
    masked = n_pad != N
    pts = points.astype(F32)
    if masked:
        pts = jnp.pad(pts, ((0, 0), (0, n_pad - N), (0, 0)))
    nrows = B * N                             # valid-sample count for per-point BNs

    # ---- stage 1: conv1 (k -> 128) + bn1 stats --------------------------------
    trn = pick(128)
    grid = (B, n_pad // trn)
    h1, s1b, q1b = pl.pallas_call(
        functools.partial(_stage1_kernel, k=k),
        grid=grid,
        in_specs=[_row_spec(trn, k), _const_spec((k, 128))],
        out_specs=[_row_spec(trn, 128), _acc_spec(128), _acc_spec(128)],
        out_shape=[jax.ShapeDtypeStruct((B, n_pad, 128), BF16),
                   _acc_shape(B, 128), _acc_shape(B, 128)],
        compiler_params=_PAR_ARB,
    )(pts, w1)
    sc1, sh1 = _bn_scale_shift(jnp.sum(s1b, axis=0), jnp.sum(q1b, axis=0),
                               nrows, g1, be1)

    # ---- stage 2: bn1 + relu + conv2 (128 -> 256) + bn2 stats -----------------
    trn = pick(256)
    grid = (B, n_pad // trn)
    h2, s2b, q2b = pl.pallas_call(
        functools.partial(_stage2_kernel, rows_valid=N, masked=masked),
        grid=grid,
        in_specs=[_row_spec(trn, 128), _const_spec((1, 128)), _const_spec((1, 128)),
                  _const_spec((128, 256))],
        out_specs=[_row_spec(trn, 256), _acc_spec(256), _acc_spec(256)],
        out_shape=[jax.ShapeDtypeStruct((B, n_pad, 256), BF16),
                   _acc_shape(B, 256), _acc_shape(B, 256)],
        compiler_params=_PAR_ARB,
    )(h1, sc1, sh1, w2b)
    sc2, sh2 = _bn_scale_shift(jnp.sum(s2b, axis=0), jnp.sum(q2b, axis=0),
                               nrows, g2, be2)

    # ---- stage 3: bn2 + relu + conv3 (256 -> 1024); bn3 stats + per-batch max/min
    trn = pick(c3)
    grid = (B, n_pad // trn)
    mx, mn, s3b, q3b = pl.pallas_call(
        functools.partial(_stage3_kernel, rows_valid=N, masked=masked),
        grid=grid,
        in_specs=[_row_spec(trn, 256), _const_spec((1, 256)), _const_spec((1, 256)),
                  _const_spec((256, c3))],
        out_specs=[_acc_spec(c3), _acc_spec(c3), _acc_spec(c3), _acc_spec(c3)],
        out_shape=[_acc_shape(B, c3)] * 4,
        compiler_params=_PAR_ARB,
    )(h2, sc2, sh2, w3b)
    sc3, sh3 = _bn_scale_shift(jnp.sum(s3b, axis=0), jnp.sum(q3b, axis=0),
                               nrows, g3, be3)

    # ---- stage 4: pooled -> fc1/bn4/relu -> fc2/bn5/relu -> fc3 = T (B, k*k) --
    traw = pl.pallas_call(
        _stage4_kernel,
        out_shape=jax.ShapeDtypeStruct((B, k * k), F32),
        in_specs=[pl.BlockSpec(memory_space=VMEM)] * 12,
        out_specs=pl.BlockSpec(memory_space=VMEM),
    )(mx.reshape(B, c3), mn.reshape(B, c3), sc3, sh3,
      wf1b, g4, be4, wf2b, g5, be5, wf3, bf3)
    # Fold the alignment bmm into MLP fc1: Weff_b = (T_b + I) @ Wm1 (tiny, wrapper-side).
    t_full = traw.reshape(B, k, k) + jnp.eye(k, dtype=F32)
    weff = jnp.einsum('bij,jh->bih', t_full, wm1)          # (B, k, hid) f32

    # ---- stage 5: y1 = pts @ Weff_b (MLP fc1 fused with bmm) + stats ----------
    trn = pick(max(k, hid))
    grid = (B, n_pad // trn)
    y1, sm1b, qm1b = pl.pallas_call(
        functools.partial(_stage5_kernel, k=k),
        grid=grid,
        in_specs=[_row_spec(trn, k),
                  pl.BlockSpec((1, k, hid), lambda b, i: (b, 0, 0))],
        out_specs=[_row_spec(trn, hid), _acc_spec(hid), _acc_spec(hid)],
        out_shape=[jax.ShapeDtypeStruct((B, n_pad, hid), BF16),
                   _acc_shape(B, hid), _acc_shape(B, hid)],
        compiler_params=_PAR_ARB,
    )(pts, weff)
    scm1, shm1 = _bn_scale_shift(jnp.sum(sm1b, axis=0), jnp.sum(qm1b, axis=0),
                                 nrows, gm1, bem1)

    # ---- stage 6: bn + PReLU + MLP fc2 (4*odim -> odim) + stats ---------------
    trn = pick(max(hid, odim))
    grid = (B, n_pad // trn)
    y2, sm2b, qm2b = pl.pallas_call(
        functools.partial(_stage6_kernel, rows_valid=N, masked=masked),
        grid=grid,
        in_specs=[pl.BlockSpec(memory_space=SMEM),
                  _row_spec(trn, hid), _const_spec((1, hid)), _const_spec((1, hid)),
                  _const_spec((hid, odim))],
        out_specs=[_row_spec(trn, odim), _acc_spec(odim), _acc_spec(odim)],
        out_shape=[jax.ShapeDtypeStruct((B, n_pad, odim), BF16),
                   _acc_shape(B, odim), _acc_shape(B, odim)],
        compiler_params=_PAR_ARB,
    )(a1, y1, scm1, shm1, wm2b)
    scm2, shm2 = _bn_scale_shift(jnp.sum(sm2b, axis=0), jnp.sum(qm2b, axis=0),
                                 nrows, gm2, bem2)

    # ---- stage 7: final BatchNorm (pure elementwise -> fully 'parallel' grid) --
    trn = pick(odim)
    grid = (B, n_pad // trn)
    out = pl.pallas_call(
        _stage7_kernel,
        grid=grid,
        in_specs=[_row_spec(trn, odim), _const_spec((1, odim)), _const_spec((1, odim))],
        out_specs=_row_spec(trn, odim),
        out_shape=jax.ShapeDtypeStruct((B, n_pad, odim), F32),
        compiler_params=_PAR_PAR,
    )(y2, scm2, shm2)
    if masked:
        out = out[:, :N, :]
    return out


# ---------------------------------------------------------------------------
# Parameters + demo
# ---------------------------------------------------------------------------
def init_params(key, k, odim, relu_weight=0.005):
    """Deterministic synthetic parameters matching the module's shapes."""
    keys = iter(jax.random.split(key, 32))

    def w(shape, scale=0.1):
        return jax.random.normal(next(keys), shape, dtype=F32) * scale

    def vec(c, scale=0.01):
        return jax.random.normal(next(keys), (1, c), dtype=F32) * scale

    ones = lambda c: jnp.ones((1, c), dtype=F32)
    zeros = lambda c: jnp.zeros((1, c), dtype=F32)

    params = (
        # Alignment conv1 (k->128) + bn1
        w((k, 128)), vec(128), ones(128), zeros(128),
        # conv2 (128->256) + bn2
        w((128, 256)), vec(256), ones(256), zeros(256),
        # conv3 (256->1024) + bn3
        w((256, 1024)), vec(1024), ones(1024), zeros(1024),
        # fc1 (1024->512) + bn4
        w((1024, 512)), vec(512), ones(512), zeros(512),
        # fc2 (512->256) + bn5
        w((512, 256)), vec(256), ones(256), zeros(256),
        # fc3 (256->k*k)
        w((256, k * k)), vec(k * k),
        # MLP FC1 (k -> 4*odim) + bn + PReLU slope (scalar, goes to SMEM)
        w((k, 4 * odim)), vec(4 * odim), ones(4 * odim), zeros(4 * odim),
        jnp.full((1,), relu_weight, dtype=F32),
        # MLP FC2 (4*odim -> odim) + bn (identity activation: disable_last)
        w((4 * odim, odim)), vec(odim), ones(odim), zeros(odim),
    )
    return params


if __name__ == "__main__":
    B, N, idim, odim = 2, 16, 3, 8   # layer_type='leaf' requires idim == 3
    key = jax.random.PRNGKey(0)
    kx, kp = jax.random.split(key)
    points = jax.random.normal(kx, (B, N, idim), dtype=F32)
    params = init_params(kp, idim, odim)

    fwd = jax.jit(encoder_layer_leaf, static_argnums=(2,))
    out = fwd(points, params, odim)
    out = jax.block_until_ready(out)
    assert out.shape == (B, N, odim)
    assert bool(jnp.all(jnp.isfinite(out)))
    print("KERNEL_OK")
</pallas_src>

<mosaic_0001>
module attributes {stable_mosaic.version = 11 : i64} {
  func.func @_stage1_kernel(%arg0: i32, %arg1: i32, %arg2: memref<1x16x3xf32, #tpu.memory_space<vmem>>, %arg3: memref<3x128xf32, #tpu.memory_space<vmem>>, %arg4: memref<1x16x128xbf16, #tpu.memory_space<vmem>>, %arg5: memref<1x1x128xf32, #tpu.memory_space<vmem>>, %arg6: memref<1x1x128xf32, #tpu.memory_space<vmem>>) attributes {dimension_semantics = [#tpu.dimension_semantics<parallel>, #tpu.dimension_semantics<arbitrary>], iteration_bounds = array<i64: 2, 1>, scalar_prefetch = 0 : i64, scratch_operands = 0 : i64, tpu.core_type = #tpu.core_type<tc>, window_params = [{transform_indices = @transform_0, window_bounds = array<i64: 1, 16, 3>}, {pipeline_mode = #tpu.pipeline_mode<synchronous>, transform_indices = @transform_1, window_bounds = array<i64: 3, 128>}, {transform_indices = @transform_2, window_bounds = array<i64: 1, 16, 128>}, {transform_indices = @transform_3, window_bounds = array<i64: 1, 1, 128>}, {transform_indices = @transform_4, window_bounds = array<i64: 1, 1, 128>}]} {
    %c0 = arith.constant 0 : index
    %c0_0 = arith.constant 0 : index
    %c0_1 = arith.constant 0 : index
    %0 = vector.load %arg2[%c0, %c0_0, %c0_1] : memref<1x16x3xf32, #tpu.memory_space<vmem>>, vector<1x16x3xf32>
    %1 = vector.shape_cast %0 : vector<1x16x3xf32> to vector<16x3xf32>
    %c0_2 = arith.constant 0 : index
    %c0_3 = arith.constant 0 : index
    %2 = vector.load %arg3[%c0_2, %c0_3] : memref<3x128xf32, #tpu.memory_space<vmem>>, vector<3x128xf32>
    %3 = vector.extract_strided_slice %1 {offsets = [0, 0], sizes = [16, 1], strides = [1, 1]} : vector<16x3xf32> to vector<16x1xf32>
    %4 = vector.extract_strided_slice %2 {offsets = [0, 0], sizes = [1, 128], strides = [1, 1]} : vector<3x128xf32> to vector<1x128xf32>
    %5 = vector.broadcast %3 : vector<16x1xf32> to vector<16x128xf32>
    %6 = vector.broadcast %4 : vector<1x128xf32> to vector<16x128xf32>
    %7 = arith.mulf %5, %6 : vector<16x128xf32>
    %8 = vector.extract_strided_slice %1 {offsets = [0, 1], sizes = [16, 1], strides = [1, 1]} : vector<16x3xf32> to vector<16x1xf32>
    %9 = vector.extract_strided_slice %2 {offsets = [1, 0], sizes = [1, 128], strides = [1, 1]} : vector<3x128xf32> to vector<1x128xf32>
    %10 = vector.broadcast %8 : vector<16x1xf32> to vector<16x128xf32>
    %11 = vector.broadcast %9 : vector<1x128xf32> to vector<16x128xf32>
    %12 = arith.mulf %10, %11 : vector<16x128xf32>
    %13 = arith.addf %7, %12 : vector<16x128xf32>
    %14 = vector.extract_strided_slice %1 {offsets = [0, 2], sizes = [16, 1], strides = [1, 1]} : vector<16x3xf32> to vector<16x1xf32>
    %15 = vector.extract_strided_slice %2 {offsets = [2, 0], sizes = [1, 128], strides = [1, 1]} : vector<3x128xf32> to vector<1x128xf32>
    %16 = vector.broadcast %14 : vector<16x1xf32> to vector<16x128xf32>
    %17 = vector.broadcast %15 : vector<1x128xf32> to vector<16x128xf32>
    %18 = arith.mulf %16, %17 : vector<16x128xf32>
    %19 = arith.addf %13, %18 : vector<16x128xf32>
    %20 = arith.truncf %19 : vector<16x128xf32> to vector<16x128xbf16>
    %c0_4 = arith.constant 0 : index
    %c0_5 = arith.constant 0 : index
    %c0_6 = arith.constant 0 : index
    %21 = vector.load %arg4[%c0_4, %c0_5, %c0_6] : memref<1x16x128xbf16, #tpu.memory_space<vmem>>, vector<1x16x128xbf16>
    %22 = vector.shape_cast %21 : vector<1x16x128xbf16> to vector<16x128xbf16>
    %23 = vector.shape_cast %20 : vector<16x128xbf16> to vector<1x16x128xbf16>
    tpu.vector_store %arg4[%c0_4, %c0_5, %c0_6], %23 {strides = array<i32>} : memref<1x16x128xbf16, #tpu.memory_space<vmem>>, vector<1x16x128xbf16>,
    %c0_i32 = arith.constant 0 : i32
    %24 = arith.cmpi eq, %arg1, %c0_i32 : i32
    %25 = arith.extui %24 : i1 to i32
    %c0_i32_7 = arith.constant 0 : i32
    %26 = arith.cmpi ne, %25, %c0_i32_7 : i32
    scf.if %26 {
      %cst_21 = arith.constant 0.000000e+00 : f32
      %44 = vector.broadcast %cst_21 : f32 to vector<1x1x128xf32>
      %c0_22 = arith.constant 0 : index
      %c0_23 = arith.constant 0 : index
      %c0_24 = arith.constant 0 : index
      %45 = vector.load %arg5[%c0_22, %c0_23, %c0_24] : memref<1x1x128xf32, #tpu.memory_space<vmem>>, vector<1x1x128xf32>
      tpu.vector_store %arg5[%c0_22, %c0_23, %c0_24], %44 {strides = array<i32>} : memref<1x1x128xf32, #tpu.memory_space<vmem>>, vector<1x1x128xf32>,
      %cst_25 = arith.constant 0.000000e+00 : f32
      %46 = vector.broadcast %cst_25 : f32 to vector<1x1x128xf32>
      %c0_26 = arith.constant 0 : index
      %c0_27 = arith.constant 0 : index
      %c0_28 = arith.constant 0 : index
      %47 = vector.load %arg6[%c0_26, %c0_27, %c0_28] : memref<1x1x128xf32, #tpu.memory_space<vmem>>, vector<1x1x128xf32>
      tpu.vector_store %arg6[%c0_26, %c0_27, %c0_28], %46 {strides = array<i32>} : memref<1x1x128xf32, #tpu.memory_space<vmem>>, vector<1x1x128xf32>,
    } else {
    }
    %c0_8 = arith.constant 0 : index
    %c0_9 = arith.constant 0 : index
    %c0_10 = arith.constant 0 : index
    %27 = vector.load %arg5[%c0_8, %c0_9, %c0_10] : memref<1x1x128xf32, #tpu.memory_space<vmem>>, vector<1x1x128xf32>
    %28 = vector.shape_cast %27 : vector<1x1x128xf32> to vector<1x128xf32>
    %cst = arith.constant dense<0.000000e+00> : vector<128xf32>
    %29 = vector.multi_reduction <add>, %19, %cst [0] : vector<16x128xf32> to vector<128xf32>
    %30 = vector.shape_cast %29 : vector<128xf32> to vector<1x128xf32>
    %31 = arith.addf %28, %30 : vector<1x128xf32>
    %c0_11 = arith.constant 0 : index
    %c0_12 = arith.constant 0 : index
    %c0_13 = arith.constant 0 : index
    %32 = vector.load %arg5[%c0_11, %c0_12, %c0_13] : memref<1x1x128xf32, #tpu.memory_space<vmem>>, vector<1x1x128xf32>
    %33 = vector.shape_cast %32 : vector<1x1x128xf32> to vector<1x128xf32>
    %34 = vector.shape_cast %31 : vector<1x128xf32> to vector<1x1x128xf32>
    tpu.vector_store %arg5[%c0_11, %c0_12, %c0_13], %34 {strides = array<i32>} : memref<1x1x128xf32, #tpu.memory_space<vmem>>, vector<1x1x128xf32>,
    %c0_14 = arith.constant 0 : index
    %c0_15 = arith.constant 0 : index
    %c0_16 = arith.constant 0 : index
    %35 = vector.load %arg6[%c0_14, %c0_15, %c0_16] : memref<1x1x128xf32, #tpu.memory_space<vmem>>, vector<1x1x128xf32>
    %36 = vector.shape_cast %35 : vector<1x1x128xf32> to vector<1x128xf32>
    %37 = arith.mulf %19, %19 : vector<16x128xf32>
    %cst_17 = arith.constant dense<0.000000e+00> : vector<128xf32>
    %38 = vector.multi_reduction <add>, %37, %cst_17 [0] : vector<16x128xf32> to vector<128xf32>
    %39 = vector.shape_cast %38 : vector<128xf32> to vector<1x128xf32>
    %40 = arith.addf %36, %39 : vector<1x128xf32>
    %c0_18 = arith.constant 0 : index
    %c0_19 = arith.constant 0 : index
    %c0_20 = arith.constant 0 : index
    %41 = vector.load %arg6[%c0_18, %c0_19, %c0_20] : memref<1x1x128xf32, #tpu.memory_space<vmem>>, vector<1x1x128xf32>
    %42 = vector.shape_cast %41 : vector<1x1x128xf32> to vector<1x128xf32>
    %43 = vector.shape_cast %40 : vector<1x128xf32> to vector<1x1x128xf32>
    tpu.vector_store %arg6[%c0_18, %c0_19, %c0_20], %43 {strides = array<i32>} : memref<1x1x128xf32, #tpu.memory_space<vmem>>, vector<1x1x128xf32>,
    return
  }
  func.func @transform_0(%arg0: i32, %arg1: i32) -> (i32, i32, i32) {
    %c0_i32 = arith.constant 0 : i32
    %c0_i32_0 = arith.constant 0 : i32
    return %arg0, %arg1, %c0_i32 : i32, i32, i32
  }
  func.func @transform_1(%arg0: i32, %arg1: i32) -> (i32, i32) {
    %c0_i32 = arith.constant 0 : i32
    %c0_i32_0 = arith.constant 0 : i32
    %c0_i32_1 = arith.constant 0 : i32
    return %c0_i32, %c0_i32_0 : i32, i32
  }
  func.func @transform_2(%arg0: i32, %arg1: i32) -> (i32, i32, i32) {
    %c0_i32 = arith.constant 0 : i32
    %c0_i32_0 = arith.constant 0 : i32
    return %arg0, %arg1, %c0_i32 : i32, i32, i32
  }
  func.func @transform_3(%arg0: i32, %arg1: i32) -> (i32, i32, i32) {
    %c0_i32 = arith.constant 0 : i32
    %c0_i32_0 = arith.constant 0 : i32
    %c0_i32_1 = arith.constant 0 : i32
    return %arg0, %c0_i32, %c0_i32_0 : i32, i32, i32
  }
  func.func @transform_4(%arg0: i32, %arg1: i32) -> (i32, i32, i32) {
    %c0_i32 = arith.constant 0 : i32
    %c0_i32_0 = arith.constant 0 : i32
    %c0_i32_1 = arith.constant 0 : i32
    return %arg0, %c0_i32, %c0_i32_0 : i32, i32, i32
  }
}

module attributes {stable_mosaic.version = 11 : i64} {
  func.func @_stage2_kernel(%arg0: i32, %arg1: i32, %arg2: memref<1x16x128xbf16, #tpu.memory_space<vmem>>, %arg3: memref<1x128xf32, #tpu.memory_space<vmem>>, %arg4: memref<1x128xf32, #tpu.memory_space<vmem>>, %arg5: memref<128x256xbf16, #tpu.memory_space<vmem>>, %arg6: memref<1x16x256xbf16, #tpu.memory_space<vmem>>, %arg7: memref<1x1x256xf32, #tpu.memory_space<vmem>>, %arg8: memref<1x1x256xf32, #tpu.memory_space<vmem>>) attributes {dimension_semantics = [#tpu.dimension_semantics<parallel>, #tpu.dimension_semantics<arbitrary>], iteration_bounds = array<i64: 2, 1>, scalar_prefetch = 0 : i64, scratch_operands = 0 : i64, tpu.core_type = #tpu.core_type<tc>, window_params = [{transform_indices = @transform_0, window_bounds = array<i64: 1, 16, 128>}, {pipeline_mode = #tpu.pipeline_mode<synchronous>, transform_indices = @transform_1, window_bounds = array<i64: 1, 128>}, {pipeline_mode = #tpu.pipeline_mode<synchronous>, transform_indices = @transform_2, window_bounds = array<i64: 1, 128>}, {pipeline_mode = #tpu.pipeline_mode<synchronous>, transform_indices = @transform_3, window_bounds = array<i64: 128, 256>}, {transform_indices = @transform_4, window_bounds = array<i64: 1, 16, 256>}, {transform_indices = @transform_5, window_bounds = array<i64: 1, 1, 256>}, {transform_indices = @transform_6, window_bounds = array<i64: 1, 1, 256>}]} {
    %c0 = arith.constant 0 : index
    %c0_0 = arith.constant 0 : index
    %c0_1 = arith.constant 0 : index
    %0 = vector.load %arg2[%c0, %c0_0, %c0_1] : memref<1x16x128xbf16, #tpu.memory_space<vmem>>, vector<1x16x128xbf16>
    %1 = vector.shape_cast %0 : vector<1x16x128xbf16> to vector<16x128xbf16>
    %2 = arith.extf %1 : vector<16x128xbf16> to vector<16x128xf32>
    %c0_2 = arith.constant 0 : index
    %c0_3 = arith.constant 0 : index
    %3 = vector.load %arg3[%c0_2, %c0_3] : memref<1x128xf32, #tpu.memory_space<vmem>>, vector<1x128xf32>
    %4 = vector.broadcast %3 : vector<1x128xf32> to vector<16x128xf32>
    %5 = arith.mulf %2, %4 : vector<16x128xf32>
    %c0_4 = arith.constant 0 : index
    %c0_5 = arith.constant 0 : index
    %6 = vector.load %arg4[%c0_4, %c0_5] : memref<1x128xf32, #tpu.memory_space<vmem>>, vector<1x128xf32>
    %7 = vector.broadcast %6 : vector<1x128xf32> to vector<16x128xf32>
    %8 = arith.addf %5, %7 : vector<16x128xf32>
    %cst = arith.constant 0.000000e+00 : f32
    %9 = vector.broadcast %cst : f32 to vector<16x128xf32>
    %10 = arith.maximumf %8, %9 : vector<16x128xf32>
    %c0_6 = arith.constant 0 : index
    %c0_7 = arith.constant 0 : index
    %11 = vector.load %arg5[%c0_6, %c0_7] : memref<128x256xbf16, #tpu.memory_space<vmem>>, vector<128x256xbf16>
    %12 = arith.truncf %10 : vector<16x128xf32> to vector<16x128xbf16>
    %cst_8 = arith.constant dense<0.000000e+00> : vector<16x256xf32>
    %13 = tpu.matmul %12, %11, %cst_8 {dimension_numbers = #tpu.dot_dimension_numbers<[1], [0], [0], [1], [0, 0, 1, 1], [], []>} : vector<16x128xbf16>, vector<128x256xbf16>, vector<16x256xf32> -> vector<16x256xf32>
    %14 = arith.truncf %13 : vector<16x256xf32> to vector<16x256xbf16>
    %c0_9 = arith.constant 0 : index
    %c0_10 = arith.constant 0 : index
    %c0_11 = arith.constant 0 : index
    %15 = vector.load %arg6[%c0_9, %c0_10, %c0_11] : memref<1x16x256xbf16, #tpu.memory_space<vmem>>, vector<1x16x256xbf16>
    %16 = vector.shape_cast %15 : vector<1x16x256xbf16> to vector<16x256xbf16>
    %17 = vector.shape_cast %14 : vector<16x256xbf16> to vector<1x16x256xbf16>
    tpu.vector_store %arg6[%c0_9, %c0_10, %c0_11], %17 {strides = array<i32>} : memref<1x16x256xbf16, #tpu.memory_space<vmem>>, vector<1x16x256xbf16>,
    %c0_i32 = arith.constant 0 : i32
    %18 = arith.cmpi eq, %arg1, %c0_i32 : i32
    %19 = arith.extui %18 : i1 to i32
    %c0_i32_12 = arith.constant 0 : i32
    %20 = arith.cmpi ne, %19, %c0_i32_12 : i32
    scf.if %20 {
      %cst_28 = arith.constant 0.000000e+00 : f32
      %40 = vector.broadcast %cst_28 : f32 to vector<1x1x256xf32>
      %c0_29 = arith.constant 0 : index
      %c0_30 = arith.constant 0 : index
      %c0_31 = arith.constant 0 : index
      %41 = vector.load %arg7[%c0_29, %c0_30, %c0_31] : memref<1x1x256xf32, #tpu.memory_space<vmem>>, vector<1x1x256xf32>
      tpu.vector_store %arg7[%c0_29, %c0_30, %c0_31], %40 {strides = array<i32>} : memref<1x1x256xf32, #tpu.memory_space<vmem>>, vector<1x1x256xf32>,
      %cst_32 = arith.constant 0.000000e+00 : f32
      %42 = vector.broadcast %cst_32 : f32 to vector<1x1x256xf32>
      %c0_33 = arith.constant 0 : index
      %c0_34 = arith.constant 0 : index
      %c0_35 = arith.constant 0 : index
      %43 = vector.load %arg8[%c0_33, %c0_34, %c0_35] : memref<1x1x256xf32, #tpu.memory_space<vmem>>, vector<1x1x256xf32>
      tpu.vector_store %arg8[%c0_33, %c0_34, %c0_35], %42 {strides = array<i32>} : memref<1x1x256xf32, #tpu.memory_space<vmem>>, vector<1x1x256xf32>,
    } else {
    }
    %cst_13 = arith.constant dense<0.000000e+00> : vector<128xf32>
    %21 = vector.multi_reduction <add>, %10, %cst_13 [0] : vector<16x128xf32> to vector<128xf32>
    %22 = vector.shape_cast %21 : vector<128xf32> to vector<1x128xf32>
    %c0_14 = arith.constant 0 : index
    %c0_15 = arith.constant 0 : index
    %c0_16 = arith.constant 0 : index
    %23 = vector.load %arg7[%c0_14, %c0_15, %c0_16] : memref<1x1x256xf32, #tpu.memory_space<vmem>>, vector<1x1x256xf32>
    %24 = vector.shape_cast %23 : vector<1x1x256xf32> to vector<1x256xf32>
    %25 = arith.truncf %22 : vector<1x128xf32> to vector<1x128xbf16>
    %cst_17 = arith.constant dense<0.000000e+00> : vector<1x256xf32>
    %26 = tpu.matmul %25, %11, %cst_17 {dimension_numbers = #tpu.dot_dimension_numbers<[1], [0], [0], [1], [0, 0, 1, 1], [], []>} : vector<1x128xbf16>, vector<128x256xbf16>, vector<1x256xf32> -> vector<1x256xf32>
    %27 = arith.addf %24, %26 : vector<1x256xf32>
    %c0_18 = arith.constant 0 : index
    %c0_19 = arith.constant 0 : index
    %c0_20 = arith.constant 0 : index
    %28 = vector.load %arg7[%c0_18, %c0_19, %c0_20] : memref<1x1x256xf32, #tpu.memory_space<vmem>>, vector<1x1x256xf32>
    %29 = vector.shape_cast %28 : vector<1x1x256xf32> to vector<1x256xf32>
    %30 = vector.shape_cast %27 : vector<1x256xf32> to vector<1x1x256xf32>
    tpu.vector_store %arg7[%c0_18, %c0_19, %c0_20], %30 {strides = array<i32>} : memref<1x1x256xf32, #tpu.memory_space<vmem>>, vector<1x1x256xf32>,
    %c0_21 = arith.constant 0 : index
    %c0_22 = arith.constant 0 : index
    %c0_23 = arith.constant 0 : index
    %31 = vector.load %arg8[%c0_21, %c0_22, %c0_23] : memref<1x1x256xf32, #tpu.memory_space<vmem>>, vector<1x1x256xf32>
    %32 = vector.shape_cast %31 : vector<1x1x256xf32> to vector<1x256xf32>
    %33 = arith.mulf %13, %13 : vector<16x256xf32>
    %cst_24 = arith.constant dense<0.000000e+00> : vector<256xf32>
    %34 = vector.multi_reduction <add>, %33, %cst_24 [0] : vector<16x256xf32> to vector<256xf32>
    %35 = vector.shape_cast %34 : vector<256xf32> to vector<1x256xf32>
    %36 = arith.addf %32, %35 : vector<1x256xf32>
    %c0_25 = arith.constant 0 : index
    %c0_26 = arith.constant 0 : index
    %c0_27 = arith.constant 0 : index
    %37 = vector.load %arg8[%c0_25, %c0_26, %c0_27] : memref<1x1x256xf32, #tpu.memory_space<vmem>>, vector<1x1x256xf32>
    %38 = vector.shape_cast %37 : vector<1x1x256xf32> to vector<1x256xf32>
    %39 = vector.shape_cast %36 : vector<1x256xf32> to vector<1x1x256xf32>
    tpu.vector_store %arg8[%c0_25, %c0_26, %c0_27], %39 {strides = array<i32>} : memref<1x1x256xf32, #tpu.memory_space<vmem>>, vector<1x1x256xf32>,
    return
  }
  func.func @transform_0(%arg0: i32, %arg1: i32) -> (i32, i32, i32) {
    %c0_i32 = arith.constant 0 : i32
    %c0_i32_0 = arith.constant 0 : i32
    return %arg0, %arg1, %c0_i32 : i32, i32, i32
  }
  func.func @transform_1(%arg0: i32, %arg1: i32) -> (i32, i32) {
    %c0_i32 = arith.constant 0 : i32
    %c0_i32_0 = arith.constant 0 : i32
    %c0_i32_1 = arith.constant 0 : i32
    return %c0_i32, %c0_i32_0 : i32, i32
  }
  func.func @transform_2(%arg0: i32, %arg1: i32) -> (i32, i32) {
    %c0_i32 = arith.constant 0 : i32
    %c0_i32_0 = arith.constant 0 : i32
    %c0_i32_1 = arith.constant 0 : i32
    return %c0_i32, %c0_i32_0 : i32, i32
  }
  func.func @transform_3(%arg0: i32, %arg1: i32) -> (i32, i32) {
    %c0_i32 = arith.constant 0 : i32
    %c0_i32_0 = arith.constant 0 : i32
    %c0_i32_1 = arith.constant 0 : i32
    return %c0_i32, %c0_i32_0 : i32, i32
  }
  func.func @transform_4(%arg0: i32, %arg1: i32) -> (i32, i32, i32) {
    %c0_i32 = arith.constant 0 : i32
    %c0_i32_0 = arith.constant 0 : i32
    return %arg0, %arg1, %c0_i32 : i32, i32, i32
  }
  func.func @transform_5(%arg0: i32, %arg1: i32) -> (i32, i32, i32) {
    %c0_i32 = arith.constant 0 : i32
    %c0_i32_0 = arith.constant 0 : i32
    %c0_i32_1 = arith.constant 0 : i32
    return %arg0, %c0_i32, %c0_i32_0 : i32, i32, i32
  }
  func.func @transform_6(%arg0: i32, %arg1: i32) -> (i32, i32, i32) {
    %c0_i32 = arith.constant 0 : i32
    %c0_i32_0 = arith.constant 0 : i32
    %c0_i32_1 = arith.constant 0 : i32
    return %arg0, %c0_i32, %c0_i32_0 : i32, i32, i32
  }
}

module attributes {stable_mosaic.version = 11 : i64} {
  func.func @_stage3_kernel(%arg0: i32, %arg1: i32, %arg2: memref<1x16x256xbf16, #tpu.memory_space<vmem>>, %arg3: memref<1x256xf32, #tpu.memory_space<vmem>>, %arg4: memref<1x256xf32, #tpu.memory_space<vmem>>, %arg5: memref<256x1024xbf16, #tpu.memory_space<vmem>>, %arg6: memref<1x1x1024xf32, #tpu.memory_space<vmem>>, %arg7: memref<1x1x1024xf32, #tpu.memory_space<vmem>>, %arg8: memref<1x1x1024xf32, #tpu.memory_space<vmem>>, %arg9: memref<1x1x1024xf32, #tpu.memory_space<vmem>>) attributes {dimension_semantics = [#tpu.dimension_semantics<parallel>, #tpu.dimension_semantics<arbitrary>], iteration_bounds = array<i64: 2, 1>, scalar_prefetch = 0 : i64, scratch_operands = 0 : i64, tpu.core_type = #tpu.core_type<tc>, window_params = [{transform_indices = @transform_0, window_bounds = array<i64: 1, 16, 256>}, {pipeline_mode = #tpu.pipeline_mode<synchronous>, transform_indices = @transform_1, window_bounds = array<i64: 1, 256>}, {pipeline_mode = #tpu.pipeline_mode<synchronous>, transform_indices = @transform_2, window_bounds = array<i64: 1, 256>}, {pipeline_mode = #tpu.pipeline_mode<synchronous>, transform_indices = @transform_3, window_bounds = array<i64: 256, 1024>}, {transform_indices = @transform_4, window_bounds = array<i64: 1, 1, 1024>}, {transform_indices = @transform_5, window_bounds = array<i64: 1, 1, 1024>}, {transform_indices = @transform_6, window_bounds = array<i64: 1, 1, 1024>}, {transform_indices = @transform_7, window_bounds = array<i64: 1, 1, 1024>}]} {
    %c0 = arith.constant 0 : index
    %c0_0 = arith.constant 0 : index
    %c0_1 = arith.constant 0 : index
    %0 = vector.load %arg2[%c0, %c0_0, %c0_1] : memref<1x16x256xbf16, #tpu.memory_space<vmem>>, vector<1x16x256xbf16>
    %1 = vector.shape_cast %0 : vector<1x16x256xbf16> to vector<16x256xbf16>
    %2 = arith.extf %1 : vector<16x256xbf16> to vector<16x256xf32>
    %c0_2 = arith.constant 0 : index
    %c0_3 = arith.constant 0 : index
    %3 = vector.load %arg3[%c0_2, %c0_3] : memref<1x256xf32, #tpu.memory_space<vmem>>, vector<1x256xf32>
    %4 = vector.broadcast %3 : vector<1x256xf32> to vector<16x256xf32>
    %5 = arith.mulf %2, %4 : vector<16x256xf32>
    %c0_4 = arith.constant 0 : index
    %c0_5 = arith.constant 0 : index
    %6 = vector.load %arg4[%c0_4, %c0_5] : memref<1x256xf32, #tpu.memory_space<vmem>>, vector<1x256xf32>
    %7 = vector.broadcast %6 : vector<1x256xf32> to vector<16x256xf32>
    %8 = arith.addf %5, %7 : vector<16x256xf32>
    %cst = arith.constant 0.000000e+00 : f32
    %9 = vector.broadcast %cst : f32 to vector<16x256xf32>
    %10 = arith.maximumf %8, %9 : vector<16x256xf32>
    %c0_6 = arith.constant 0 : index
    %c0_7 = arith.constant 0 : index
    %11 = vector.load %arg5[%c0_6, %c0_7] : memref<256x1024xbf16, #tpu.memory_space<vmem>>, vector<256x1024xbf16>
    %12 = arith.truncf %10 : vector<16x256xf32> to vector<16x256xbf16>
    %cst_8 = arith.constant dense<0.000000e+00> : vector<16x1024xf32>
    %13 = tpu.matmul %12, %11, %cst_8 {dimension_numbers = #tpu.dot_dimension_numbers<[1], [0], [0], [1], [0, 0, 1, 1], [], []>} : vector<16x256xbf16>, vector<256x1024xbf16>, vector<16x1024xf32> -> vector<16x1024xf32>
    %c0_i32 = arith.constant 0 : i32
    %14 = arith.cmpi eq, %arg1, %c0_i32 : i32
    %15 = arith.extui %14 : i1 to i32
    %c0_i32_9 = arith.constant 0 : i32
    %16 = arith.cmpi ne, %15, %c0_i32_9 : i32
    scf.if %16 {
      %cst_31 = arith.constant 0.000000e+00 : f32
      %46 = vector.broadcast %cst_31 : f32 to vector<1x1x1024xf32>
      %c0_32 = arith.constant 0 : index
      %c0_33 = arith.constant 0 : index
      %c0_34 = arith.constant 0 : index
      %47 = vector.load %arg8[%c0_32, %c0_33, %c0_34] : memref<1x1x1024xf32, #tpu.memory_space<vmem>>, vector<1x1x1024xf32>
      tpu.vector_store %arg8[%c0_32, %c0_33, %c0_34], %46 {strides = array<i32>} : memref<1x1x1024xf32, #tpu.memory_space<vmem>>, vector<1x1x1024xf32>,
      %cst_35 = arith.constant 0.000000e+00 : f32
      %48 = vector.broadcast %cst_35 : f32 to vector<1x1x1024xf32>
      %c0_36 = arith.constant 0 : index
      %c0_37 = arith.constant 0 : index
      %c0_38 = arith.constant 0 : index
      %49 = vector.load %arg9[%c0_36, %c0_37, %c0_38] : memref<1x1x1024xf32, #tpu.memory_space<vmem>>, vector<1x1x1024xf32>
      tpu.vector_store %arg9[%c0_36, %c0_37, %c0_38], %48 {strides = array<i32>} : memref<1x1x1024xf32, #tpu.memory_space<vmem>>, vector<1x1x1024xf32>,
    } else {
    }
    %cst_10 = arith.constant dense<0.000000e+00> : vector<256xf32>
    %17 = vector.multi_reduction <add>, %10, %cst_10 [0] : vector<16x256xf32> to vector<256xf32>
    %18 = vector.shape_cast %17 : vector<256xf32> to vector<1x256xf32>
    %c0_11 = arith.constant 0 : index
    %c0_12 = arith.constant 0 : index
    %c0_13 = arith.constant 0 : index
    %19 = vector.load %arg8[%c0_11, %c0_12, %c0_13] : memref<1x1x1024xf32, #tpu.memory_space<vmem>>, vector<1x1x1024xf32>
    %20 = vector.shape_cast %19 : vector<1x1x1024xf32> to vector<1x1024xf32>
    %21 = arith.truncf %18 : vector<1x256xf32> to vector<1x256xbf16>
    %cst_14 = arith.constant dense<0.000000e+00> : vector<1x1024xf32>
    %22 = tpu.matmul %21, %11, %cst_14 {dimension_numbers = #tpu.dot_dimension_numbers<[1], [0], [0], [1], [0, 0, 1, 1], [], []>} : vector<1x256xbf16>, vector<256x1024xbf16>, vector<1x1024xf32> -> vector<1x1024xf32>
    %23 = arith.addf %20, %22 : vector<1x1024xf32>
    %c0_15 = arith.constant 0 : index
    %c0_16 = arith.constant 0 : index
    %c0_17 = arith.constant 0 : index
    %24 = vector.load %arg8[%c0_15, %c0_16, %c0_17] : memref<1x1x1024xf32, #tpu.memory_space<vmem>>, vector<1x1x1024xf32>
    %25 = vector.shape_cast %24 : vector<1x1x1024xf32> to vector<1x1024xf32>
    %26 = vector.shape_cast %23 : vector<1x1024xf32> to vector<1x1x1024xf32>
    tpu.vector_store %arg8[%c0_15, %c0_16, %c0_17], %26 {strides = array<i32>} : memref<1x1x1024xf32, #tpu.memory_space<vmem>>, vector<1x1x1024xf32>,
    %c0_18 = arith.constant 0 : index
    %c0_19 = arith.constant 0 : index
    %c0_20 = arith.constant 0 : index
    %27 = vector.load %arg9[%c0_18, %c0_19, %c0_20] : memref<1x1x1024xf32, #tpu.memory_space<vmem>>, vector<1x1x1024xf32>
    %28 = vector.shape_cast %27 : vector<1x1x1024xf32> to vector<1x1024xf32>
    %29 = arith.mulf %13, %13 : vector<16x1024xf32>
    %cst_21 = arith.constant dense<0.000000e+00> : vector<1024xf32>
    %30 = vector.multi_reduction <add>, %29, %cst_21 [0] : vector<16x1024xf32> to vector<1024xf32>
    %31 = vector.shape_cast %30 : vector<1024xf32> to vector<1x1024xf32>
    %32 = arith.addf %28, %31 : vector<1x1024xf32>
    %c0_22 = arith.constant 0 : index
    %c0_23 = arith.constant 0 : index
    %c0_24 = arith.constant 0 : index
    %33 = vector.load %arg9[%c0_22, %c0_23, %c0_24] : memref<1x1x1024xf32, #tpu.memory_space<vmem>>, vector<1x1x1024xf32>
    %34 = vector.shape_cast %33 : vector<1x1x1024xf32> to vector<1x1024xf32>
    %35 = vector.shape_cast %32 : vector<1x1024xf32> to vector<1x1x1024xf32>
    tpu.vector_store %arg9[%c0_22, %c0_23, %c0_24], %35 {strides = array<i32>} : memref<1x1x1024xf32, #tpu.memory_space<vmem>>, vector<1x1x1024xf32>,
    %cst_25 = arith.constant dense<0xFF800000> : vector<1024xf32>
    %36 = vector.multi_reduction <maximumf>, %13, %cst_25 [0] : vector<16x1024xf32> to vector<1024xf32>
    %37 = vector.shape_cast %36 : vector<1024xf32> to vector<1x1024xf32>
    %cst_26 = arith.constant dense<0x7F800000> : vector<1024xf32>
    %38 = vector.multi_reduction <minimumf>, %13, %cst_26 [0] : vector<16x1024xf32> to vector<1024xf32>
    %39 = vector.shape_cast %38 : vector<1024xf32> to vector<1x1024xf32>
    %c0_i32_27 = arith.constant 0 : i32
    %40 = arith.cmpi eq, %arg1, %c0_i32_27 : i32
    %41 = arith.extui %40 : i1 to i32
    %c0_i32_28 = arith.constant 0 : i32
    %42 = arith.cmpi ne, %41, %c0_i32_28 : i32
    scf.if %42 {
      %c0_31 = arith.constant 0 : index
      %c0_32 = arith.constant 0 : index
      %c0_33 = arith.constant 0 : index
      %46 = vector.load %arg6[%c0_31, %c0_32, %c0_33] : memref<1x1x1024xf32, #tpu.memory_space<vmem>>, vector<1x1x1024xf32>
      %47 = vector.shape_cast %46 : vector<1x1x1024xf32> to vector<1x1024xf32>
      %48 = vector.shape_cast %37 : vector<1x1024xf32> to vector<1x1x1024xf32>
      tpu.vector_store %arg6[%c0_31, %c0_32, %c0_33], %48 {strides = array<i32>} : memref<1x1x1024xf32, #tpu.memory_space<vmem>>, vector<1x1x1024xf32>,
      %c0_34 = arith.constant 0 : index
      %c0_35 = arith.constant 0 : index
      %c0_36 = arith.constant 0 : index
      %49 = vector.load %arg7[%c0_34, %c0_35, %c0_36] : memref<1x1x1024xf32, #tpu.memory_space<vmem>>, vector<1x1x1024xf32>
      %50 = vector.shape_cast %49 : vector<1x1x1024xf32> to vector<1x1024xf32>
      %51 = vector.shape_cast %39 : vector<1x1024xf32> to vector<1x1x1024xf32>
      tpu.vector_store %arg7[%c0_34, %c0_35, %c0_36], %51 {strides = array<i32>} : memref<1x1x1024xf32, #tpu.memory_space<vmem>>, vector<1x1x1024xf32>,
    } else {
    }
    %c0_i32_29 = arith.constant 0 : i32
    %43 = arith.cmpi sgt, %arg1, %c0_i32_29 : i32
    %44 = arith.extui %43 : i1 to i32
    %c0_i32_30 = arith.constant 0 : i32
    %45 = arith.cmpi ne, %44, %c0_i32_30 : i32
    scf.if %45 {
      %c0_31 = arith.constant 0 : index
      %c0_32 = arith.constant 0 : index
      %c0_33 = arith.constant 0 : index
      %46 = vector.load %arg6[%c0_31, %c0_32, %c0_33] : memref<1x1x1024xf32, #tpu.memory_space<vmem>>, vector<1x1x1024xf32>
      %47 = vector.shape_cast %46 : vector<1x1x1024xf32> to vector<1x1024xf32>
      %48 = arith.maximumf %47, %37 : vector<1x1024xf32>
      %c0_34 = arith.constant 0 : index
      %c0_35 = arith.constant 0 : index
      %c0_36 = arith.constant 0 : index
      %49 = vector.load %arg6[%c0_34, %c0_35, %c0_36] : memref<1x1x1024xf32, #tpu.memory_space<vmem>>, vector<1x1x1024xf32>
      %50 = vector.shape_cast %49 : vector<1x1x1024xf32> to vector<1x1024xf32>
      %51 = vector.shape_cast %48 : vector<1x1024xf32> to vector<1x1x1024xf32>
      tpu.vector_store %arg6[%c0_34, %c0_35, %c0_36], %51 {strides = array<i32>} : memref<1x1x1024xf32, #tpu.memory_space<vmem>>, vector<1x1x1024xf32>,
      %c0_37 = arith.constant 0 : index
      %c0_38 = arith.constant 0 : index
      %c0_39 = arith.constant 0 : index
      %52 = vector.load %arg7[%c0_37, %c0_38, %c0_39] : memref<1x1x1024xf32, #tpu.memory_space<vmem>>, vector<1x1x1024xf32>
      %53 = vector.shape_cast %52 : vector<1x1x1024xf32> to vector<1x1024xf32>
      %54 = arith.minimumf %53, %39 : vector<1x1024xf32>
      %c0_40 = arith.constant 0 : index
      %c0_41 = arith.constant 0 : index
      %c0_42 = arith.constant 0 : index
      %55 = vector.load %arg7[%c0_40, %c0_41, %c0_42] : memref<1x1x1024xf32, #tpu.memory_space<vmem>>, vector<1x1x1024xf32>
      %56 = vector.shape_cast %55 : vector<1x1x1024xf32> to vector<1x1024xf32>
      %57 = vector.shape_cast %54 : vector<1x1024xf32> to vector<1x1x1024xf32>
      tpu.vector_store %arg7[%c0_40, %c0_41, %c0_42], %57 {strides = array<i32>} : memref<1x1x1024xf32, #tpu.memory_space<vmem>>, vector<1x1x1024xf32>,
    } else {
    }
    return
  }
  func.func @transform_0(%arg0: i32, %arg1: i32) -> (i32, i32, i32) {
    %c0_i32 = arith.constant 0 : i32
    %c0_i32_0 = arith.constant 0 : i32
    return %arg0, %arg1, %c0_i32 : i32, i32, i32
  }
  func.func @transform_1(%arg0: i32, %arg1: i32) -> (i32, i32) {
    %c0_i32 = arith.constant 0 : i32
    %c0_i32_0 = arith.constant 0 : i32
    %c0_i32_1 = arith.constant 0 : i32
    return %c0_i32, %c0_i32_0 : i32, i32
  }
  func.func @transform_2(%arg0: i32, %arg1: i32) -> (i32, i32) {
    %c0_i32 = arith.constant 0 : i32
    %c0_i32_0 = arith.constant 0 : i32
    %c0_i32_1 = arith.constant 0 : i32
    return %c0_i32, %c0_i32_0 : i32, i32
  }
  func.func @transform_3(%arg0: i32, %arg1: i32) -> (i32, i32) {
    %c0_i32 = arith.constant 0 : i32
    %c0_i32_0 = arith.constant 0 : i32
    %c0_i32_1 = arith.constant 0 : i32
    return %c0_i32, %c0_i32_0 : i32, i32
  }
  func.func @transform_4(%arg0: i32, %arg1: i32) -> (i32, i32, i32) {
    %c0_i32 = arith.constant 0 : i32
    %c0_i32_0 = arith.constant 0 : i32
    %c0_i32_1 = arith.constant 0 : i32
    return %arg0, %c0_i32, %c0_i32_0 : i32, i32, i32
  }
  func.func @transform_5(%arg0: i32, %arg1: i32) -> (i32, i32, i32) {
    %c0_i32 = arith.constant 0 : i32
    %c0_i32_0 = arith.constant 0 : i32
    %c0_i32_1 = arith.constant 0 : i32
    return %arg0, %c0_i32, %c0_i32_0 : i32, i32, i32
  }
  func.func @transform_6(%arg0: i32, %arg1: i32) -> (i32, i32, i32) {
    %c0_i32 = arith.constant 0 : i32
    %c0_i32_0 = arith.constant 0 : i32
    %c0_i32_1 = arith.constant 0 : i32
    return %arg0, %c0_i32, %c0_i32_0 : i32, i32, i32
  }
  func.func @transform_7(%arg0: i32, %arg1: i32) -> (i32, i32, i32) {
    %c0_i32 = arith.constant 0 : i32
    %c0_i32_0 = arith.constant 0 : i32
    %c0_i32_1 = arith.constant 0 : i32
    return %arg0, %c0_i32, %c0_i32_0 : i32, i32, i32
  }
}

module attributes {stable_mosaic.version = 11 : i64} {
  func.func @_stage4_kernel(%arg0: memref<2x1024xf32, #tpu.memory_space<vmem>>, %arg1: memref<2x1024xf32, #tpu.memory_space<vmem>>, %arg2: memref<1x1024xf32, #tpu.memory_space<vmem>>, %arg3: memref<1x1024xf32, #tpu.memory_space<vmem>>, %arg4: memref<1024x512xbf16, #tpu.memory_space<vmem>>, %arg5: memref<1x512xf32, #tpu.memory_space<vmem>>, %arg6: memref<1x512xf32, #tpu.memory_space<vmem>>, %arg7: memref<512x256xbf16, #tpu.memory_space<vmem>>, %arg8: memref<1x256xf32, #tpu.memory_space<vmem>>, %arg9: memref<1x256xf32, #tpu.memory_space<vmem>>, %arg10: memref<256x9xf32, #tpu.memory_space<vmem>>, %arg11: memref<1x9xf32, #tpu.memory_space<vmem>>, %arg12: memref<2x9xf32, #tpu.memory_space<vmem>>) attributes {dimension_semantics = [], scalar_prefetch = 0 : i64, scratch_operands = 0 : i64, tpu.core_type = #tpu.core_type<tc>} {
    %c0 = arith.constant 0 : index
    %c0_0 = arith.constant 0 : index
    %0 = vector.load %arg2[%c0, %c0_0] : memref<1x1024xf32, #tpu.memory_space<vmem>>, vector<1x1024xf32>
    %c0_1 = arith.constant 0 : index
    %c0_2 = arith.constant 0 : index
    %1 = vector.load %arg3[%c0_1, %c0_2] : memref<1x1024xf32, #tpu.memory_space<vmem>>, vector<1x1024xf32>
    %cst = arith.constant 0.000000e+00 : f32
    %2 = vector.broadcast %cst : f32 to vector<1x1024xf32>
    %3 = arith.cmpf oge, %0, %2 : vector<1x1024xf32>
    %c0_3 = arith.constant 0 : index
    %c0_4 = arith.constant 0 : index
    %4 = vector.load %arg0[%c0_3, %c0_4] : memref<2x1024xf32, #tpu.memory_space<vmem>>, vector<2x1024xf32>
    %5 = vector.broadcast %0 : vector<1x1024xf32> to vector<2x1024xf32>
    %6 = arith.mulf %4, %5 : vector<2x1024xf32>
    %7 = vector.broadcast %1 : vector<1x1024xf32> to vector<2x1024xf32>
    %8 = arith.addf %6, %7 : vector<2x1024xf32>
    %c0_5 = arith.constant 0 : index
    %c0_6 = arith.constant 0 : index
    %9 = vector.load %arg1[%c0_5, %c0_6] : memref<2x1024xf32, #tpu.memory_space<vmem>>, vector<2x1024xf32>
    %10 = vector.broadcast %0 : vector<1x1024xf32> to vector<2x1024xf32>
    %11 = arith.mulf %9, %10 : vector<2x1024xf32>
    %12 = vector.broadcast %1 : vector<1x1024xf32> to vector<2x1024xf32>
    %13 = arith.addf %11, %12 : vector<2x1024xf32>
    %14 = vector.shape_cast %3 : vector<1x1024xi1> to vector<1x1024xi1>
    %15 = vector.broadcast %14 : vector<1x1024xi1> to vector<2x1024xi1>
    %16 = arith.select %15, %8, %13 : vector<2x1024xi1>, vector<2x1024xf32>
    %17 = arith.truncf %16 : vector<2x1024xf32> to vector<2x1024xbf16>
    %c0_7 = arith.constant 0 : index
    %c0_8 = arith.constant 0 : index
    %18 = vector.load %arg4[%c0_7, %c0_8] : memref<1024x512xbf16, #tpu.memory_space<vmem>>, vector<1024x512xbf16>
    %cst_9 = arith.constant dense<0.000000e+00> : vector<2x512xf32>
    %19 = tpu.matmul %17, %18, %cst_9 {dimension_numbers = #tpu.dot_dimension_numbers<[1], [0], [0], [1], [0, 0, 1, 1], [], []>} : vector<2x1024xbf16>, vector<1024x512xbf16>, vector<2x512xf32> -> vector<2x512xf32>
    %c0_10 = arith.constant 0 : index
    %c0_11 = arith.constant 0 : index
    %20 = vector.load %arg5[%c0_10, %c0_11] : memref<1x512xf32, #tpu.memory_space<vmem>>, vector<1x512xf32>
    %c0_12 = arith.constant 0 : index
    %c0_13 = arith.constant 0 : index
    %21 = vector.load %arg6[%c0_12, %c0_13] : memref<1x512xf32, #tpu.memory_space<vmem>>, vector<1x512xf32>
    %cst_14 = arith.constant dense<0.000000e+00> : vector<512xf32>
    %22 = vector.multi_reduction <add>, %19, %cst_14 [0] : vector<2x512xf32> to vector<512xf32>
    %23 = vector.shape_cast %22 : vector<512xf32> to vector<1x512xf32>
    %24 = arith.mulf %19, %19 : vector<2x512xf32>
    %cst_15 = arith.constant dense<0.000000e+00> : vector<512xf32>
    %25 = vector.multi_reduction <add>, %24, %cst_15 [0] : vector<2x512xf32> to vector<512xf32>
    %26 = vector.shape_cast %25 : vector<512xf32> to vector<1x512xf32>
    %cst_16 = arith.constant 2.000000e+00 : f32
    %27 = vector.broadcast %cst_16 : f32 to vector<1x512xf32>
    %28 = arith.divf %23, %27 : vector<1x512xf32>
    %cst_17 = arith.constant 2.000000e+00 : f32
    %29 = vector.broadcast %cst_17 : f32 to vector<1x512xf32>
    %30 = arith.divf %26, %29 : vector<1x512xf32>
    %31 = arith.mulf %28, %28 : vector<1x512xf32>
    %32 = arith.subf %30, %31 : vector<1x512xf32>
    %33 = vector.broadcast %28 : vector<1x512xf32> to vector<2x512xf32>
    %34 = arith.subf %19, %33 : vector<2x512xf32>
    %cst_18 = arith.constant 9.99999974E-6 : f32
    %35 = vector.broadcast %cst_18 : f32 to vector<1x512xf32>
    %36 = arith.addf %32, %35 : vector<1x512xf32>
    %37 = math.rsqrt %36 : vector<1x512xf32>
    %38 = vector.broadcast %37 : vector<1x512xf32> to vector<2x512xf32>
    %39 = arith.mulf %34, %38 : vector<2x512xf32>
    %40 = vector.broadcast %20 : vector<1x512xf32> to vector<2x512xf32>
    %41 = arith.mulf %39, %40 : vector<2x512xf32>
    %42 = vector.broadcast %21 : vector<1x512xf32> to vector<2x512xf32>
    %43 = arith.addf %41, %42 : vector<2x512xf32>
    %cst_19 = arith.constant 0.000000e+00 : f32
    %44 = vector.broadcast %cst_19 : f32 to vector<2x512xf32>
    %45 = arith.maximumf %43, %44 : vector<2x512xf32>
    %46 = arith.truncf %45 : vector<2x512xf32> to vector<2x512xbf16>
    %c0_20 = arith.constant 0 : index
    %c0_21 = arith.constant 0 : index
    %47 = vector.load %arg7[%c0_20, %c0_21] : memref<512x256xbf16, #tpu.memory_space<vmem>>, vector<512x256xbf16>
    %cst_22 = arith.constant dense<0.000000e+00> : vector<2x256xf32>
    %48 = tpu.matmul %46, %47, %cst_22 {dimension_numbers = #tpu.dot_dimension_numbers<[1], [0], [0], [1], [0, 0, 1, 1], [], []>} : vector<2x512xbf16>, vector<512x256xbf16>, vector<2x256xf32> -> vector<2x256xf32>
    %c0_23 = arith.constant 0 : index
    %c0_24 = arith.constant 0 : index
    %49 = vector.load %arg8[%c0_23, %c0_24] : memref<1x256xf32, #tpu.memory_space<vmem>>, vector<1x256xf32>
    %c0_25 = arith.constant 0 : index
    %c0_26 = arith.constant 0 : index
    %50 = vector.load %arg9[%c0_25, %c0_26] : memref<1x256xf32, #tpu.memory_space<vmem>>, vector<1x256xf32>
    %cst_27 = arith.constant dense<0.000000e+00> : vector<256xf32>
    %51 = vector.multi_reduction <add>, %48, %cst_27 [0] : vector<2x256xf32> to vector<256xf32>
    %52 = vector.shape_cast %51 : vector<256xf32> to vector<1x256xf32>
    %53 = arith.mulf %48, %48 : vector<2x256xf32>
    %cst_28 = arith.constant dense<0.000000e+00> : vector<256xf32>
    %54 = vector.multi_reduction <add>, %53, %cst_28 [0] : vector<2x256xf32> to vector<256xf32>
    %55 = vector.shape_cast %54 : vector<256xf32> to vector<1x256xf32>
    %cst_29 = arith.constant 2.000000e+00 : f32
    %56 = vector.broadcast %cst_29 : f32 to vector<1x256xf32>
    %57 = arith.divf %52, %56 : vector<1x256xf32>
    %cst_30 = arith.constant 2.000000e+00 : f32
    %58 = vector.broadcast %cst_30 : f32 to vector<1x256xf32>
    %59 = arith.divf %55, %58 : vector<1x256xf32>
    %60 = arith.mulf %57, %57 : vector<1x256xf32>
    %61 = arith.subf %59, %60 : vector<1x256xf32>
    %62 = vector.broadcast %57 : vector<1x256xf32> to vector<2x256xf32>
    %63 = arith.subf %48, %62 : vector<2x256xf32>
    %cst_31 = arith.constant 9.99999974E-6 : f32
    %64 = vector.broadcast %cst_31 : f32 to vector<1x256xf32>
    %65 = arith.addf %61, %64 : vector<1x256xf32>
    %66 = math.rsqrt %65 : vector<1x256xf32>
    %67 = vector.broadcast %66 : vector<1x256xf32> to vector<2x256xf32>
    %68 = arith.mulf %63, %67 : vector<2x256xf32>
    %69 = vector.broadcast %49 : vector<1x256xf32> to vector<2x256xf32>
    %70 = arith.mulf %68, %69 : vector<2x256xf32>
    %71 = vector.broadcast %50 : vector<1x256xf32> to vector<2x256xf32>
    %72 = arith.addf %70, %71 : vector<2x256xf32>
    %cst_32 = arith.constant 0.000000e+00 : f32
    %73 = vector.broadcast %cst_32 : f32 to vector<2x256xf32>
    %74 = arith.maximumf %72, %73 : vector<2x256xf32>
    %c0_33 = arith.constant 0 : index
    %c0_34 = arith.constant 0 : index
    %75 = vector.load %arg10[%c0_33, %c0_34] : memref<256x9xf32, #tpu.memory_space<vmem>>, vector<256x9xf32>
    %cst_35 = arith.constant dense<0.000000e+00> : vector<2x9xf32>
    %76 = tpu.matmul %74, %75, %cst_35 {dimension_numbers = #tpu.dot_dimension_numbers<[1], [0], [0], [1], [0, 0, 1, 1], [], []>} : vector<2x256xf32>, vector<256x9xf32>, vector<2x9xf32> -> vector<2x9xf32>
    %c0_36 = arith.constant 0 : index
    %c0_37 = arith.constant 0 : index
    %77 = vector.load %arg11[%c0_36, %c0_37] : memref<1x9xf32, #tpu.memory_space<vmem>>, vector<1x9xf32>
    %78 = vector.broadcast %77 : vector<1x9xf32> to vector<2x9xf32>
    %79 = arith.addf %76, %78 : vector<2x9xf32>
    %c0_38 = arith.constant 0 : index
    %c0_39 = arith.constant 0 : index
    %80 = vector.load %arg12[%c0_38, %c0_39] : memref<2x9xf32, #tpu.memory_space<vmem>>, vector<2x9xf32>
    tpu.vector_store %arg12[%c0_38, %c0_39], %79 {strides = array<i32>} : memref<2x9xf32, #tpu.memory_space<vmem>>, vector<2x9xf32>,
    return
  }
}

module attributes {stable_mosaic.version = 11 : i64} {
  func.func @_stage5_kernel(%arg0: i32, %arg1: i32, %arg2: memref<1x16x3xf32, #tpu.memory_space<vmem>>, %arg3: memref<1x3x32xf32, #tpu.memory_space<vmem>>, %arg4: memref<1x16x32xbf16, #tpu.memory_space<vmem>>, %arg5: memref<1x1x32xf32, #tpu.memory_space<vmem>>, %arg6: memref<1x1x32xf32, #tpu.memory_space<vmem>>) attributes {dimension_semantics = [#tpu.dimension_semantics<parallel>, #tpu.dimension_semantics<arbitrary>], iteration_bounds = array<i64: 2, 1>, scalar_prefetch = 0 : i64, scratch_operands = 0 : i64, tpu.core_type = #tpu.core_type<tc>, window_params = [{transform_indices = @transform_0, window_bounds = array<i64: 1, 16, 3>}, {transform_indices = @transform_1, window_bounds = array<i64: 1, 3, 32>}, {transform_indices = @transform_2, window_bounds = array<i64: 1, 16, 32>}, {transform_indices = @transform_3, window_bounds = array<i64: 1, 1, 32>}, {transform_indices = @transform_4, window_bounds = array<i64: 1, 1, 32>}]} {
    %c0 = arith.constant 0 : index
    %c0_0 = arith.constant 0 : index
    %c0_1 = arith.constant 0 : index
    %0 = vector.load %arg2[%c0, %c0_0, %c0_1] : memref<1x16x3xf32, #tpu.memory_space<vmem>>, vector<1x16x3xf32>
    %1 = vector.shape_cast %0 : vector<1x16x3xf32> to vector<16x3xf32>
    %c0_2 = arith.constant 0 : index
    %c0_3 = arith.constant 0 : index
    %c0_4 = arith.constant 0 : index
    %2 = vector.load %arg3[%c0_2, %c0_3, %c0_4] : memref<1x3x32xf32, #tpu.memory_space<vmem>>, vector<1x3x32xf32>
    %3 = vector.shape_cast %2 : vector<1x3x32xf32> to vector<3x32xf32>
    %4 = vector.extract_strided_slice %1 {offsets = [0, 0], sizes = [16, 1], strides = [1, 1]} : vector<16x3xf32> to vector<16x1xf32>
    %5 = vector.extract_strided_slice %3 {offsets = [0, 0], sizes = [1, 32], strides = [1, 1]} : vector<3x32xf32> to vector<1x32xf32>
    %6 = vector.broadcast %4 : vector<16x1xf32> to vector<16x32xf32>
    %7 = vector.broadcast %5 : vector<1x32xf32> to vector<16x32xf32>
    %8 = arith.mulf %6, %7 : vector<16x32xf32>
    %9 = vector.extract_strided_slice %1 {offsets = [0, 1], sizes = [16, 1], strides = [1, 1]} : vector<16x3xf32> to vector<16x1xf32>
    %10 = vector.extract_strided_slice %3 {offsets = [1, 0], sizes = [1, 32], strides = [1, 1]} : vector<3x32xf32> to vector<1x32xf32>
    %11 = vector.broadcast %9 : vector<16x1xf32> to vector<16x32xf32>
    %12 = vector.broadcast %10 : vector<1x32xf32> to vector<16x32xf32>
    %13 = arith.mulf %11, %12 : vector<16x32xf32>
    %14 = arith.addf %8, %13 : vector<16x32xf32>
    %15 = vector.extract_strided_slice %1 {offsets = [0, 2], sizes = [16, 1], strides = [1, 1]} : vector<16x3xf32> to vector<16x1xf32>
    %16 = vector.extract_strided_slice %3 {offsets = [2, 0], sizes = [1, 32], strides = [1, 1]} : vector<3x32xf32> to vector<1x32xf32>
    %17 = vector.broadcast %15 : vector<16x1xf32> to vector<16x32xf32>
    %18 = vector.broadcast %16 : vector<1x32xf32> to vector<16x32xf32>
    %19 = arith.mulf %17, %18 : vector<16x32xf32>
    %20 = arith.addf %14, %19 : vector<16x32xf32>
    %21 = arith.truncf %20 : vector<16x32xf32> to vector<16x32xbf16>
    %c0_5 = arith.constant 0 : index
    %c0_6 = arith.constant 0 : index
    %c0_7 = arith.constant 0 : index
    %22 = vector.load %arg4[%c0_5, %c0_6, %c0_7] : memref<1x16x32xbf16, #tpu.memory_space<vmem>>, vector<1x16x32xbf16>
    %23 = vector.shape_cast %22 : vector<1x16x32xbf16> to vector<16x32xbf16>
    %24 = vector.shape_cast %21 : vector<16x32xbf16> to vector<1x16x32xbf16>
    tpu.vector_store %arg4[%c0_5, %c0_6, %c0_7], %24 {strides = array<i32>} : memref<1x16x32xbf16, #tpu.memory_space<vmem>>, vector<1x16x32xbf16>,
    %c0_i32 = arith.constant 0 : i32
    %25 = arith.cmpi eq, %arg1, %c0_i32 : i32
    %26 = arith.extui %25 : i1 to i32
    %c0_i32_8 = arith.constant 0 : i32
    %27 = arith.cmpi ne, %26, %c0_i32_8 : i32
    scf.if %27 {
      %cst_22 = arith.constant 0.000000e+00 : f32
      %45 = vector.broadcast %cst_22 : f32 to vector<1x1x32xf32>
      %c0_23 = arith.constant 0 : index
      %c0_24 = arith.constant 0 : index
      %c0_25 = arith.constant 0 : index
      %46 = vector.load %arg5[%c0_23, %c0_24, %c0_25] : memref<1x1x32xf32, #tpu.memory_space<vmem>>, vector<1x1x32xf32>
      tpu.vector_store %arg5[%c0_23, %c0_24, %c0_25], %45 {strides = array<i32>} : memref<1x1x32xf32, #tpu.memory_space<vmem>>, vector<1x1x32xf32>,
      %cst_26 = arith.constant 0.000000e+00 : f32
      %47 = vector.broadcast %cst_26 : f32 to vector<1x1x32xf32>
      %c0_27 = arith.constant 0 : index
      %c0_28 = arith.constant 0 : index
      %c0_29 = arith.constant 0 : index
      %48 = vector.load %arg6[%c0_27, %c0_28, %c0_29] : memref<1x1x32xf32, #tpu.memory_space<vmem>>, vector<1x1x32xf32>
      tpu.vector_store %arg6[%c0_27, %c0_28, %c0_29], %47 {strides = array<i32>} : memref<1x1x32xf32, #tpu.memory_space<vmem>>, vector<1x1x32xf32>,
    } else {
    }
    %c0_9 = arith.constant 0 : index
    %c0_10 = arith.constant 0 : index
    %c0_11 = arith.constant 0 : index
    %28 = vector.load %arg5[%c0_9, %c0_10, %c0_11] : memref<1x1x32xf32, #tpu.memory_space<vmem>>, vector<1x1x32xf32>
    %29 = vector.shape_cast %28 : vector<1x1x32xf32> to vector<1x32xf32>
    %cst = arith.constant dense<0.000000e+00> : vector<32xf32>
    %30 = vector.multi_reduction <add>, %20, %cst [0] : vector<16x32xf32> to vector<32xf32>
    %31 = vector.shape_cast %30 : vector<32xf32> to vector<1x32xf32>
    %32 = arith.addf %29, %31 : vector<1x32xf32>
    %c0_12 = arith.constant 0 : index
    %c0_13 = arith.constant 0 : index
    %c0_14 = arith.constant 0 : index
    %33 = vector.load %arg5[%c0_12, %c0_13, %c0_14] : memref<1x1x32xf32, #tpu.memory_space<vmem>>, vector<1x1x32xf32>
    %34 = vector.shape_cast %33 : vector<1x1x32xf32> to vector<1x32xf32>
    %35 = vector.shape_cast %32 : vector<1x32xf32> to vector<1x1x32xf32>
    tpu.vector_store %arg5[%c0_12, %c0_13, %c0_14], %35 {strides = array<i32>} : memref<1x1x32xf32, #tpu.memory_space<vmem>>, vector<1x1x32xf32>,
    %c0_15 = arith.constant 0 : index
    %c0_16 = arith.constant 0 : index
    %c0_17 = arith.constant 0 : index
    %36 = vector.load %arg6[%c0_15, %c0_16, %c0_17] : memref<1x1x32xf32, #tpu.memory_space<vmem>>, vector<1x1x32xf32>
    %37 = vector.shape_cast %36 : vector<1x1x32xf32> to vector<1x32xf32>
    %38 = arith.mulf %20, %20 : vector<16x32xf32>
    %cst_18 = arith.constant dense<0.000000e+00> : vector<32xf32>
    %39 = vector.multi_reduction <add>, %38, %cst_18 [0] : vector<16x32xf32> to vector<32xf32>
    %40 = vector.shape_cast %39 : vector<32xf32> to vector<1x32xf32>
    %41 = arith.addf %37, %40 : vector<1x32xf32>
    %c0_19 = arith.constant 0 : index
    %c0_20 = arith.constant 0 : index
    %c0_21 = arith.constant 0 : index
    %42 = vector.load %arg6[%c0_19, %c0_20, %c0_21] : memref<1x1x32xf32, #tpu.memory_space<vmem>>, vector<1x1x32xf32>
    %43 = vector.shape_cast %42 : vector<1x1x32xf32> to vector<1x32xf32>
    %44 = vector.shape_cast %41 : vector<1x32xf32> to vector<1x1x32xf32>
    tpu.vector_store %arg6[%c0_19, %c0_20, %c0_21], %44 {strides = array<i32>} : memref<1x1x32xf32, #tpu.memory_space<vmem>>, vector<1x1x32xf32>,
    return
  }
  func.func @transform_0(%arg0: i32, %arg1: i32) -> (i32, i32, i32) {
    %c0_i32 = arith.constant 0 : i32
    %c0_i32_0 = arith.constant 0 : i32
    return %arg0, %arg1, %c0_i32 : i32, i32, i32
  }
  func.func @transform_1(%arg0: i32, %arg1: i32) -> (i32, i32, i32) {
    %c0_i32 = arith.constant 0 : i32
    %c0_i32_0 = arith.constant 0 : i32
    %c0_i32_1 = arith.constant 0 : i32
    return %arg0, %c0_i32, %c0_i32_0 : i32, i32, i32
  }
  func.func @transform_2(%arg0: i32, %arg1: i32) -> (i32, i32, i32) {
    %c0_i32 = arith.constant 0 : i32
    %c0_i32_0 = arith.constant 0 : i32
    return %arg0, %arg1, %c0_i32 : i32, i32, i32
  }
  func.func @transform_3(%arg0: i32, %arg1: i32) -> (i32, i32, i32) {
    %c0_i32 = arith.constant 0 : i32
    %c0_i32_0 = arith.constant 0 : i32
    %c0_i32_1 = arith.constant 0 : i32
    return %arg0, %c0_i32, %c0_i32_0 : i32, i32, i32
  }
  func.func @transform_4(%arg0: i32, %arg1: i32) -> (i32, i32, i32) {
    %c0_i32 = arith.constant 0 : i32
    %c0_i32_0 = arith.constant 0 : i32
    %c0_i32_1 = arith.constant 0 : i32
    return %arg0, %c0_i32, %c0_i32_0 : i32, i32, i32
  }
}

module attributes {stable_mosaic.version = 11 : i64} {
  func.func @_stage6_kernel(%arg0: i32, %arg1: i32, %arg2: memref<1xf32, #tpu.memory_space<smem>>, %arg3: memref<1x16x32xbf16, #tpu.memory_space<vmem>>, %arg4: memref<1x32xf32, #tpu.memory_space<vmem>>, %arg5: memref<1x32xf32, #tpu.memory_space<vmem>>, %arg6: memref<32x8xbf16, #tpu.memory_space<vmem>>, %arg7: memref<1x16x8xbf16, #tpu.memory_space<vmem>>, %arg8: memref<1x1x8xf32, #tpu.memory_space<vmem>>, %arg9: memref<1x1x8xf32, #tpu.memory_space<vmem>>) attributes {dimension_semantics = [#tpu.dimension_semantics<parallel>, #tpu.dimension_semantics<arbitrary>], iteration_bounds = array<i64: 2, 1>, scalar_prefetch = 0 : i64, scratch_operands = 0 : i64, tpu.core_type = #tpu.core_type<tc>, window_params = [{transform_indices = @transform_0, window_bounds = array<i64: 1>}, {transform_indices = @transform_1, window_bounds = array<i64: 1, 16, 32>}, {pipeline_mode = #tpu.pipeline_mode<synchronous>, transform_indices = @transform_2, window_bounds = array<i64: 1, 32>}, {pipeline_mode = #tpu.pipeline_mode<synchronous>, transform_indices = @transform_3, window_bounds = array<i64: 1, 32>}, {pipeline_mode = #tpu.pipeline_mode<synchronous>, transform_indices = @transform_4, window_bounds = array<i64: 32, 8>}, {transform_indices = @transform_5, window_bounds = array<i64: 1, 16, 8>}, {transform_indices = @transform_6, window_bounds = array<i64: 1, 1, 8>}, {transform_indices = @transform_7, window_bounds = array<i64: 1, 1, 8>}]} {
    %c0 = arith.constant 0 : index
    %c0_0 = arith.constant 0 : index
    %c0_1 = arith.constant 0 : index
    %0 = vector.load %arg3[%c0, %c0_0, %c0_1] : memref<1x16x32xbf16, #tpu.memory_space<vmem>>, vector<1x16x32xbf16>
    %1 = vector.shape_cast %0 : vector<1x16x32xbf16> to vector<16x32xbf16>
    %2 = arith.extf %1 : vector<16x32xbf16> to vector<16x32xf32>
    %c0_2 = arith.constant 0 : index
    %c0_3 = arith.constant 0 : index
    %3 = vector.load %arg4[%c0_2, %c0_3] : memref<1x32xf32, #tpu.memory_space<vmem>>, vector<1x32xf32>
    %4 = vector.broadcast %3 : vector<1x32xf32> to vector<16x32xf32>
    %5 = arith.mulf %2, %4 : vector<16x32xf32>
    %c0_4 = arith.constant 0 : index
    %c0_5 = arith.constant 0 : index
    %6 = vector.load %arg5[%c0_4, %c0_5] : memref<1x32xf32, #tpu.memory_space<vmem>>, vector<1x32xf32>
    %7 = vector.broadcast %6 : vector<1x32xf32> to vector<16x32xf32>
    %8 = arith.addf %5, %7 : vector<16x32xf32>
    %c0_6 = arith.constant 0 : index
    %9 = memref.load %arg2[%c0_6] : memref<1xf32, #tpu.memory_space<smem>>
    %cst = arith.constant 0.000000e+00 : f32
    %10 = vector.broadcast %cst : f32 to vector<16x32xf32>
    %11 = arith.cmpf oge, %8, %10 : vector<16x32xf32>
    %12 = vector.broadcast %9 : f32 to vector<16x32xf32>
    %13 = arith.mulf %12, %8 : vector<16x32xf32>
    %14 = arith.select %11, %8, %13 : vector<16x32xi1>, vector<16x32xf32>
    %15 = arith.truncf %14 : vector<16x32xf32> to vector<16x32xbf16>
    %c0_7 = arith.constant 0 : index
    %c0_8 = arith.constant 0 : index
    %16 = vector.load %arg6[%c0_7, %c0_8] : memref<32x8xbf16, #tpu.memory_space<vmem>>, vector<32x8xbf16>
    %cst_9 = arith.constant dense<0.000000e+00> : vector<16x8xf32>
    %17 = tpu.matmul %15, %16, %cst_9 {dimension_numbers = #tpu.dot_dimension_numbers<[1], [0], [0], [1], [0, 0, 1, 1], [], []>} : vector<16x32xbf16>, vector<32x8xbf16>, vector<16x8xf32> -> vector<16x8xf32>
    %18 = arith.truncf %17 : vector<16x8xf32> to vector<16x8xbf16>
    %c0_10 = arith.constant 0 : index
    %c0_11 = arith.constant 0 : index
    %c0_12 = arith.constant 0 : index
    %19 = vector.load %arg7[%c0_10, %c0_11, %c0_12] : memref<1x16x8xbf16, #tpu.memory_space<vmem>>, vector<1x16x8xbf16>
    %20 = vector.shape_cast %19 : vector<1x16x8xbf16> to vector<16x8xbf16>
    %21 = vector.shape_cast %18 : vector<16x8xbf16> to vector<1x16x8xbf16>
    tpu.vector_store %arg7[%c0_10, %c0_11, %c0_12], %21 {strides = array<i32>} : memref<1x16x8xbf16, #tpu.memory_space<vmem>>, vector<1x16x8xbf16>,
    %c0_i32 = arith.constant 0 : i32
    %22 = arith.cmpi eq, %arg1, %c0_i32 : i32
    %23 = arith.extui %22 : i1 to i32
    %c0_i32_13 = arith.constant 0 : i32
    %24 = arith.cmpi ne, %23, %c0_i32_13 : i32
    scf.if %24 {
      %cst_28 = arith.constant 0.000000e+00 : f32
      %42 = vector.broadcast %cst_28 : f32 to vector<1x1x8xf32>
      %c0_29 = arith.constant 0 : index
      %c0_30 = arith.constant 0 : index
      %c0_31 = arith.constant 0 : index
      %43 = vector.load %arg8[%c0_29, %c0_30, %c0_31] : memref<1x1x8xf32, #tpu.memory_space<vmem>>, vector<1x1x8xf32>
      tpu.vector_store %arg8[%c0_29, %c0_30, %c0_31], %42 {strides = array<i32>} : memref<1x1x8xf32, #tpu.memory_space<vmem>>, vector<1x1x8xf32>,
      %cst_32 = arith.constant 0.000000e+00 : f32
      %44 = vector.broadcast %cst_32 : f32 to vector<1x1x8xf32>
      %c0_33 = arith.constant 0 : index
      %c0_34 = arith.constant 0 : index
      %c0_35 = arith.constant 0 : index
      %45 = vector.load %arg9[%c0_33, %c0_34, %c0_35] : memref<1x1x8xf32, #tpu.memory_space<vmem>>, vector<1x1x8xf32>
      tpu.vector_store %arg9[%c0_33, %c0_34, %c0_35], %44 {strides = array<i32>} : memref<1x1x8xf32, #tpu.memory_space<vmem>>, vector<1x1x8xf32>,
    } else {
    }
    %c0_14 = arith.constant 0 : index
    %c0_15 = arith.constant 0 : index
    %c0_16 = arith.constant 0 : index
    %25 = vector.load %arg8[%c0_14, %c0_15, %c0_16] : memref<1x1x8xf32, #tpu.memory_space<vmem>>, vector<1x1x8xf32>
    %26 = vector.shape_cast %25 : vector<1x1x8xf32> to vector<1x8xf32>
    %cst_17 = arith.constant dense<0.000000e+00> : vector<8xf32>
    %27 = vector.multi_reduction <add>, %17, %cst_17 [0] : vector<16x8xf32> to vector<8xf32>
    %28 = vector.shape_cast %27 : vector<8xf32> to vector<1x8xf32>
    %29 = arith.addf %26, %28 : vector<1x8xf32>
    %c0_18 = arith.constant 0 : index
    %c0_19 = arith.constant 0 : index
    %c0_20 = arith.constant 0 : index
    %30 = vector.load %arg8[%c0_18, %c0_19, %c0_20] : memref<1x1x8xf32, #tpu.memory_space<vmem>>, vector<1x1x8xf32>
    %31 = vector.shape_cast %30 : vector<1x1x8xf32> to vector<1x8xf32>
    %32 = vector.shape_cast %29 : vector<1x8xf32> to vector<1x1x8xf32>
    tpu.vector_store %arg8[%c0_18, %c0_19, %c0_20], %32 {strides = array<i32>} : memref<1x1x8xf32, #tpu.memory_space<vmem>>, vector<1x1x8xf32>,
    %c0_21 = arith.constant 0 : index
    %c0_22 = arith.constant 0 : index
    %c0_23 = arith.constant 0 : index
    %33 = vector.load %arg9[%c0_21, %c0_22, %c0_23] : memref<1x1x8xf32, #tpu.memory_space<vmem>>, vector<1x1x8xf32>
    %34 = vector.shape_cast %33 : vector<1x1x8xf32> to vector<1x8xf32>
    %35 = arith.mulf %17, %17 : vector<16x8xf32>
    %cst_24 = arith.constant dense<0.000000e+00> : vector<8xf32>
    %36 = vector.multi_reduction <add>, %35, %cst_24 [0] : vector<16x8xf32> to vector<8xf32>
    %37 = vector.shape_cast %36 : vector<8xf32> to vector<1x8xf32>
    %38 = arith.addf %34, %37 : vector<1x8xf32>
    %c0_25 = arith.constant 0 : index
    %c0_26 = arith.constant 0 : index
    %c0_27 = arith.constant 0 : index
    %39 = vector.load %arg9[%c0_25, %c0_26, %c0_27] : memref<1x1x8xf32, #tpu.memory_space<vmem>>, vector<1x1x8xf32>
    %40 = vector.shape_cast %39 : vector<1x1x8xf32> to vector<1x8xf32>
    %41 = vector.shape_cast %38 : vector<1x8xf32> to vector<1x1x8xf32>
    tpu.vector_store %arg9[%c0_25, %c0_26, %c0_27], %41 {strides = array<i32>} : memref<1x1x8xf32, #tpu.memory_space<vmem>>, vector<1x1x8xf32>,
    return
  }
  func.func @transform_0(%arg0: i32, %arg1: i32) -> i32 {
    %c0_i32 = arith.constant 0 : i32
    %c0_i32_0 = arith.constant 0 : i32
    return %c0_i32 : i32
  }
  func.func @transform_1(%arg0: i32, %arg1: i32) -> (i32, i32, i32) {
    %c0_i32 = arith.constant 0 : i32
    %c0_i32_0 = arith.constant 0 : i32
    return %arg0, %arg1, %c0_i32 : i32, i32, i32
  }
  func.func @transform_2(%arg0: i32, %arg1: i32) -> (i32, i32) {
    %c0_i32 = arith.constant 0 : i32
    %c0_i32_0 = arith.constant 0 : i32
    %c0_i32_1 = arith.constant 0 : i32
    return %c0_i32, %c0_i32_0 : i32, i32
  }
  func.func @transform_3(%arg0: i32, %arg1: i32) -> (i32, i32) {
    %c0_i32 = arith.constant 0 : i32
    %c0_i32_0 = arith.constant 0 : i32
    %c0_i32_1 = arith.constant 0 : i32
    return %c0_i32, %c0_i32_0 : i32, i32
  }
  func.func @transform_4(%arg0: i32, %arg1: i32) -> (i32, i32) {
    %c0_i32 = arith.constant 0 : i32
    %c0_i32_0 = arith.constant 0 : i32
    %c0_i32_1 = arith.constant 0 : i32
    return %c0_i32, %c0_i32_0 : i32, i32
  }
  func.func @transform_5(%arg0: i32, %arg1: i32) -> (i32, i32, i32) {
    %c0_i32 = arith.constant 0 : i32
    %c0_i32_0 = arith.constant 0 : i32
    return %arg0, %arg1, %c0_i32 : i32, i32, i32
  }
  func.func @transform_6(%arg0: i32, %arg1: i32) -> (i32, i32, i32) {
    %c0_i32 = arith.constant 0 : i32
    %c0_i32_0 = arith.constant 0 : i32
    %c0_i32_1 = arith.constant 0 : i32
    return %arg0, %c0_i32, %c0_i32_0 : i32, i32, i32
  }
  func.func @transform_7(%arg0: i32, %arg1: i32) -> (i32, i32, i32) {
    %c0_i32 = arith.constant 0 : i32
    %c0_i32_0 = arith.constant 0 : i32
    %c0_i32_1 = arith.constant 0 : i32
    return %arg0, %c0_i32, %c0_i32_0 : i32, i32, i32
  }
}

module attributes {stable_mosaic.version = 11 : i64} {
  func.func @_stage7_kernel(%arg0: i32, %arg1: i32, %arg2: memref<1x16x8xbf16, #tpu.memory_space<vmem>>, %arg3: memref<1x8xf32, #tpu.memory_space<vmem>>, %arg4: memref<1x8xf32, #tpu.memory_space<vmem>>, %arg5: memref<1x16x8xf32, #tpu.memory_space<vmem>>) attributes {dimension_semantics = [#tpu.dimension_semantics<parallel>, #tpu.dimension_semantics<parallel>], iteration_bounds = array<i64: 2, 1>, scalar_prefetch = 0 : i64, scratch_operands = 0 : i64, tpu.core_type = #tpu.core_type<tc>, window_params = [{transform_indices = @transform_0, window_bounds = array<i64: 1, 16, 8>}, {pipeline_mode = #tpu.pipeline_mode<synchronous>, transform_indices = @transform_1, window_bounds = array<i64: 1, 8>}, {pipeline_mode = #tpu.pipeline_mode<synchronous>, transform_indices = @transform_2, window_bounds = array<i64: 1, 8>}, {transform_indices = @transform_3, window_bounds = array<i64: 1, 16, 8>}]} {
    %c0 = arith.constant 0 : index
    %c0_0 = arith.constant 0 : index
    %c0_1 = arith.constant 0 : index
    %0 = vector.load %arg2[%c0, %c0_0, %c0_1] : memref<1x16x8xbf16, #tpu.memory_space<vmem>>, vector<1x16x8xbf16>
    %1 = vector.shape_cast %0 : vector<1x16x8xbf16> to vector<16x8xbf16>
    %2 = arith.extf %1 : vector<16x8xbf16> to vector<16x8xf32>
    %c0_2 = arith.constant 0 : index
    %c0_3 = arith.constant 0 : index
    %3 = vector.load %arg3[%c0_2, %c0_3] : memref<1x8xf32, #tpu.memory_space<vmem>>, vector<1x8xf32>
    %4 = vector.broadcast %3 : vector<1x8xf32> to vector<16x8xf32>
    %5 = arith.mulf %2, %4 : vector<16x8xf32>
    %c0_4 = arith.constant 0 : index
    %c0_5 = arith.constant 0 : index
    %6 = vector.load %arg4[%c0_4, %c0_5] : memref<1x8xf32, #tpu.memory_space<vmem>>, vector<1x8xf32>
    %7 = vector.broadcast %6 : vector<1x8xf32> to vector<16x8xf32>
    %8 = arith.addf %5, %7 : vector<16x8xf32>
    %c0_6 = arith.constant 0 : index
    %c0_7 = arith.constant 0 : index
    %c0_8 = arith.constant 0 : index
    %9 = vector.load %arg5[%c0_6, %c0_7, %c0_8] : memref<1x16x8xf32, #tpu.memory_space<vmem>>, vector<1x16x8xf32>
    %10 = vector.shape_cast %9 : vector<1x16x8xf32> to vector<16x8xf32>
    %11 = vector.shape_cast %8 : vector<16x8xf32> to vector<1x16x8xf32>
    tpu.vector_store %arg5[%c0_6, %c0_7, %c0_8], %11 {strides = array<i32>} : memref<1x16x8xf32, #tpu.memory_space<vmem>>, vector<1x16x8xf32>,
    return
  }
  func.func @transform_0(%arg0: i32, %arg1: i32) -> (i32, i32, i32) {
    %c0_i32 = arith.constant 0 : i32
    %c0_i32_0 = arith.constant 0 : i32
    return %arg0, %arg1, %c0_i32 : i32, i32, i32
  }
  func.func @transform_1(%arg0: i32, %arg1: i32) -> (i32, i32) {
    %c0_i32 = arith.constant 0 : i32
    %c0_i32_0 = arith.constant 0 : i32
    %c0_i32_1 = arith.constant 0 : i32
    return %c0_i32, %c0_i32_0 : i32, i32
  }
  func.func @transform_2(%arg0: i32, %arg1: i32) -> (i32, i32) {
    %c0_i32 = arith.constant 0 : i32
    %c0_i32_0 = arith.constant 0 : i32
    %c0_i32_1 = arith.constant 0 : i32
    return %c0_i32, %c0_i32_0 : i32, i32
  }
  func.func @transform_3(%arg0: i32, %arg1: i32) -> (i32, i32, i32) {
    %c0_i32 = arith.constant 0 : i32
    %c0_i32_0 = arith.constant 0 : i32
    return %arg0, %arg1, %c0_i32 : i32, i32, i32
  }
}

</mosaic_0001>

<bundles_post_ra>
// kernel: encoder_layer_leaf.8
= control target key start
LH: loop header
LB: loop body
LE: loop exit
PB: predicated region body
PF: predicated region fallthrough
CT: control target
= control target key end

     0   :  { %s925_s21 = smov 0   ;;  %s927_s22 = smov 0   ;;  %s1045_s0 = inlined_call_operand.vmem [shape: bf16[2,16,128], index: 0, kind: input, shape index: {}]   ;;  %s1046_s1 = inlined_call_operand.vmem [shape: f32[1,128], index: 1, kind: input, shape index: {}]   ;;  %s1047_s2 = inlined_call_operand.vmem [shape: f32[1,128], index: 2, kind: input, shape index: {}]   ;;  %s1048_s3 = inlined_call_operand.vmem [shape: bf16[128,256], index: 3, kind: input, shape index: {}]   ;;  %s1049_s4 = inlined_call_operand.vmem [shape: bf16[2,16,256], index: 4, kind: output, shape index: {0}]   ;;  %s1050_s5 = inlined_call_operand.vmem [shape: f32[2,1,256], index: 5, kind: output, shape index: {1}]   ;;  %s1051_s6 = inlined_call_operand.vmem [shape: f32[2,1,256], index: 6, kind: output, shape index: {2}]  }
   0x1   :  { %s929_s23 = smov 0  }
   0x2 LB: > { %s29_s24 = sadd.s32 1, %s881_s22  ;;  %p775_p0 = scmp.ge.s32.totalorder %s885_s23, 1  ;;  %s885_s23 = sphi %s929_s23, %s17_s23   ;;  %s881_s22 = sphi %s927_s22, %s1055_s22   ;;  %s877_s21 = sphi %s925_s21, %s1054_s21  }
   0x3   : > { %p31_p1 = scmp.ge.s32.totalorder %s29_s24, 2  ;;  %p238_p2 = scmp.lt.s32.totalorder %s885_s23, 3 }
   0x5   : > { %s1057_s24 = smov (%p31_p1, %s29_s24), 0  ;;  %p239_p3 = pnand %p775_p0, %p238_p2 }
   0x6   : > { %p286_p4 = scmp.lt.s32.totalorder (!%p239_p3), %s877_s21, 1 }
   0x7   : > { %242 = sbr.rel (%p239_p3) target bundleno = 270 (0x10e), region = 36 }
   0xc   : > { %v839_v0 = vld [vmem:[%s1048_s3 + $0x74] ss:$8 sps:$4 sm:$0xff]   ;;  %v841_v1 = vld [vmem:[%s1048_s3 + $0x70] ss:$8 sps:$4 sm:$0xff]   ;;  %v887_v2 = vmov 0   ;;  %s1059_s21 = smov (!%p286_p4, %s877_s21), 1  ;;  %v497_v37 = vlaneseq }
   0xd   : > { %468 = vmatprep.mubr.bf16.mxu0 %v887_v2  ;;  %544 = vmatprep.mubr.bf16.mxu1 %v887_v2  ;;  %v842_v3 = vld [vmem:[%s1048_s3 + $0x64] ss:$8 sps:$4 sm:$0xff]   ;;  %v844_v4 = vld [vmem:[%s1048_s3 + $0x60] ss:$8 sps:$4 sm:$0xff]   ;;  %v845_v5 = vld [vmem:[%s1048_s3 + $0x54] ss:$8 sps:$4 sm:$0xff]  }
   0xe   : > { %436 = vmatprep.subr.bf16.mxu0 %v839_v0  ;;  %512 = vmatprep.subr.bf16.mxu1 %v839_v0  ;;  %s804_s11 = sshll.u32 %s1059_s21, 3  ;;  %v847_v6 = vld [vmem:[%s1048_s3 + $0x50] ss:$8 sps:$4 sm:$0xff]   ;;  %v848_v7 = vld [vmem:[%s1048_s3 + $0x44] ss:$8 sps:$4 sm:$0xff]   ;;  %s780_s25 = sshll.u32 %s1059_s21, 1 }
   0xf   : > { %437 = vmatpush1.bf16.msra.mxu0 %v841_v1  ;;  %513 = vmatpush1.bf16.msra.mxu1 %v841_v1  ;;  %s293_s16 = scalar_lea.vmem %s1045_s0, %s804_s11  ;;  %v850_v9 = vld [vmem:[%s1048_s3 + $0x40] ss:$8 sps:$4 sm:$0xff]   ;;  %v851_v13 = vld [vmem:[%s1048_s3 + $0x34] ss:$8 sps:$4 sm:$0xff]   ;;  %v853_v17 = vld [vmem:[%s1048_s3 + $0x30] ss:$8 sps:$4 sm:$0xff]   ;;  %s1007_s28 = scalar_lea.vmem %s1050_s5, %s780_s25 }
  0x10   : > { %438 = vmatprep.subr.bf16.mxu0 %v842_v3  ;;  %514 = vmatprep.subr.bf16.mxu1 %v842_v3  ;;  %v809_v8 = vld [vmem:[%s293_s16] sm:$0xff]   ;;  %v857_v25 = vld [vmem:[%s1048_s3 + $0x14] ss:$8 sps:$4 sm:$0xff]   ;;  %v859_v27 = vld [vmem:[%s1048_s3 + $0x10] ss:$8 sps:$4 sm:$0xff]   ;;  %vm1009_vm0 = vcmp.lt.s32.totalorder %v497_v37, 256  ;;  %s1019_s7 = scalar_lea.vmem %s1051_s6, %s780_s25 }
  0x11   : > { %v810_v10 = vunpack.c.l.bf16 %v809_v8  ;;  %v811_v11 = vunpack.c.h.bf16 %v809_v8  ;;  %v782_v12 = vld [vmem:[%s1046_s1] ss:$0 sm:$0xff]  ;;  %v854_v20 = vld [vmem:[%s1048_s3 + $0x24] ss:$8 sps:$4 sm:$0xff]   ;;  %v888_v39 = vmov 0.0   ;;  %v560_v43 = vshrl.u32 %v497_v37, 7 }
  0x12   : > { %v783_v14 = vld [vmem:[%s1047_s2] ss:$0 sm:$0xff]  ;;  %v860_v29 = vld [vmem:[%s1048_s3 + $0x4] ss:$8 sps:$4 sm:$0xff]   ;;  %501 = vst.msk [vmem:[%s1007_s28] sm:$0x3] %vm1009_vm0, %v888_v39 }
  0x13   : > { %439 = vmatpush1.bf16.msra.mxu0 %v844_v4  ;;  %515 = vmatpush1.bf16.msra.mxu1 %v844_v4  ;;  %v326_v15 = vmul.f32 %v810_v10, %v782_v12  ;;  %v327_v16 = vmul.f32 %v811_v11, %v782_v12  ;;  %v856_v23 = vld [vmem:[%s1048_s3 + $0x20] ss:$8 sps:$4 sm:$0xff]   ;;  %502 = vst.msk [vmem:[%s1019_s7] sm:$0x3] %vm1009_vm0, %v888_v39  ;;  %v889_v40 = vmov 1966171168  }
  0x14   : > { %440 = vmatprep.subr.bf16.mxu0 %v845_v5  ;;  %516 = vmatprep.subr.bf16.mxu1 %v845_v5  ;;  %v862_v31 = vld [vmem:[%s1048_s3] ss:$8 sps:$4 sm:$0xff]   ;;  %v557_v41 = vunpack.c.l.s4 %v889_v40  ;;  %s805_s8 = sshll.u32 %s1059_s21, 4 }
  0x15   : > { %v335_v18 = vadd.f32 %v783_v14, %v326_v15  ;;  %v336_v19 = vadd.f32 %v783_v14, %v327_v16  ;;  %s304_s11 = scalar_lea.vmem %s1049_s4, %s805_s8 }
  0x16   : > { %v558_v42 = vunpack.c.0.s8 %v557_v41 }
  0x17   : > { %441 = vmatpush1.bf16.msra.mxu0 %v847_v6  ;;  %517 = vmatpush1.bf16.msra.mxu1 %v847_v6  ;;  %v337_v21 = vmax.f32 %v335_v18, 0.0  ;;  %v338_v22 = vmax.f32 %v336_v19, 0.0 }
  0x18   : > { %442 = vmatprep.subr.bf16.mxu0 %v848_v7  ;;  %518 = vmatprep.subr.bf16.mxu1 %v848_v7  ;;  %v561_v47 = vsub.s32 %v558_v42, %v560_v43 }
  0x19   : > { %v503_v24 = vadd.f32 %v338_v22, %v337_v21  ;;  %v355_v34 = vpack.c.bf16 %v338_v22, %v337_v21  ;;  %v510_v61 = vld [vmem:[%s1007_s28] sm:$0x3] }
  0x1a   : > { %v577_v16 = vld [vmem:[%s1019_s7] sm:$0x3] }
  0x1b   : > { %443 = vmatpush1.bf16.msra.mxu0 %v850_v9  ;;  %519 = vmatpush1.bf16.msra.mxu1 %v850_v9  ;;  %v504_v26 = vrot.slane %v503_v24, 4 }
  0x1c   : > { %444 = vmatprep.subr.bf16.mxu0 %v851_v13  ;;  %520 = vmatprep.subr.bf16.mxu1 %v851_v13 }
  0x1d   : > { %v505_v28 = vadd.f32 %v504_v26, %v503_v24 }
  0x1f   : > { %445 = vmatpush1.bf16.msra.mxu0 %v853_v17  ;;  %521 = vmatpush1.bf16.msra.mxu1 %v853_v17  ;;  %v506_v30 = vrot.slane %v505_v28, 2 }
  0x20   : > { %446 = vmatprep.subr.bf16.mxu0 %v854_v20  ;;  %522 = vmatprep.subr.bf16.mxu1 %v854_v20 }
  0x21   : > { %v507_v32 = vadd.f32 %v506_v30, %v505_v28 }
  0x23   : > { %447 = vmatpush1.bf16.msra.mxu0 %v856_v23  ;;  %523 = vmatpush1.bf16.msra.mxu1 %v856_v23  ;;  %v508_v33 = vrot.slane %v507_v32, 1 }
  0x24   : > { %448 = vmatprep.subr.bf16.mxu0 %v857_v25  ;;  %524 = vmatprep.subr.bf16.mxu1 %v857_v25 }
  0x25   : > { %v509_v35 = vadd.f32 %v508_v33, %v507_v32 }
  0x27   : > { %449 = vmatpush1.bf16.msra.mxu0 %v859_v27  ;;  %525 = vmatpush1.bf16.msra.mxu1 %v859_v27  ;;  %v511_v36 = vpack.c.bf16 %v509_v35, %v509_v35 }
  0x28   : > { %450 = vmatprep.subr.bf16.mxu0 %v860_v29  ;;  %526 = vmatprep.subr.bf16.mxu1 %v860_v29 }
  0x2b   : > { %451 = vmatpush1.bf16.msra.mxu0 %v862_v31  ;;  %527 = vmatpush1.bf16.msra.mxu1 %v862_v31 }
  0x2e   : > { %469 = vmatmul.mubr.bf16.vlgmr.msra.gmra.mxu0 %v355_v34  ;;  %545 = vmatmul.mubr.bf16.vlgmr.msra.gmra.mxu1 %v511_v36 }
  0xee   : > { %v470_v44 = vpop.f32.mrf.mxu0  ;;  %v546_v45 = vpop.f32.mrf.mxu1 }
  0xef   : > { %v578_v52 = vmul.f32 %v470_v44, %v470_v44 }
  0xf0   : > { %v472_v46 = vpop.f32.mrf.mxu0  ;;  %v548_v49 = vpop.f32.mrf.mxu1 }
  0xf1   : > { %v806_v48 = vpack.c.bf16 %v472_v46, %v470_v44  ;;  %v555_v51 = vcombine.low %v546_v45, %v548_v49  ;;  %v579_v57 = vmul.f32 %v472_v46, %v472_v46 }
  0xf2   : > { %v474_v50 = vpop.f32.mrf.mxu0  ;;  %v550_v54 = vpop.f32.mrf.mxu1 }
  0xf3   : > { %v580_v53 = vmul.f32 %v474_v50, %v474_v50  ;;  %491 = vst [vmem:[%s304_s11] sm:$0xff] %v806_v48  ;;  %v562_v56 = vrot.slane %v555_v51, %v561_v47 }
  0xf4   : > { %v476_v55 = vpop.f32.mrf.mxu0  ;;  %v551_v62 = vpop.f32.mrf.mxu1 }
  0xf5   : > { %v582_v58 = vadd.f32 %v580_v53, %v578_v52  ;;  %v807_v59 = vpack.c.bf16 %v476_v55, %v474_v50  ;;  %v581_v60 = vmul.f32 %v476_v55, %v476_v55  ;;  %v569_v63 = vrot.slane %v562_v56, %v561_v47 }
  0xf7   : > { %v583_v0 = vrot.slane %v582_v58, 4  ;;  %492 = vst [vmem:[%s304_s11 + $0x8] sm:$0xff] %v807_v59  ;;  %v589_v1 = vadd.f32 %v581_v60, %v579_v57  ;;  %v571_v2 = vadd.f32 %v569_v63, %v510_v61 }
  0xf9   : > { %v584_v3 = vadd.f32 %v583_v0, %v582_v58  ;;  %v590_v4 = vrot.slane %v589_v1, 4  ;;  %576 = vst.msk [vmem:[%s1007_s28] sm:$0x3] %vm1009_vm0, %v571_v2 }
  0xfb   : > { %v585_v5 = vrot.slane %v584_v3, 2  ;;  %v591_v6 = vadd.f32 %v590_v4, %v589_v1 }
  0xfd   : > { %v586_v7 = vadd.f32 %v585_v5, %v584_v3  ;;  %v592_v8 = vrot.slane %v591_v6, 2 }
  0xff   : > { %v587_v9 = vrot.slane %v586_v7, 1  ;;  %v593_v10 = vadd.f32 %v592_v8, %v591_v6 }
 0x101   : > { %v594_v11 = vrot.slane %v593_v10, 1  ;;  %v588_v12 = vadd.f32 %v587_v9, %v586_v7 }
 0x103   : > { %v595_v13 = vadd.f32 %v594_v11, %v593_v10 }
 0x105   : > { %v598_v14 = vcombine.low %v588_v12, %v595_v13 }
 0x107   : > { %v605_v15 = vrot.slane %v598_v14, %v561_v47 }
 0x109   : > { %v612_v17 = vrot.slane %v605_v15, %v561_v47 }
 0x10b   : > { %v614_v18 = vadd.f32 %v612_v17, %v577_v16 }
 0x10d   : > { %615 = vst.msk [vmem:[%s1019_s7] sm:$0x3] %vm1009_vm0, %v614_v18 }
 0x10e PF: > { %s17_s23 = sadd.s32 1, %s885_s23   ;;  %s1054_s21 = smov %s881_s22 }
 0x10f   : > { %p14_p5 = scmp.ge.s32.totalorder %s17_s23, 4   ;;  %s1055_s22 = smov %s1057_s24 }
 0x111   :  { %16 = sbr.rel (!%p14_p5) target bundleno = 2 (0x2), region = 94 }

// kernel: encoder_layer_leaf.7
= control target key start
LH: loop header
LB: loop body
LE: loop exit
PB: predicated region body
PF: predicated region fallthrough
CT: control target
= control target key end

     0   :  { %10 = vsyncpa [#allocation3], 0  ;;  %s656_s15 = smov 0   ;;  %s658_s16 = smov 0   ;;  %s737_s0 = inlined_call_operand.vmem [shape: f32[2,16,3], index: 0, kind: input, shape index: {}]   ;;  %s738_s1 = inlined_call_operand.hbm [shape: f32[3,128], index: 1, kind: input, shape index: {}]   ;;  %s739_s2 = inlined_call_operand.vmem [shape: bf16[2,16,128], index: 2, kind: output, shape index: {0}]   ;;  %s740_s3 = inlined_call_operand.vmem [shape: f32[2,1,128], index: 3, kind: output, shape index: {1}]   ;;  %s741_s4 = inlined_call_operand.vmem [shape: f32[2,1,128], index: 4, kind: output, shape index: {2}]  }
   0x1   :  { %s660_s17 = smov 0  }
   0x2 LB: > { %s505_s18 = sadd.s32 4294967295, %s624_s17   ;;  %s28_s19 = sadd.s32 1, %s620_s16  ;;  %s624_s17 = sphi %s660_s17, %s16_s17   ;;  %s620_s16 = sphi %s658_s16, %s745_s16   ;;  %s616_s15 = sphi %s656_s15, %s744_s15  }
   0x3   : > { %p30_p0 = scmp.ge.s32.totalorder %s28_s19, 2  ;;  %p507_p1 = scmp.ge.s32.totalorder %s624_s17, 1 }
   0x4   : > { %p162_p2 = scmp.lt.s32.totalorder %s624_s17, 3  ;;  %p681_p4 = scmp.eq.s32.totalorder %s505_s18, 0 }
   0x5   : > { %s747_s19 = smov (%p30_p0, %s28_s19), 0  ;;  %s626_s22 = smov [#allocation2]  }
   0x6   : > { %p677_p3 = pnand %p507_p1, %p162_p2  ;;  %s175_s23 = sshll.u32 %s626_s22, 4  ;;  %s176_s23 = int_to_ptr.vmem [resolvable:$true] %s175_s23 }
   0x7   : > { %s583_s24 = scalar_lea.vmem %s176_s23, 64  ;;  %p591_p11 = scmp.lt.s32.totalorder %s176_s23, %s176_s23 }
   0x8   : > { %p533_p5 = pneg %p677_p3  ;;  %p584_p8 = scmp.ne.s32.totalorder %s176_s23, %s583_s24 }
   0x9   : > { %p592_p12 = scmp.lt.s32.totalorder %s583_s24, %s583_s24 }
   0xa   : > { %p534_p6 = pnand %p681_p4, %p533_p5 }
   0xb   : > { %p593_p13 = por %p592_p12, %p591_p11 }
   0xc   : > { %p574_p7 = pneg %p534_p6 }
   0xe   : > { %p586_p9 = pnand %p584_p8, %p574_p7 }
  0x10   : > { %p587_p10 = pneg %p586_p9 }
  0x12   : > { %p594_p0 = pnand %p593_p13, %p587_p10 }
  0x14   : > { %597 = shalt.err (!%p594_p0)
}
  0x15   : > { %536 = dma.hbm_to_vmem [thread:$0]  (!%p534_p6), %s738_s1, 64, %s176_s23, [#allocation3]  }
  0x16   : > { %201 = sbr.rel (%p677_p3) target bundleno = 190 (0xbe), region = 28 }
  0x1b   : > { %611 = dma.done.wait (%p681_p4), [#allocation3], 64  }
  0x1c   : > { %613 = vsyncadd (%p681_p4), [#allocation3], 4294967232  ;;  %p242_p1 = scmp.lt.s32.totalorder %s616_s15, 1  ;;  %v627_v0 = vmov 1   ;;  %v628_v1 = vmov 0   ;;  %v629_v2 = vmov 0.0   ;;  %v280_v6 = vlaneseq }
  0x1d   : > { %569 = vset.pattern.permute.xlu1 %v627_v0  ;;  %568 = vset.pattern.permute.xlu0 %v628_v1  ;;  %v630_v5 = vmov 2   ;;  %v269_v10 = vld [vmem:[#allocation2] sm:$0x7] }
  0x1e   : > { %s749_s15 = smov (!%p242_p1, %s616_s15), 1  ;;  %v281_v7 = vshrl.u32 %v280_v6, 7 }
  0x1f   : > { %s520_s27 = sshll.u32 %s749_s15, 4  ;;  %s707_s30 = scalar_lea.vmem %s741_s4, %s749_s15 }
  0x20   : > { %s249_s7 = scalar_lea.vmem %s737_s0, %s520_s27  ;;  %333 = vst [vmem:[%s707_s30] sm:$0x1] %v629_v2  ;;  %s717_s10 = scalar_lea.vmem %s740_s3, %s749_s15  ;;  %v296_v8 = vsub.s32 1, %v281_v7  ;;  %v282_v9 = vsub.s32 0, %v281_v7  ;;  %v312_v13 = vsub.s32 2, %v281_v7 }
  0x21   : > { %v267_v3 = vld [vmem:[%s249_s7] sm:$0xff]  ;;  %v268_v4 = vld [vmem:[%s249_s7 + $0x8] sm:$0xff]  ;;  %332 = vst [vmem:[%s717_s10] sm:$0x1] %v629_v2  ;;  %s521_s11 = sshll.u32 %s749_s15, 3 }
  0x22   : > { %287 = vperm.xlu1 %569, %v267_v3   ;;  %272 = vperm.xlu0 %568, %v267_v3   ;;  %v297_v14 = vrot.slane %v269_v10, %v296_v8  ;;  %v283_v15 = vrot.slane %v269_v10, %v282_v9  ;;  %v313_v18 = vrot.slane %v269_v10, %v312_v13  ;;  %s259_s14 = scalar_lea.vmem %s739_s2, %s521_s11 }
  0x26   : > { %291 = vperm.xlu1 %569, %v268_v4   ;;  %277 = vperm.xlu0 %568, %v268_v4  }
  0x27   : > { %v344_v48 = vld [vmem:[%s707_s30] sm:$0x1] }
  0x28   : > { %v334_v45 = vld [vmem:[%s717_s10] sm:$0x1] }
  0x2a   : > { %571 = vset.pattern.permute.xlu1 %v630_v5  ;;  %570 = vset.pattern.permute.xlu0 %v630_v5 }
  0x2b   : > { %307 = vperm.xlu1 %571, %v268_v4   ;;  %303 = vperm.xlu0 %570, %v267_v3  }
  0x9d   : > { %v288_v11 = vpop.permute.xlu1 %287  ;;  %v273_v12 = vpop.permute.xlu0 %272 }
  0x9e   : > { %v298_v19 = vmul.f32 %v297_v14, %v288_v11  ;;  %v284_v20 = vmul.f32 %v283_v15, %v273_v12 }
  0xa0   : > { %v300_v25 = vadd.f32 %v298_v19, %v284_v20 }
  0xa1   : > { %v292_v16 = vpop.permute.xlu1 %291  ;;  %v278_v17 = vpop.permute.xlu0 %277 }
  0xa2   : > { %v299_v21 = vmul.f32 %v297_v14, %v292_v16  ;;  %v285_v22 = vmul.f32 %v283_v15, %v278_v17 }
  0xa4   : > { %v301_v26 = vadd.f32 %v299_v21, %v285_v22 }
  0xa6   : > { %v308_v23 = vpop.permute.xlu1 %307  ;;  %v304_v24 = vpop.permute.xlu0 %303 }
  0xa7   : > { %v315_v27 = vmul.f32 %v313_v18, %v308_v23  ;;  %v314_v28 = vmul.f32 %v313_v18, %v304_v24 }
  0xa9   : > { %v317_v29 = vadd.f32 %v315_v27, %v301_v26  ;;  %v316_v30 = vadd.f32 %v314_v28, %v300_v25 }
  0xab   : > { %v346_v31 = vmul.f32 %v317_v29, %v317_v29  ;;  %v527_v32 = vpack.c.bf16 %v317_v29, %v316_v30  ;;  %v335_v33 = vadd.f32 %v317_v29, %v316_v30  ;;  %v345_v34 = vmul.f32 %v316_v30, %v316_v30 }
  0xad   : > { %528 = vst [vmem:[%s259_s14] sm:$0xff] %v527_v32   ;;  %v336_v35 = vrot.slane %v335_v33, 4  ;;  %v347_v36 = vadd.f32 %v346_v31, %v345_v34 }
  0xaf   : > { %v337_v37 = vadd.f32 %v336_v35, %v335_v33  ;;  %v348_v38 = vrot.slane %v347_v36, 4 }
  0xb1   : > { %v338_v39 = vrot.slane %v337_v37, 2  ;;  %v349_v40 = vadd.f32 %v348_v38, %v347_v36 }
  0xb3   : > { %v339_v41 = vadd.f32 %v338_v39, %v337_v37  ;;  %v350_v42 = vrot.slane %v349_v40, 2 }
  0xb5   : > { %v340_v43 = vrot.slane %v339_v41, 1  ;;  %v351_v44 = vadd.f32 %v350_v42, %v349_v40 }
  0xb7   : > { %v341_v46 = vadd.f32 %v340_v43, %v339_v41  ;;  %v352_v47 = vrot.slane %v351_v44, 1 }
  0xb9   : > { %v342_v49 = vadd.f32 %v341_v46, %v334_v45  ;;  %v353_v50 = vadd.f32 %v352_v47, %v351_v44 }
  0xbb   : > { %343 = vst [vmem:[%s717_s10] sm:$0x1] %v342_v49  ;;  %v354_v51 = vadd.f32 %v353_v50, %v344_v48 }
  0xbd   : > { %355 = vst [vmem:[%s707_s30] sm:$0x1] %v354_v51 }
  0xbe PF: > { %s16_s17 = sadd.s32 1, %s624_s17   ;;  %s744_s15 = smov %s620_s16 }
  0xbf   : > { %p13_p2 = scmp.ge.s32.totalorder %s16_s17, 4   ;;  %s745_s16 = smov %s747_s19 }
  0xc1   :  { %15 = sbr.rel (!%p13_p2) target bundleno = 2 (0x2), region = 91 }
  0xc6   :  { %410 = vsyncpa [#allocation3], 1 }
  0xc7   :  { %412 = vsyncpa [#allocation3 + $0x1], 1 }

// kernel: encoder_layer_leaf.9
= control target key start
LH: loop header
LB: loop body
LE: loop exit
PB: predicated region body
PF: predicated region fallthrough
CT: control target
= control target key end

     0   :  { %s2458_s24 = smov 0   ;;  %s2460_s25 = smov 0   ;;  %s3543_s0 = inlined_call_operand.vmem [shape: bf16[2,16,256], index: 0, kind: input, shape index: {}]   ;;  %s3544_s1 = inlined_call_operand.vmem [shape: f32[1,256], index: 1, kind: input, shape index: {}]   ;;  %s3545_s2 = inlined_call_operand.vmem [shape: f32[1,256], index: 2, kind: input, shape index: {}]   ;;  %s3546_s3 = inlined_call_operand.vmem [shape: bf16[256,1024], index: 3, kind: input, shape index: {}]   ;;  %s3547_s4 = inlined_call_operand.vmem [shape: f32[2,1,1024], index: 4, kind: output, shape index: {0}]   ;;  %s3548_s5 = inlined_call_operand.vmem [shape: f32[2,1,1024], index: 5, kind: output, shape index: {1}]   ;;  %s3549_s6 = inlined_call_operand.vmem [shape: f32[2,1,1024], index: 6, kind: output, shape index: {2}]   ;;  %s3550_s7 = inlined_call_operand.vmem [shape: f32[2,1,1024], index: 7, kind: output, shape index: {3}]  }
   0x1   :  { %s2462_s26 = smov 0  }
   0x2 LB: > { %s30_s27 = sadd.s32 1, %s2411_s25  ;;  %p2229_p0 = scmp.ge.s32.totalorder %s2415_s26, 1  ;;  %s2415_s26 = sphi %s2462_s26, %s18_s26   ;;  %s2411_s25 = sphi %s2460_s25, %s3784_s25   ;;  %s2407_s24 = sphi %s2458_s24, %s3783_s24  }
   0x3   : > { %p32_p1 = scmp.ge.s32.totalorder %s30_s27, 2  ;;  %p264_p2 = scmp.lt.s32.totalorder %s2415_s26, 3 }
   0x5   : > { %s3786_s27 = smov (%p32_p1, %s30_s27), 0  ;;  %p265_p3 = pnand %p2229_p0, %p264_p2 }
   0x7   : > { %268 = sbr.rel (%p265_p3) target bundleno = 478 (0x1de), region = 36 }
   0xc   : > { %v437_v0 = vld [vmem:[%s3546_s3 + $0x1c0] sm:$0xff]  ;;  %v438_v2 = vld [vmem:[%s3546_s3 + $0x1c8] sm:$0xff]  ;;  %p313_p4 = scmp.lt.s32.totalorder %s2407_s24, 1  ;;  %v347_v34 = vlaneseq }
   0xd   : > { %v441_v1 = vld [vmem:[%s3546_s3 + $0x1e0] sm:$0xff]  ;;  %v442_v4 = vld [vmem:[%s3546_s3 + $0x1e8] sm:$0xff] }
   0xe   : > { %v2487_v3 = vcombine.high %v437_v0, %v441_v1  ;;  %v2492_v5 = vcombine.low %v437_v0, %v441_v1  ;;  %v429_v6 = vld [vmem:[%s3546_s3 + $0x180] sm:$0xff]  ;;  %v2500_v8 = vcombine.high %v438_v2, %v442_v4  ;;  %v2502_v9 = vcombine.low %v438_v2, %v442_v4  ;;  %v430_v11 = vld [vmem:[%s3546_s3 + $0x188] sm:$0xff]  ;;  %s3788_s24 = smov (!%p313_p4, %s2407_s24), 1 }
   0xf   : > { %v433_v7 = vld [vmem:[%s3546_s3 + $0x1a0] sm:$0xff]  ;;  %v434_v12 = vld [vmem:[%s3546_s3 + $0x1a8] sm:$0xff]  ;;  %s2366_s15 = sshll.u32 %s3788_s24, 4  ;;  %v2605_v43 = vshrl.u32 %v347_v34, 7 }
  0x10   : > { %v2504_v10 = vcombine.high %v429_v6, %v433_v7  ;;  %v421_v13 = vld [vmem:[%s3546_s3 + $0x140] sm:$0xff]  ;;  %1151 = vmatprep.subr.bf16.mxu0 %v2487_v3  ;;  %v2516_v14 = vcombine.high %v430_v11, %v434_v12  ;;  %v422_v16 = vld [vmem:[%s3546_s3 + $0x148] sm:$0xff]  ;;  %1194 = vmatprep.subr.bf16.mxu1 %v2500_v8  ;;  %v2529_v18 = vcombine.low %v429_v6, %v433_v7  ;;  %s321_s22 = scalar_lea.vmem %s3543_s0, %s2366_s15 }
  0x11   : > { %v425_v15 = vld [vmem:[%s3546_s3 + $0x160] sm:$0xff]  ;;  %v426_v17 = vld [vmem:[%s3546_s3 + $0x168] sm:$0xff]  ;;  %1152 = vmatpush1.bf16.msra.mxu0 %v2492_v5  ;;  %1195 = vmatpush1.bf16.msra.mxu1 %v2502_v9  ;;  %v2533_v19 = vcombine.low %v430_v11, %v434_v12  ;;  %3629 = vst [vmem:[#allocation2_spill] sm:$0xff] %v2605_v43  ;;  %v353_v52 = vsub.s32 1, %v2605_v43  ;;  %v349_v54 = vsub.s32 0, %v2605_v43 }
  0x12   : > { %1153 = vmatprep.subr.bf16.mxu0 %v2504_v10  ;;  %v2535_v20 = vcombine.high %v421_v13, %v425_v15  ;;  %1196 = vmatprep.subr.bf16.mxu1 %v2516_v14  ;;  %v2538_v21 = vcombine.high %v422_v16, %v426_v17  ;;  %v413_v22 = vld [vmem:[%s3546_s3 + $0x100] sm:$0xff]  ;;  %v414_v24 = vld [vmem:[%s3546_s3 + $0x108] sm:$0xff]  ;;  %v2554_v26 = vcombine.low %v421_v13, %v425_v15 }
  0x13   : > { %v417_v23 = vld [vmem:[%s3546_s3 + $0x120] sm:$0xff]  ;;  %v418_v25 = vld [vmem:[%s3546_s3 + $0x128] sm:$0xff]  ;;  %v2558_v27 = vcombine.low %v422_v16, %v426_v17 }
  0x14   : > { %v2560_v28 = vcombine.high %v413_v22, %v417_v23  ;;  %v2563_v29 = vcombine.high %v414_v24, %v418_v25  ;;  %v405_v30 = vld [vmem:[%s3546_s3 + $0xc0] sm:$0xff]  ;;  %v406_v32 = vld [vmem:[%s3546_s3 + $0xc8] sm:$0xff]  ;;  %v2581_v35 = vcombine.low %v413_v22, %v417_v23  ;;  %v2585_v36 = vcombine.low %v414_v24, %v418_v25 }
  0x15   : > { %1154 = vmatpush1.bf16.msra.mxu0 %v2529_v18  ;;  %1197 = vmatpush1.bf16.msra.mxu1 %v2533_v19  ;;  %v409_v31 = vld [vmem:[%s3546_s3 + $0xe0] sm:$0xff]  ;;  %v410_v33 = vld [vmem:[%s3546_s3 + $0xe8] sm:$0xff] }
  0x16   : > { %1155 = vmatprep.subr.bf16.mxu0 %v2535_v20  ;;  %1198 = vmatprep.subr.bf16.mxu1 %v2538_v21  ;;  %v2587_v37 = vcombine.high %v405_v30, %v409_v31  ;;  %v2590_v38 = vcombine.high %v406_v32, %v410_v33  ;;  %v397_v39 = vld [vmem:[%s3546_s3 + $0x80] sm:$0xff]  ;;  %v398_v41 = vld [vmem:[%s3546_s3 + $0x88] sm:$0xff]  ;;  %v2608_v44 = vcombine.low %v405_v30, %v409_v31 }
  0x17   : > { %v401_v40 = vld [vmem:[%s3546_s3 + $0xa0] sm:$0xff]  ;;  %v402_v42 = vld [vmem:[%s3546_s3 + $0xa8] sm:$0xff]  ;;  %v2612_v45 = vcombine.low %v406_v32, %v410_v33 }
  0x18   : > { %v2614_v46 = vcombine.high %v397_v39, %v401_v40  ;;  %v2617_v47 = vcombine.high %v398_v41, %v402_v42  ;;  %v389_v48 = vld [vmem:[%s3546_s3 + $0x40] sm:$0xff]  ;;  %v390_v50 = vld [vmem:[%s3546_s3 + $0x48] sm:$0xff]  ;;  %v2636_v53 = vcombine.low %v397_v39, %v401_v40  ;;  %v2641_v55 = vcombine.low %v398_v41, %v402_v42 }
  0x19   : > { %1156 = vmatpush1.bf16.msra.mxu0 %v2554_v26  ;;  %1199 = vmatpush1.bf16.msra.mxu1 %v2558_v27  ;;  %v393_v49 = vld [vmem:[%s3546_s3 + $0x60] sm:$0xff]  ;;  %v394_v51 = vld [vmem:[%s3546_s3 + $0x68] sm:$0xff] }
  0x1a   : > { %1157 = vmatprep.subr.bf16.mxu0 %v2560_v28  ;;  %1200 = vmatprep.subr.bf16.mxu1 %v2563_v29  ;;  %v2643_v56 = vcombine.high %v389_v48, %v393_v49  ;;  %v381_v57 = vld [vmem:[%s3546_s3] sm:$0xff]  ;;  %v340_v59 = vld [vmem:[%s321_s22 + $0x8] sm:$0xff]  ;;  %v2649_v60 = vcombine.high %v390_v50, %v394_v51  ;;  %v2667_v13 = vcombine.low %v389_v48, %v393_v49 }
  0x1b   : > { %v339_v58 = vld [vmem:[%s321_s22] sm:$0xff]  ;;  %v344_v63 = vunpack.c.h.bf16 %v340_v59  ;;  %v382_v2 = vld [vmem:[%s3546_s3 + $0x8] sm:$0xff]  ;;  %v343_v12 = vunpack.c.l.bf16 %v340_v59  ;;  %v2669_v15 = vcombine.low %v390_v50, %v394_v51  ;;  %s3504_s22 = sshll.u32 %s3788_s24, 3 }
  0x1c   : > { %v385_v61 = vld [vmem:[%s3546_s3 + $0x20] sm:$0xff]  ;;  %v342_v62 = vunpack.c.h.bf16 %v339_v58  ;;  %v386_v4 = vld [vmem:[%s3546_s3 + $0x28] sm:$0xff]  ;;  %v341_v11 = vunpack.c.l.bf16 %v339_v58  ;;  %s326_s24 = scalar_lea.vmem %s3547_s4, %s3504_s22  ;;  %s330_s8 = scalar_lea.vmem %s3548_s5, %s3504_s22 }
  0x1d   : > { %1158 = vmatpush1.bf16.msra.mxu0 %v2581_v35  ;;  %1201 = vmatpush1.bf16.msra.mxu1 %v2585_v36  ;;  %v345_v0 = vld [vmem:[%s3544_s1] sm:$0x3]  ;;  %v2673_v22 = vcombine.high %v381_v57, %v385_v61  ;;  %v2676_v25 = vcombine.high %v382_v2, %v386_v4  ;;  %v502_v34 = vld [vmem:[%s3546_s3 + $0x3c8] sm:$0xff]  ;;  %v2691_v42 = vcombine.low %v381_v57, %v385_v61  ;;  %s338_s11 = scalar_lea.vmem %s3550_s7, %s3504_s22  ;;  %s334_s14 = scalar_lea.vmem %s3549_s6, %s3504_s22 }
  0x1e   : > { %1159 = vmatprep.subr.bf16.mxu0 %v2587_v37  ;;  %1202 = vmatprep.subr.bf16.mxu1 %v2590_v38  ;;  %v361_v1 = vld [vmem:[%s3545_s2] sm:$0x3]  ;;  %v354_v6 = vrot.slane %v345_v0, %v353_v52  ;;  %v350_v16 = vrot.slane %v345_v0, %v349_v54  ;;  %v506_v39 = vld [vmem:[%s3546_s3 + $0x3e8] sm:$0xff]  ;;  %v2699_v50 = vcombine.low %v382_v2, %v386_v4 }
  0x1f   : > { %v370_v7 = vrot.slane %v361_v1, %v353_v52  ;;  %v366_v17 = vrot.slane %v361_v1, %v349_v54  ;;  %v501_v30 = vld [vmem:[%s3546_s3 + $0x3c0] sm:$0xff]  ;;  %v2704_v58 = vcombine.high %v502_v34, %v506_v39  ;;  %v498_v0 = vld [vmem:[%s3546_s3 + $0x3a8] sm:$0xff] }
  0x20   : > { %v358_v23 = vmul.f32 %v354_v6, %v342_v62  ;;  %v360_v24 = vmul.f32 %v354_v6, %v344_v63  ;;  %v505_v31 = vld [vmem:[%s3546_s3 + $0x3e0] sm:$0xff]  ;;  %v357_v32 = vmul.f32 %v350_v16, %v341_v11  ;;  %v359_v33 = vmul.f32 %v350_v16, %v343_v12  ;;  %v494_v63 = vld [vmem:[%s3546_s3 + $0x388] sm:$0xff] }
  0x21   : > { %1160 = vmatpush1.bf16.msra.mxu0 %v2608_v44  ;;  %1203 = vmatpush1.bf16.msra.mxu1 %v2612_v45  ;;  %v2701_v51 = vcombine.high %v501_v30, %v505_v31  ;;  %v493_v57 = vld [vmem:[%s3546_s3 + $0x380] sm:$0xff]  ;;  %v2725_v4 = vcombine.low %v501_v30, %v505_v31  ;;  %v2740_v12 = vcombine.high %v494_v63, %v498_v0 }
  0x22   : > { %1161 = vmatprep.subr.bf16.mxu0 %v2614_v46  ;;  %1204 = vmatprep.subr.bf16.mxu1 %v2617_v47  ;;  %v374_v40 = vadd.f32 %v370_v7, %v358_v23  ;;  %v376_v41 = vadd.f32 %v370_v7, %v360_v24  ;;  %v2693_v48 = vadd.f32 %v366_v17, %v357_v32  ;;  %v497_v59 = vld [vmem:[%s3546_s3 + $0x3a0] sm:$0xff]  ;;  %v486_v23 = vld [vmem:[%s3546_s3 + $0x348] sm:$0xff] }
  0x23   : > { %v2695_v49 = vadd.f32 %v366_v17, %v359_v33  ;;  %v2735_v7 = vcombine.low %v502_v34, %v506_v39  ;;  %v2737_v11 = vcombine.high %v493_v57, %v497_v59  ;;  %v485_v16 = vld [vmem:[%s3546_s3 + $0x340] sm:$0xff]  ;;  %v490_v24 = vld [vmem:[%s3546_s3 + $0x368] sm:$0xff]  ;;  %v2757_v30 = vcombine.low %v493_v57, %v497_v59 }
  0x24   : > { %v378_v52 = vmax.f32 %v374_v40, 0.0  ;;  %v380_v54 = vmax.f32 %v376_v41, 0.0  ;;  %v3552_v61 = vmax.f32 %v2693_v48, 0.0  ;;  %v489_v17 = vld [vmem:[%s3546_s3 + $0x360] sm:$0xff]  ;;  %v2761_v31 = vcombine.low %v494_v63, %v498_v0  ;;  %v478_v40 = vld [vmem:[%s3546_s3 + $0x308] sm:$0xff] }
  0x25   : > { %1162 = vmatpush1.bf16.msra.mxu0 %v2636_v53  ;;  %1205 = vmatpush1.bf16.msra.mxu1 %v2641_v55  ;;  %v3551_v62 = vmax.f32 %v2695_v49, 0.0  ;;  %v2763_v32 = vcombine.high %v485_v16, %v489_v17  ;;  %v2766_v33 = vcombine.high %v486_v23, %v490_v24  ;;  %v477_v34 = vld [vmem:[%s3546_s3 + $0x300] sm:$0xff]  ;;  %v482_v41 = vld [vmem:[%s3546_s3 + $0x328] sm:$0xff] }
  0x26   : > { %1163 = vmatprep.subr.bf16.mxu0 %v2643_v56  ;;  %1206 = vmatprep.subr.bf16.mxu1 %v2649_v60  ;;  %v2720_v1 = vpack.c.bf16 %v380_v54, %v378_v52  ;;  %v2722_v2 = vadd.f32 %v380_v54, %v378_v52  ;;  %v481_v39 = vld [vmem:[%s3546_s3 + $0x320] sm:$0xff]  ;;  %v2781_v52 = vcombine.low %v485_v16, %v489_v17  ;;  %v470_v16 = vld [vmem:[%s3546_s3 + $0x2c8] sm:$0xff] }
  0x27   : > { %v2731_v6 = vadd.f32 %v3551_v62, %v3552_v61  ;;  %v2785_v54 = vcombine.low %v486_v23, %v490_v24  ;;  %v2787_v57 = vcombine.high %v477_v34, %v481_v39  ;;  %v2790_v59 = vcombine.high %v478_v40, %v482_v41  ;;  %v469_v63 = vld [vmem:[%s3546_s3 + $0x2c0] sm:$0xff]  ;;  %v474_v17 = vld [vmem:[%s3546_s3 + $0x2e8] sm:$0xff] }
  0x28   : > { %1183 = vmatprep.mubr.bf16.mxu0 %v2720_v1  ;;  %1226 = vmatprep.mubr.bf16.mxu1 %v2720_v1  ;;  %3630 = vst [vmem:[#allocation3_spill] sm:$0xff] %v2781_v52  ;;  %v473_v0 = vld [vmem:[%s3546_s3 + $0x2e0] sm:$0xff]  ;;  %v2805_v23 = vcombine.low %v477_v34, %v481_v39  ;;  %v2809_v24 = vcombine.low %v478_v40, %v482_v41  ;;  %v462_v39 = vld [vmem:[%s3546_s3 + $0x288] sm:$0xff] }
  0x29   : > { %1164 = vmatpush1.bf16.msra.mxu0 %v2667_v13  ;;  %1207 = vmatpush1.bf16.msra.mxu1 %v2669_v15  ;;  %3631 = vst [vmem:[#allocation4_spill] sm:$0xff] %v2785_v54  ;;  %3632 = vst [vmem:[#allocation5_spill] sm:$0xff] %v2787_v57  ;;  %v2811_v62 = vcombine.high %v469_v63, %v473_v0  ;;  %v2814_v61 = vcombine.high %v470_v16, %v474_v17  ;;  %v461_v43 = vld [vmem:[%s3546_s3 + $0x280] sm:$0xff]  ;;  %v466_v40 = vld [vmem:[%s3546_s3 + $0x2a8] sm:$0xff] }
  0x2a   : > { %1165 = vmatprep.subr.bf16.mxu0 %v2673_v22  ;;  %1208 = vmatprep.subr.bf16.mxu1 %v2676_v25  ;;  %3633 = vst [vmem:[#allocation6_spill] sm:$0xff] %v2790_v59  ;;  %3634 = vst [vmem:[#allocation7_spill] sm:$0xff] %v2805_v23  ;;  %v465_v34 = vld [vmem:[%s3546_s3 + $0x2a0] sm:$0xff]  ;;  %v2829_v41 = vcombine.low %v469_v63, %v473_v0  ;;  %v454_v0 = vld [vmem:[%s3546_s3 + $0x248] sm:$0xff] }
  0x2b   : > { %3635 = vst [vmem:[#allocation8_spill] sm:$0xff] %v2809_v24  ;;  %3636 = vst [vmem:[#allocation9_spill] sm:$0xff] %v2811_v62  ;;  %v457_v63 = vld [vmem:[%s3546_s3 + $0x260] sm:$0xff] }
  0x2c   : > { %3637 = vst [vmem:[#allocation10_spill] sm:$0xff] %v2814_v61  ;;  %3638 = vst [vmem:[#allocation11_spill] sm:$0xff] %v2829_v41 }
  0x2d   : > { %1166 = vmatpush1.bf16.msra.mxu0 %v2691_v42  ;;  %1209 = vmatpush1.bf16.msra.mxu1 %v2699_v50 }
  0x2e   : > { %1167 = vmatprep.subr.bf16.mxu0 %v2701_v51  ;;  %1210 = vmatprep.subr.bf16.mxu1 %v2704_v58 }
  0x31   : > { %1168 = vmatpush2.bf16.msra.mxu0 %v2725_v4  ;;  %1211 = vmatpush2.bf16.msra.mxu1 %v2735_v7 }
  0x32   : > { %1169 = vmatprep.subr.bf16.mxu0 %v2737_v11  ;;  %1212 = vmatprep.subr.bf16.mxu1 %v2740_v12 }
  0x35   : > { %1170 = vmatpush2.bf16.msra.mxu0 %v2757_v30  ;;  %1213 = vmatpush2.bf16.msra.mxu1 %v2761_v31 }
  0x36   : > { %1171 = vmatprep.subr.bf16.mxu0 %v2763_v32  ;;  %1214 = vmatprep.subr.bf16.mxu1 %v2766_v33 }
  0x39   : > { %1172 = vmatpush2.bf16.msra.mxu0 %v2781_v52  ;;  %1215 = vmatpush2.bf16.msra.mxu1 %v2785_v54  ;;  %v2838_v54 = vcombine.high %v462_v39, %v466_v40  ;;  %v453_v52 = vld [vmem:[%s3546_s3 + $0x240] sm:$0xff] }
  0x3a   : > { %1173 = vmatprep.subr.bf16.mxu0 %v2787_v57  ;;  %1216 = vmatprep.subr.bf16.mxu1 %v2790_v59  ;;  %v2833_v59 = vcombine.low %v470_v16, %v474_v17  ;;  %v2835_v57 = vcombine.high %v461_v43, %v465_v34  ;;  %v458_v16 = vld [vmem:[%s3546_s3 + $0x268] sm:$0xff]  ;;  %v2853_v17 = vcombine.low %v461_v43, %v465_v34  ;;  %v449_v43 = vld [vmem:[%s3546_s3 + $0x220] sm:$0xff] }
  0x3b   : > { %3641 = vst [vmem:[#allocation14_spill] sm:$0xff] %v2838_v54  ;;  %v446_v34 = vld [vmem:[%s3546_s3 + $0x208] sm:$0xff] }
  0x3c   : > { %3639 = vst [vmem:[#allocation12_spill] sm:$0xff] %v2833_v59  ;;  %3640 = vst [vmem:[#allocation13_spill] sm:$0xff] %v2835_v57 }
  0x3d   : > { %1174 = vmatpush2.bf16.msra.mxu0 %v2805_v23  ;;  %1217 = vmatpush2.bf16.msra.mxu1 %v2809_v24  ;;  %3642 = vst [vmem:[#allocation15_spill] sm:$0xff] %v2853_v17  ;;  %v2862_v24 = vcombine.high %v454_v0, %v458_v16  ;;  %v445_v23 = vld [vmem:[%s3546_s3 + $0x200] sm:$0xff] }
  0x3e   : > { %1175 = vmatprep.subr.bf16.mxu0 %v2811_v62  ;;  %1218 = vmatprep.subr.bf16.mxu1 %v2814_v61  ;;  %v2857_v61 = vcombine.low %v462_v39, %v466_v40  ;;  %v2859_v62 = vcombine.high %v453_v52, %v457_v63  ;;  %v450_v39 = vld [vmem:[%s3546_s3 + $0x228] sm:$0xff]  ;;  %v2877_v40 = vcombine.low %v453_v52, %v457_v63  ;;  %v443_v52 = vld [vmem:[%s3546_s3 + $0x1f0] sm:$0xff]  ;;  %v440_v63 = vld [vmem:[%s3546_s3 + $0x1d8] sm:$0xff] }
  0x3f   : > { %3645 = vst [vmem:[#allocation18_spill] sm:$0xff] %v2862_v24 }
  0x40   : > { %3643 = vst [vmem:[#allocation16_spill] sm:$0xff] %v2857_v61  ;;  %3644 = vst [vmem:[#allocation17_spill] sm:$0xff] %v2859_v62 }
  0x41   : > { %1176 = vmatpush2.bf16.msra.mxu0 %v2829_v41  ;;  %1219 = vmatpush2.bf16.msra.mxu1 %v2833_v59  ;;  %v2886_v59 = vcombine.high %v446_v34, %v450_v39  ;;  %v439_v41 = vld [vmem:[%s3546_s3 + $0x1d0] sm:$0xff] }
  0x42   : > { %1177 = vmatprep.subr.bf16.mxu0 %v2835_v57  ;;  %1220 = vmatprep.subr.bf16.mxu1 %v2838_v54  ;;  %v2881_v54 = vcombine.low %v454_v0, %v458_v16  ;;  %v2883_v57 = vcombine.high %v445_v23, %v449_v43  ;;  %v444_v0 = vld [vmem:[%s3546_s3 + $0x1f8] sm:$0xff]  ;;  %v2901_v16 = vcombine.low %v445_v23, %v449_v43  ;;  %v435_v23 = vld [vmem:[%s3546_s3 + $0x1b0] sm:$0xff]  ;;  %v3653_v43 = vmax.f32 %v2693_v48, 0.0 }
  0x43   : > { %3648 = vst [vmem:[#allocation21_spill] sm:$0xff] %v2886_v59  ;;  %v2935_v48 = vcombine.low %v440_v63, %v444_v0 }
  0x44   : > { %3646 = vst [vmem:[#allocation19_spill] sm:$0xff] %v2881_v54  ;;  %3647 = vst [vmem:[#allocation20_spill] sm:$0xff] %v2883_v57 }
  0x45   : > { %1178 = vmatpush2.bf16.msra.mxu0 %v2853_v17  ;;  %1221 = vmatpush2.bf16.msra.mxu1 %v2857_v61  ;;  %3649 = vst [vmem:[#allocation22_spill] sm:$0xff] %v2901_v16  ;;  %v2910_v61 = vcombine.high %v440_v63, %v444_v0  ;;  %v431_v17 = vld [vmem:[%s3546_s3 + $0x190] sm:$0xff]  ;;  %3656 = vst [vmem:[#allocation27_spill] sm:$0xff] %v2935_v48  ;;  %v428_v63 = vld [vmem:[%s3546_s3 + $0x178] sm:$0xff] }
  0x46   : > { %1179 = vmatprep.subr.bf16.mxu0 %v2859_v62  ;;  %1222 = vmatprep.subr.bf16.mxu1 %v2862_v24  ;;  %v2905_v24 = vcombine.low %v446_v34, %v450_v39  ;;  %v2907_v62 = vcombine.high %v439_v41, %v443_v52  ;;  %v432_v39 = vld [vmem:[%s3546_s3 + $0x198] sm:$0xff]  ;;  %v2957_v0 = vcombine.low %v431_v17, %v435_v23 }
  0x47   : > { %3652 = vst [vmem:[#allocation25_spill] sm:$0xff] %v2910_v61 }
  0x48   : > { %3650 = vst [vmem:[#allocation23_spill] sm:$0xff] %v2905_v24  ;;  %3651 = vst [vmem:[#allocation24_spill] sm:$0xff] %v2907_v62 }
  0x49   : > { %1180 = vmatpush2.bf16.msra.mxu0 %v2877_v40  ;;  %1223 = vmatpush2.bf16.msra.mxu1 %v2881_v54  ;;  %v2931_v54 = vcombine.low %v439_v41, %v443_v52  ;;  %v427_v41 = vld [vmem:[%s3546_s3 + $0x170] sm:$0xff]  ;;  %v424_v52 = vld [vmem:[%s3546_s3 + $0x158] sm:$0xff]  ;;  %3659 = vst [vmem:[#allocation30_spill] sm:$0xff] %v2957_v0 }
  0x4a   : > { %1181 = vmatprep.subr.bf16.mxu0 %v2883_v57  ;;  %1224 = vmatprep.subr.bf16.mxu1 %v2886_v59  ;;  %v3654_v57 = vmax.f32 %v2695_v49, 0.0  ;;  %v436_v59 = vld [vmem:[%s3546_s3 + $0x1b8] sm:$0xff]  ;;  %v2937_v49 = vcombine.high %v431_v17, %v435_v23  ;;  %v419_v17 = vld [vmem:[%s3546_s3 + $0x130] sm:$0xff] }
  0x4b   : > { %3655 = vst [vmem:[#allocation26_spill] sm:$0xff] %v2931_v54  ;;  %v420_v23 = vld [vmem:[%s3546_s3 + $0x138] sm:$0xff] }
  0x4c   : > { %v2922_v34 = vpack.c.bf16 %v3654_v57, %v3653_v43  ;;  %3657 = vst [vmem:[#allocation28_spill] sm:$0xff] %v2937_v49  ;;  %v2940_v57 = vcombine.high %v432_v39, %v436_v59  ;;  %v423_v43 = vld [vmem:[%s3546_s3 + $0x150] sm:$0xff] }
  0x4d   : > { %1182 = vmatpush2.bf16.msra.mxu0 %v2901_v16  ;;  %1225 = vmatpush2.bf16.msra.mxu1 %v2905_v24  ;;  %v2966_v24 = vcombine.high %v424_v52, %v428_v63  ;;  %v415_v16 = vld [vmem:[%s3546_s3 + $0x110] sm:$0xff] }
  0x4e   : > { %1237 = vmatprep.subr.bf16.mxu0 %v2907_v62  ;;  %1280 = vmatprep.subr.bf16.mxu1 %v2910_v61  ;;  %3658 = vst [vmem:[#allocation29_spill] sm:$0xff] %v2940_v57  ;;  %v2961_v61 = vcombine.low %v432_v39, %v436_v59  ;;  %v2963_v62 = vcombine.high %v423_v43, %v427_v41  ;;  %v416_v59 = vld [vmem:[%s3546_s3 + $0x118] sm:$0xff] }
  0x4f   : > { %3662 = vst [vmem:[#allocation33_spill] sm:$0xff] %v2966_v24  ;;  %v2983_v39 = vcombine.low %v423_v43, %v427_v41  ;;  %v411_v43 = vld [vmem:[%s3546_s3 + $0xf0] sm:$0xff]  ;;  %v408_v41 = vld [vmem:[%s3546_s3 + $0xd8] sm:$0xff] }
  0x50   : > { %1184 = vmatmul.mubr.bf16.vlgmr.msra.gmra.mxu0 %v2922_v34  ;;  %1227 = vmatmul.mubr.bf16.vlgmr.msra.gmra.mxu1 %v2922_v34  ;;  %3660 = vst [vmem:[#allocation31_spill] sm:$0xff] %v2961_v61  ;;  %3661 = vst [vmem:[#allocation32_spill] sm:$0xff] %v2963_v62 }
  0x51   : > { %1238 = vmatpush1.bf16.msra.mxu0 %v2931_v54  ;;  %1281 = vmatpush1.bf16.msra.mxu1 %v2935_v48  ;;  %3663 = vst [vmem:[#allocation34_spill] sm:$0xff] %v2983_v39  ;;  %v2992_v48 = vcombine.high %v416_v59, %v420_v23  ;;  %v463_v54 = vld [vmem:[%s3546_s3 + $0x290] sm:$0xff] }
  0x52   : > { %1239 = vmatprep.subr.bf16.mxu0 %v2937_v49  ;;  %1282 = vmatprep.subr.bf16.mxu1 %v2940_v57  ;;  %v2987_v57 = vcombine.low %v424_v52, %v428_v63  ;;  %v2989_v49 = vcombine.high %v415_v16, %v419_v17  ;;  %v412_v52 = vld [vmem:[%s3546_s3 + $0xf8] sm:$0xff]  ;;  %v3007_v63 = vcombine.low %v415_v16, %v419_v17  ;;  %v403_v16 = vld [vmem:[%s3546_s3 + $0xb0] sm:$0xff] }
  0x53   : > { %1269 = vmatprep.mubr.bf16.mxu0 %v2720_v1  ;;  %1312 = vmatprep.mubr.bf16.mxu1 %v2720_v1  ;;  %3666 = vst [vmem:[#allocation37_spill] sm:$0xff] %v2992_v48  ;;  %v407_v1 = vld [vmem:[%s3546_s3 + $0xd0] sm:$0xff]  ;;  %v400_v17 = vld [vmem:[%s3546_s3 + $0x98] sm:$0xff] }
  0x54   : > { %3664 = vst [vmem:[#allocation35_spill] sm:$0xff] %v2987_v57  ;;  %3665 = vst [vmem:[#allocation36_spill] sm:$0xff] %v2989_v49 }
  0x55   : > { %1240 = vmatpush1.bf16.msra.mxu0 %v2957_v0  ;;  %1283 = vmatpush1.bf16.msra.mxu1 %v2961_v61  ;;  %3667 = vst [vmem:[#allocation38_spill] sm:$0xff] %v3007_v63  ;;  %v3016_v61 = vcombine.high %v408_v41, %v412_v52  ;;  %v399_v0 = vld [vmem:[%s3546_s3 + $0x90] sm:$0xff] }
  0x56   : > { %1241 = vmatprep.subr.bf16.mxu0 %v2963_v62  ;;  %1284 = vmatprep.subr.bf16.mxu1 %v2966_v24  ;;  %v3011_v24 = vcombine.low %v416_v59, %v420_v23  ;;  %v3013_v62 = vcombine.high %v407_v1, %v411_v43  ;;  %v404_v59 = vld [vmem:[%s3546_s3 + $0xb8] sm:$0xff]  ;;  %v3031_v23 = vcombine.low %v407_v1, %v411_v43  ;;  %v395_v1 = vld [vmem:[%s3546_s3 + $0x70] sm:$0xff] }
  0x57   : > { %3670 = vst [vmem:[#allocation41_spill] sm:$0xff] %v3016_v61  ;;  %v392_v43 = vld [vmem:[%s3546_s3 + $0x58] sm:$0xff] }
  0x58   : > { %3668 = vst [vmem:[#allocation39_spill] sm:$0xff] %v3011_v24  ;;  %3669 = vst [vmem:[#allocation40_spill] sm:$0xff] %v3013_v62 }
  0x59   : > { %1242 = vmatpush1.bf16.msra.mxu0 %v2983_v39  ;;  %1285 = vmatpush1.bf16.msra.mxu1 %v2987_v57  ;;  %3671 = vst [vmem:[#allocation42_spill] sm:$0xff] %v3031_v23  ;;  %v3040_v57 = vcombine.high %v400_v17, %v404_v59  ;;  %v391_v39 = vld [vmem:[%s3546_s3 + $0x50] sm:$0xff] }
  0x5a   : > { %1243 = vmatprep.subr.bf16.mxu0 %v2989_v49  ;;  %1286 = vmatprep.subr.bf16.mxu1 %v2992_v48  ;;  %v3035_v48 = vcombine.low %v408_v41, %v412_v52  ;;  %v3037_v49 = vcombine.high %v399_v0, %v403_v16  ;;  %v396_v41 = vld [vmem:[%s3546_s3 + $0x78] sm:$0xff]  ;;  %v3055_v52 = vcombine.low %v399_v0, %v403_v16  ;;  %v387_v0 = vld [vmem:[%s3546_s3 + $0x30] sm:$0xff] }
  0x5b   : > { %3674 = vst [vmem:[#allocation45_spill] sm:$0xff] %v3040_v57  ;;  %v384_v16 = vld [vmem:[%s3546_s3 + $0x18] sm:$0xff] }
  0x5c   : > { %3672 = vst [vmem:[#allocation43_spill] sm:$0xff] %v3035_v48  ;;  %3673 = vst [vmem:[#allocation44_spill] sm:$0xff] %v3037_v49 }
  0x5d   : > { %1244 = vmatpush1.bf16.msra.mxu0 %v3007_v63  ;;  %1287 = vmatpush1.bf16.msra.mxu1 %v3011_v24  ;;  %3675 = vst [vmem:[#allocation46_spill] sm:$0xff] %v3055_v52  ;;  %v3064_v24 = vcombine.high %v392_v43, %v396_v41  ;;  %v383_v63 = vld [vmem:[%s3546_s3 + $0x10] sm:$0xff] }
  0x5e   : > { %1245 = vmatprep.subr.bf16.mxu0 %v3013_v62  ;;  %1288 = vmatprep.subr.bf16.mxu1 %v3016_v61  ;;  %v3059_v61 = vcombine.low %v400_v17, %v404_v59  ;;  %v3061_v62 = vcombine.high %v391_v39, %v395_v1  ;;  %v388_v17 = vld [vmem:[%s3546_s3 + $0x38] sm:$0xff]  ;;  %v3079_v59 = vcombine.low %v391_v39, %v395_v1  ;;  %v507_v39 = vld [vmem:[%s3546_s3 + $0x3f0] sm:$0xff] }
  0x5f   : > { %3678 = vst [vmem:[#allocation49_spill] sm:$0xff] %v3064_v24  ;;  %v504_v1 = vld [vmem:[%s3546_s3 + $0x3d8] sm:$0xff] }
  0x60   : > { %3676 = vst [vmem:[#allocation47_spill] sm:$0xff] %v3059_v61  ;;  %3677 = vst [vmem:[#allocation48_spill] sm:$0xff] %v3061_v62 }
  0x61   : > { %1246 = vmatpush1.bf16.msra.mxu0 %v3031_v23  ;;  %1289 = vmatpush1.bf16.msra.mxu1 %v3035_v48  ;;  %3679 = vst [vmem:[#allocation50_spill] sm:$0xff] %v3079_v59  ;;  %v3088_v48 = vcombine.high %v384_v16, %v388_v17  ;;  %v503_v23 = vld [vmem:[%s3546_s3 + $0x3d0] sm:$0xff] }
  0x62   : > { %1247 = vmatprep.subr.bf16.mxu0 %v3037_v49  ;;  %1290 = vmatprep.subr.bf16.mxu1 %v3040_v57  ;;  %v3083_v57 = vcombine.low %v392_v43, %v396_v41  ;;  %v3085_v49 = vcombine.high %v383_v63, %v387_v0  ;;  %v508_v43 = vld [vmem:[%s3546_s3 + $0x3f8] sm:$0xff]  ;;  %v3103_v41 = vcombine.low %v383_v63, %v387_v0  ;;  %v499_v63 = vld [vmem:[%s3546_s3 + $0x3b0] sm:$0xff] }
  0x63   : > { %3682 = vst [vmem:[#allocation53_spill] sm:$0xff] %v3088_v48  ;;  %v496_v0 = vld [vmem:[%s3546_s3 + $0x398] sm:$0xff] }
  0x64   : > { %3680 = vst [vmem:[#allocation51_spill] sm:$0xff] %v3083_v57  ;;  %3681 = vst [vmem:[#allocation52_spill] sm:$0xff] %v3085_v49 }
  0x65   : > { %1248 = vmatpush1.bf16.msra.mxu0 %v3055_v52  ;;  %1291 = vmatpush1.bf16.msra.mxu1 %v3059_v61  ;;  %3683 = vst [vmem:[#allocation54_spill] sm:$0xff] %v3103_v41  ;;  %v3112_v61 = vcombine.high %v504_v1, %v508_v43  ;;  %v495_v52 = vld [vmem:[%s3546_s3 + $0x390] sm:$0xff] }
  0x66   : > { %1249 = vmatprep.subr.bf16.mxu0 %v3061_v62  ;;  %1292 = vmatprep.subr.bf16.mxu1 %v3064_v24  ;;  %v3107_v24 = vcombine.low %v384_v16, %v388_v17  ;;  %v3109_v62 = vcombine.high %v503_v23, %v507_v39  ;;  %v500_v16 = vld [vmem:[%s3546_s3 + $0x3b8] sm:$0xff]  ;;  %v3127_v17 = vcombine.low %v503_v23, %v507_v39  ;;  %v491_v23 = vld [vmem:[%s3546_s3 + $0x370] sm:$0xff] }
  0x67   : > { %3686 = vst [vmem:[#allocation57_spill] sm:$0xff] %v3112_v61  ;;  %v488_v39 = vld [vmem:[%s3546_s3 + $0x358] sm:$0xff] }
  0x68   : > { %3684 = vst [vmem:[#allocation55_spill] sm:$0xff] %v3107_v24  ;;  %3685 = vst [vmem:[#allocation56_spill] sm:$0xff] %v3109_v62 }
  0x69   : > { %1250 = vmatpush1.bf16.msra.mxu0 %v3079_v59  ;;  %1293 = vmatpush1.bf16.msra.mxu1 %v3083_v57  ;;  %3687 = vst [vmem:[#allocation58_spill] sm:$0xff] %v3127_v17  ;;  %v3136_v57 = vcombine.high %v496_v0, %v500_v16  ;;  %v487_v59 = vld [vmem:[%s3546_s3 + $0x350] sm:$0xff] }
  0x6a   : > { %1251 = vmatprep.subr.bf16.mxu0 %v3085_v49  ;;  %1294 = vmatprep.subr.bf16.mxu1 %v3088_v48  ;;  %v3131_v48 = vcombine.low %v504_v1, %v508_v43  ;;  %v3133_v49 = vcombine.high %v495_v52, %v499_v63  ;;  %v492_v1 = vld [vmem:[%s3546_s3 + $0x378] sm:$0xff]  ;;  %v3151_v43 = vcombine.low %v495_v52, %v499_v63  ;;  %v483_v52 = vld [vmem:[%s3546_s3 + $0x330] sm:$0xff] }
  0x6b   : > { %3690 = vst [vmem:[#allocation61_spill] sm:$0xff] %v3136_v57  ;;  %v480_v63 = vld [vmem:[%s3546_s3 + $0x318] sm:$0xff] }
  0x6c   : > { %3688 = vst [vmem:[#allocation59_spill] sm:$0xff] %v3131_v48  ;;  %3689 = vst [vmem:[#allocation60_spill] sm:$0xff] %v3133_v49 }
  0x6d   : > { %1252 = vmatpush1.bf16.msra.mxu0 %v3103_v41  ;;  %1295 = vmatpush1.bf16.msra.mxu1 %v3107_v24  ;;  %3691 = vst [vmem:[#allocation62_spill] sm:$0xff] %v3151_v43  ;;  %v3160_v24 = vcombine.high %v488_v39, %v492_v1  ;;  %v479_v41 = vld [vmem:[%s3546_s3 + $0x310] sm:$0xff] }
  0x6e   : > { %1253 = vmatprep.subr.bf16.mxu0 %v3109_v62  ;;  %1296 = vmatprep.subr.bf16.mxu1 %v3112_v61  ;;  %v3155_v61 = vcombine.low %v496_v0, %v500_v16  ;;  %v3157_v62 = vcombine.high %v487_v59, %v491_v23  ;;  %v484_v0 = vld [vmem:[%s3546_s3 + $0x338] sm:$0xff]  ;;  %v3175_v16 = vcombine.low %v487_v59, %v491_v23  ;;  %v475_v59 = vld [vmem:[%s3546_s3 + $0x2f0] sm:$0xff] }
  0x6f   : > { %3694 = vst [vmem:[#allocation65_spill] sm:$0xff] %v3160_v24  ;;  %v472_v23 = vld [vmem:[%s3546_s3 + $0x2d8] sm:$0xff] }
  0x70   : > { %3692 = vst [vmem:[#allocation63_spill] sm:$0xff] %v3155_v61  ;;  %3693 = vst [vmem:[#allocation64_spill] sm:$0xff] %v3157_v62 }
  0x71   : > { %1254 = vmatpush2.bf16.msra.mxu0 %v3127_v17  ;;  %1297 = vmatpush2.bf16.msra.mxu1 %v3131_v48  ;;  %3695 = vst [vmem:[#allocation66_spill] sm:$0xff] %v3175_v16  ;;  %v1337_v48 = vrot.slane %v2722_v2, 4  ;;  %v3185_v17 = vcombine.high %v480_v63, %v484_v0 }
  0x72   : > { %1255 = vmatprep.subr.bf16.mxu0 %v3133_v49  ;;  %1298 = vmatprep.subr.bf16.mxu1 %v3136_v57  ;;  %v3179_v57 = vcombine.low %v488_v39, %v492_v1  ;;  %v3181_v49 = vcombine.high %v479_v41, %v483_v52  ;;  %v476_v39 = vld [vmem:[%s3546_s3 + $0x2f8] sm:$0xff]  ;;  %v3200_v1 = vcombine.low %v479_v41, %v483_v52  ;;  %v467_v41 = vld [vmem:[%s3546_s3 + $0x2b0] sm:$0xff] }
  0x73   : > { %3698 = vst [vmem:[#allocation69_spill] sm:$0xff] %v3185_v17  ;;  %v1338_v52 = vadd.f32 %v1337_v48, %v2722_v2  ;;  %v455_v48 = vld [vmem:[%s3546_s3 + $0x250] sm:$0xff] }
  0x74   : > { %3696 = vst [vmem:[#allocation67_spill] sm:$0xff] %v3179_v57  ;;  %3697 = vst [vmem:[#allocation68_spill] sm:$0xff] %v3181_v49 }
  0x75   : > { %1256 = vmatpush2.bf16.msra.mxu0 %v3151_v43  ;;  %1299 = vmatpush2.bf16.msra.mxu1 %v3155_v61  ;;  %v471_v43 = vld [vmem:[%s3546_s3 + $0x2d0] sm:$0xff]  ;;  %3699 = vst [vmem:[#allocation70_spill] sm:$0xff] %v3200_v1  ;;  %v3209_v61 = vcombine.high %v472_v23, %v476_v39 }
  0x76   : > { %1257 = vmatprep.subr.bf16.mxu0 %v3157_v62  ;;  %1300 = vmatprep.subr.bf16.mxu1 %v3160_v24  ;;  %v3204_v24 = vcombine.low %v480_v63, %v484_v0  ;;  %v3206_v62 = vcombine.high %v471_v43, %v475_v59  ;;  %v464_v63 = vld [vmem:[%s3546_s3 + $0x298] sm:$0xff] }
  0x77   : > { %3702 = vst [vmem:[#allocation73_spill] sm:$0xff] %v3209_v61  ;;  %v468_v0 = vld [vmem:[%s3546_s3 + $0x2b8] sm:$0xff] }
  0x78   : > { %3700 = vst [vmem:[#allocation71_spill] sm:$0xff] %v3204_v24  ;;  %3701 = vst [vmem:[#allocation72_spill] sm:$0xff] %v3206_v62  ;;  %v3234_v2 = vcombine.high %v464_v63, %v468_v0 }
  0x79   : > { %1258 = vmatpush2.bf16.msra.mxu0 %v3175_v16  ;;  %1301 = vmatpush2.bf16.msra.mxu1 %v3179_v57  ;;  %v3231_v57 = vcombine.high %v463_v54, %v467_v41  ;;  %v447_v16 = vld [vmem:[%s3546_s3 + $0x210] sm:$0xff] }
  0x7a   : > { %1259 = vmatprep.subr.bf16.mxu0 %v3181_v49  ;;  %1302 = vmatprep.subr.bf16.mxu1 %v3185_v17  ;;  %v3225_v17 = vcombine.low %v471_v43, %v475_v59  ;;  %v3229_v49 = vcombine.low %v472_v23, %v476_v39  ;;  %3706 = vst [vmem:[#allocation77_spill] sm:$0xff] %v3234_v2  ;;  %v459_v43 = vld [vmem:[%s3546_s3 + $0x270] sm:$0xff]  ;;  %v1339_v59 = vrot.slane %v1338_v52, 2  ;;  %v456_v23 = vld [vmem:[%s3546_s3 + $0x258] sm:$0xff] }
  0x7b   : > { %3705 = vst [vmem:[#allocation76_spill] sm:$0xff] %v3231_v57  ;;  %v460_v39 = vld [vmem:[%s3546_s3 + $0x278] sm:$0xff] }
  0x7c   : > { %3703 = vst [vmem:[#allocation74_spill] sm:$0xff] %v3225_v17  ;;  %3704 = vst [vmem:[#allocation75_spill] sm:$0xff] %v3229_v49 }
  0x7d   : > { %1260 = vmatpush2.bf16.msra.mxu0 %v3200_v1  ;;  %1303 = vmatpush2.bf16.msra.mxu1 %v3204_v24  ;;  %v3255_v24 = vcombine.high %v455_v48, %v459_v43  ;;  %v3258_v1 = vcombine.high %v456_v23, %v460_v39 }
  0x7e   : > { %1261 = vmatprep.subr.bf16.mxu0 %v3206_v62  ;;  %1304 = vmatprep.subr.bf16.mxu1 %v3209_v61  ;;  %v3249_v61 = vcombine.low %v463_v54, %v467_v41  ;;  %v3253_v62 = vcombine.low %v464_v63, %v468_v0  ;;  %v451_v54 = vld [vmem:[%s3546_s3 + $0x230] sm:$0xff]  ;;  %v1340_v41 = vadd.f32 %v1339_v59, %v1338_v52  ;;  %v448_v63 = vld [vmem:[%s3546_s3 + $0x218] sm:$0xff] }
  0x7f   : > { %v452_v0 = vld [vmem:[%s3546_s3 + $0x238] sm:$0xff] }
  0x80   : > { %v3282_v52 = vcombine.high %v448_v63, %v452_v0  ;;  %v1341_v59 = vrot.slane %v1340_v41, 1 }
  0x81   : > { %1262 = vmatpush2.bf16.msra.mxu0 %v3225_v17  ;;  %1305 = vmatpush2.bf16.msra.mxu1 %v3229_v49  ;;  %v3279_v49 = vcombine.high %v447_v16, %v451_v54  ;;  %v3285_v17 = vcombine.low %v447_v16, %v451_v54  ;;  %v3745_v16 = vld [vmem:[#allocation41_spill] sm:$0xff]  ;;  %v3747_v54 = vld [vmem:[#allocation43_spill] sm:$0xff] }
  0x82   : > { %1263 = vmatprep.subr.bf16.mxu0 %v3231_v57  ;;  %1306 = vmatprep.subr.bf16.mxu1 %v3234_v2  ;;  %v3273_v2 = vcombine.low %v455_v48, %v459_v43  ;;  %v3277_v57 = vcombine.low %v456_v23, %v460_v39  ;;  %v3289_v48 = vcombine.low %v448_v63, %v452_v0  ;;  %v3746_v39 = vld [vmem:[#allocation42_spill] sm:$0xff]  ;;  %v3749_v63 = vld [vmem:[#allocation45_spill] sm:$0xff] }
  0x83   : > { %v1342_v43 = vadd.f32 %v1341_v59, %v1340_v41  ;;  %v3748_v41 = vld [vmem:[#allocation44_spill] sm:$0xff]  ;;  %v3750_v0 = vld [vmem:[#allocation46_spill] sm:$0xff]  ;;  %v3751_v59 = vld [vmem:[#allocation47_spill] sm:$0xff] }
  0x85   : > { %1264 = vmatpush2.bf16.msra.mxu0 %v3249_v61  ;;  %1307 = vmatpush2.bf16.msra.mxu1 %v3253_v62  ;;  %v3296_v23 = vpack.c.bf16 %v1342_v43, %v1342_v43  ;;  %v3752_v43 = vld [vmem:[#allocation48_spill] sm:$0xff] }
  0x86   : > { %1265 = vmatprep.subr.bf16.mxu0 %v3255_v24  ;;  %1308 = vmatprep.subr.bf16.mxu1 %v3258_v1 }
  0x89   : > { %1266 = vmatpush2.bf16.msra.mxu0 %v3273_v2  ;;  %1309 = vmatpush2.bf16.msra.mxu1 %v3277_v57 }
  0x8a   : > { %1267 = vmatprep.subr.bf16.mxu0 %v3279_v49  ;;  %1310 = vmatprep.subr.bf16.mxu1 %v3282_v52 }
  0x8d   : > { %1268 = vmatpush2.bf16.msra.mxu0 %v3285_v17  ;;  %1311 = vmatpush2.bf16.msra.mxu1 %v3289_v48 }
  0x8e   : > { %1346 = vmatprep.subr.bf16.mxu0 %v2487_v3  ;;  %1387 = vmatprep.subr.bf16.mxu1 %v2500_v8  ;;  %v1330_v3 = vrot.slane %v2731_v6, 4  ;;  %v3707_v8 = vld [vmem:[#allocation3_spill] sm:$0xff] }
  0x90   : > { %1270 = vmatmul.mubr.bf16.vlgmr.msra.gmra.mxu0 %v2922_v34  ;;  %1313 = vmatmul.mubr.bf16.vlgmr.msra.gmra.mxu1 %v2922_v34  ;;  %v3744_v34 = vld [vmem:[#allocation40_spill] sm:$0xff] }
  0x91   : > { %1347 = vmatpush1.bf16.msra.mxu0 %v2492_v5  ;;  %1388 = vmatpush1.bf16.msra.mxu1 %v2502_v9  ;;  %v1331_v5 = vadd.f32 %v1330_v3, %v2731_v6  ;;  %v3708_v9 = vld [vmem:[#allocation4_spill] sm:$0xff]  ;;  %v3735_v6 = vld [vmem:[#allocation31_spill] sm:$0xff]  ;;  %v3754_v3 = vld [vmem:[#allocation50_spill] sm:$0xff] }
  0x92   : > { %1348 = vmatprep.subr.bf16.mxu0 %v2504_v10  ;;  %1389 = vmatprep.subr.bf16.mxu1 %v2516_v14  ;;  %v3709_v10 = vld [vmem:[#allocation5_spill] sm:$0xff]  ;;  %v3710_v14 = vld [vmem:[#allocation6_spill] sm:$0xff] }
  0x93   : > { %1378 = vmatprep.mubr.bf16.mxu0 %v3296_v23  ;;  %1419 = vmatprep.mubr.bf16.mxu1 %v3296_v23 }
  0x95   : > { %1349 = vmatpush1.bf16.msra.mxu0 %v2529_v18  ;;  %1390 = vmatpush1.bf16.msra.mxu1 %v2533_v19  ;;  %v1332_v18 = vrot.slane %v1331_v5, 2  ;;  %v3711_v19 = vld [vmem:[#allocation7_spill] sm:$0xff] }
  0x96   : > { %1350 = vmatprep.subr.bf16.mxu0 %v2535_v20  ;;  %1391 = vmatprep.subr.bf16.mxu1 %v2538_v21  ;;  %v3712_v20 = vld [vmem:[#allocation8_spill] sm:$0xff]  ;;  %v3713_v21 = vld [vmem:[#allocation9_spill] sm:$0xff] }
  0x99   : > { %1351 = vmatpush1.bf16.msra.mxu0 %v2554_v26  ;;  %1392 = vmatpush1.bf16.msra.mxu1 %v2558_v27  ;;  %v3714_v26 = vld [vmem:[#allocation10_spill] sm:$0xff]  ;;  %v1333_v27 = vadd.f32 %v1332_v18, %v1331_v5  ;;  %v3755_v5 = vld [vmem:[#allocation51_spill] sm:$0xff]  ;;  %v3760_v18 = vld [vmem:[#allocation56_spill] sm:$0xff] }
  0x9a   : > { %1352 = vmatprep.subr.bf16.mxu0 %v2560_v28  ;;  %1393 = vmatprep.subr.bf16.mxu1 %v2563_v29  ;;  %v3715_v28 = vld [vmem:[#allocation11_spill] sm:$0xff]  ;;  %v3716_v29 = vld [vmem:[#allocation12_spill] sm:$0xff] }
  0x9d   : > { %1353 = vmatpush1.bf16.msra.mxu0 %v2581_v35  ;;  %1394 = vmatpush1.bf16.msra.mxu1 %v2585_v36  ;;  %v3717_v35 = vld [vmem:[#allocation13_spill] sm:$0xff]  ;;  %v3718_v36 = vld [vmem:[#allocation14_spill] sm:$0xff] }
  0x9e   : > { %1354 = vmatprep.subr.bf16.mxu0 %v2587_v37  ;;  %1395 = vmatprep.subr.bf16.mxu1 %v2590_v38  ;;  %v1334_v37 = vrot.slane %v1333_v27, 1  ;;  %v3719_v38 = vld [vmem:[#allocation15_spill] sm:$0xff] }
  0xa1   : > { %1355 = vmatpush1.bf16.msra.mxu0 %v2608_v44  ;;  %1396 = vmatpush1.bf16.msra.mxu1 %v2612_v45  ;;  %v3720_v44 = vld [vmem:[#allocation16_spill] sm:$0xff]  ;;  %v3721_v45 = vld [vmem:[#allocation17_spill] sm:$0xff] }
  0xa2   : > { %1356 = vmatprep.subr.bf16.mxu0 %v2614_v46  ;;  %1397 = vmatprep.subr.bf16.mxu1 %v2617_v47  ;;  %v3722_v46 = vld [vmem:[#allocation18_spill] sm:$0xff]  ;;  %v1335_v47 = vadd.f32 %v1334_v37, %v1333_v27  ;;  %v3765_v27 = vld [vmem:[#allocation61_spill] sm:$0xff] }
  0xa3   : > { %v3770_v37 = vld [vmem:[#allocation66_spill] sm:$0xff] }
  0xa5   : > { %1357 = vmatpush1.bf16.msra.mxu0 %v2636_v53  ;;  %1398 = vmatpush1.bf16.msra.mxu1 %v2641_v55  ;;  %v3723_v53 = vld [vmem:[#allocation19_spill] sm:$0xff]  ;;  %v3724_v55 = vld [vmem:[#allocation20_spill] sm:$0xff] }
  0xa6   : > { %1358 = vmatprep.subr.bf16.mxu0 %v2643_v56  ;;  %1399 = vmatprep.subr.bf16.mxu1 %v2649_v60  ;;  %v3725_v56 = vld [vmem:[#allocation21_spill] sm:$0xff]  ;;  %v3364_v60 = vpack.c.bf16 %v1335_v47, %v1335_v47  ;;  %v3775_v47 = vld [vmem:[#allocation71_spill] sm:$0xff] }
  0xa9   : > { %1359 = vmatpush1.bf16.msra.mxu0 %v2667_v13  ;;  %1400 = vmatpush1.bf16.msra.mxu1 %v2669_v15  ;;  %v3726_v13 = vld [vmem:[#allocation22_spill] sm:$0xff]  ;;  %v3727_v15 = vld [vmem:[#allocation23_spill] sm:$0xff] }
  0xaa   : > { %1360 = vmatprep.subr.bf16.mxu0 %v2673_v22  ;;  %1401 = vmatprep.subr.bf16.mxu1 %v2676_v25  ;;  %v3728_v22 = vld [vmem:[#allocation24_spill] sm:$0xff]  ;;  %v3729_v25 = vld [vmem:[#allocation25_spill] sm:$0xff] }
  0xad   : > { %1361 = vmatpush1.bf16.msra.mxu0 %v2691_v42  ;;  %1402 = vmatpush1.bf16.msra.mxu1 %v2699_v50  ;;  %v3730_v42 = vld [vmem:[#allocation26_spill] sm:$0xff]  ;;  %v3731_v50 = vld [vmem:[#allocation27_spill] sm:$0xff] }
  0xae   : > { %1362 = vmatprep.subr.bf16.mxu0 %v2701_v51  ;;  %1403 = vmatprep.subr.bf16.mxu1 %v2704_v58  ;;  %v3732_v51 = vld [vmem:[#allocation28_spill] sm:$0xff]  ;;  %v3733_v58 = vld [vmem:[#allocation29_spill] sm:$0xff] }
  0xb1   : > { %1363 = vmatpush2.bf16.msra.mxu0 %v2725_v4  ;;  %1404 = vmatpush2.bf16.msra.mxu1 %v2735_v7  ;;  %v3734_v4 = vld [vmem:[#allocation30_spill] sm:$0xff]  ;;  %v3736_v7 = vld [vmem:[#allocation32_spill] sm:$0xff] }
  0xb2   : > { %1364 = vmatprep.subr.bf16.mxu0 %v2737_v11  ;;  %1405 = vmatprep.subr.bf16.mxu1 %v2740_v12  ;;  %v3737_v11 = vld [vmem:[#allocation33_spill] sm:$0xff]  ;;  %v3738_v12 = vld [vmem:[#allocation34_spill] sm:$0xff] }
  0xb5   : > { %1365 = vmatpush2.bf16.msra.mxu0 %v2757_v30  ;;  %1406 = vmatpush2.bf16.msra.mxu1 %v2761_v31  ;;  %v3739_v30 = vld [vmem:[#allocation35_spill] sm:$0xff]  ;;  %v3740_v31 = vld [vmem:[#allocation36_spill] sm:$0xff] }
  0xb6   : > { %1366 = vmatprep.subr.bf16.mxu0 %v2763_v32  ;;  %1407 = vmatprep.subr.bf16.mxu1 %v2766_v33  ;;  %v3741_v32 = vld [vmem:[#allocation37_spill] sm:$0xff]  ;;  %v3742_v33 = vld [vmem:[#allocation38_spill] sm:$0xff] }
  0xb9   : > { %1367 = vmatpush2.bf16.msra.mxu0 %v3707_v8  ;;  %1408 = vmatpush2.bf16.msra.mxu1 %v3708_v9  ;;  %v3756_v8 = vld [vmem:[#allocation52_spill] sm:$0xff]  ;;  %v3757_v9 = vld [vmem:[#allocation53_spill] sm:$0xff] }
  0xba   : > { %1368 = vmatprep.subr.bf16.mxu0 %v3709_v10  ;;  %1409 = vmatprep.subr.bf16.mxu1 %v3710_v14  ;;  %v3758_v10 = vld [vmem:[#allocation54_spill] sm:$0xff]  ;;  %v3759_v14 = vld [vmem:[#allocation55_spill] sm:$0xff] }
  0xbd   : > { %1369 = vmatpush2.bf16.msra.mxu0 %v3711_v19  ;;  %1410 = vmatpush2.bf16.msra.mxu1 %v3712_v20  ;;  %v3761_v19 = vld [vmem:[#allocation57_spill] sm:$0xff]  ;;  %v3762_v20 = vld [vmem:[#allocation58_spill] sm:$0xff] }
  0xbe   : > { %1370 = vmatprep.subr.bf16.mxu0 %v3713_v21  ;;  %1411 = vmatprep.subr.bf16.mxu1 %v3714_v26  ;;  %v3763_v21 = vld [vmem:[#allocation59_spill] sm:$0xff]  ;;  %v3764_v26 = vld [vmem:[#allocation60_spill] sm:$0xff] }
  0xc1   : > { %1371 = vmatpush2.bf16.msra.mxu0 %v3715_v28  ;;  %1412 = vmatpush2.bf16.msra.mxu1 %v3716_v29  ;;  %v3766_v28 = vld [vmem:[#allocation62_spill] sm:$0xff]  ;;  %v3767_v29 = vld [vmem:[#allocation63_spill] sm:$0xff] }
  0xc2   : > { %1372 = vmatprep.subr.bf16.mxu0 %v3717_v35  ;;  %1413 = vmatprep.subr.bf16.mxu1 %v3718_v36  ;;  %v3768_v35 = vld [vmem:[#allocation64_spill] sm:$0xff]  ;;  %v3769_v36 = vld [vmem:[#allocation65_spill] sm:$0xff] }
  0xc5   : > { %1373 = vmatpush2.bf16.msra.mxu0 %v3719_v38  ;;  %1414 = vmatpush2.bf16.msra.mxu1 %v3720_v44  ;;  %v3771_v38 = vld [vmem:[#allocation67_spill] sm:$0xff]  ;;  %v3772_v44 = vld [vmem:[#allocation68_spill] sm:$0xff] }
  0xc6   : > { %1374 = vmatprep.subr.bf16.mxu0 %v3721_v45  ;;  %1415 = vmatprep.subr.bf16.mxu1 %v3722_v46  ;;  %v3773_v45 = vld [vmem:[#allocation69_spill] sm:$0xff]  ;;  %v3774_v46 = vld [vmem:[#allocation70_spill] sm:$0xff] }
  0xc9   : > { %1375 = vmatpush2.bf16.msra.mxu0 %v2877_v40  ;;  %1416 = vmatpush2.bf16.msra.mxu1 %v3723_v53  ;;  %v3743_v40 = vld [vmem:[#allocation39_spill] sm:$0xff]  ;;  %v3776_v53 = vld [vmem:[#allocation72_spill] sm:$0xff] }
  0xca   : > { %1376 = vmatprep.subr.bf16.mxu0 %v3724_v55  ;;  %1417 = vmatprep.subr.bf16.mxu1 %v3725_v56  ;;  %v3777_v55 = vld [vmem:[#allocation73_spill] sm:$0xff]  ;;  %v3778_v56 = vld [vmem:[#allocation74_spill] sm:$0xff] }
  0xcd   : > { %1377 = vmatpush2.bf16.msra.mxu0 %v3726_v13  ;;  %1418 = vmatpush2.bf16.msra.mxu1 %v3727_v15  ;;  %v3779_v13 = vld [vmem:[#allocation75_spill] sm:$0xff]  ;;  %v3780_v15 = vld [vmem:[#allocation76_spill] sm:$0xff] }
  0xce   : > { %1428 = vmatprep.subr.bf16.mxu0 %v3728_v22  ;;  %1469 = vmatprep.subr.bf16.mxu1 %v3729_v25  ;;  %v3781_v22 = vld [vmem:[#allocation77_spill] sm:$0xff] }
  0xd0   : > { %1379 = vmatmul.mubr.bf16.vlgmr.msra.gmra.mxu0 %v3364_v60  ;;  %1420 = vmatmul.mubr.bf16.vlgmr.msra.gmra.mxu1 %v3364_v60 }
  0xd1   : > { %1429 = vmatpush1.bf16.msra.mxu0 %v3730_v42  ;;  %1470 = vmatpush1.bf16.msra.mxu1 %v3731_v50 }
  0xd2   : > { %1430 = vmatprep.subr.bf16.mxu0 %v3732_v51  ;;  %1471 = vmatprep.subr.bf16.mxu1 %v3733_v58 }
  0xd3   : > { %1460 = vmatprep.mubr.bf16.mxu0 %v3296_v23  ;;  %1501 = vmatprep.mubr.bf16.mxu1 %v3296_v23  ;;  %v3753_v23 = vld [vmem:[#allocation49_spill] sm:$0xff] }
  0xd5   : > { %1431 = vmatpush1.bf16.msra.mxu0 %v3734_v4  ;;  %1472 = vmatpush1.bf16.msra.mxu1 %v3735_v6 }
  0xd6   : > { %1432 = vmatprep.subr.bf16.mxu0 %v3736_v7  ;;  %1473 = vmatprep.subr.bf16.mxu1 %v3737_v11 }
  0xd9   : > { %1433 = vmatpush1.bf16.msra.mxu0 %v3738_v12  ;;  %1474 = vmatpush1.bf16.msra.mxu1 %v3739_v30 }
  0xda   : > { %1434 = vmatprep.subr.bf16.mxu0 %v3740_v31  ;;  %1475 = vmatprep.subr.bf16.mxu1 %v3741_v32 }
  0xdd   : > { %1435 = vmatpush1.bf16.msra.mxu0 %v3742_v33  ;;  %1476 = vmatpush1.bf16.msra.mxu1 %v3743_v40 }
  0xde   : > { %1436 = vmatprep.subr.bf16.mxu0 %v3744_v34  ;;  %1477 = vmatprep.subr.bf16.mxu1 %v3745_v16 }
  0xe1   : > { %1437 = vmatpush1.bf16.msra.mxu0 %v3746_v39  ;;  %1478 = vmatpush1.bf16.msra.mxu1 %v3747_v54 }
  0xe2   : > { %1438 = vmatprep.subr.bf16.mxu0 %v3748_v41  ;;  %1479 = vmatprep.subr.bf16.mxu1 %v3749_v63 }
  0xe5   : > { %1439 = vmatpush1.bf16.msra.mxu0 %v3750_v0  ;;  %1480 = vmatpush1.bf16.msra.mxu1 %v3751_v59 }
  0xe6   : > { %1440 = vmatprep.subr.bf16.mxu0 %v3752_v43  ;;  %1481 = vmatprep.subr.bf16.mxu1 %v3753_v23 }
  0xe9   : > { %1441 = vmatpush1.bf16.msra.mxu0 %v3754_v3  ;;  %1482 = vmatpush1.bf16.msra.mxu1 %v3755_v5 }
  0xea   : > { %1442 = vmatprep.subr.bf16.mxu0 %v3756_v8  ;;  %1483 = vmatprep.subr.bf16.mxu1 %v3757_v9 }
  0xed   : > { %1443 = vmatpush1.bf16.msra.mxu0 %v3758_v10  ;;  %1484 = vmatpush1.bf16.msra.mxu1 %v3759_v14 }
  0xee   : > { %1444 = vmatprep.subr.bf16.mxu0 %v3760_v18  ;;  %1485 = vmatprep.subr.bf16.mxu1 %v3761_v19 }
  0xf1   : > { %1445 = vmatpush2.bf16.msra.mxu0 %v3762_v20  ;;  %1486 = vmatpush2.bf16.msra.mxu1 %v3763_v21 }
  0xf2   : > { %1446 = vmatprep.subr.bf16.mxu0 %v3764_v26  ;;  %1487 = vmatprep.subr.bf16.mxu1 %v3765_v27 }
  0xf5   : > { %1447 = vmatpush2.bf16.msra.mxu0 %v3766_v28  ;;  %1488 = vmatpush2.bf16.msra.mxu1 %v3767_v29 }
  0xf6   : > { %1448 = vmatprep.subr.bf16.mxu0 %v3768_v35  ;;  %1489 = vmatprep.subr.bf16.mxu1 %v3769_v36 }
  0xf9   : > { %1449 = vmatpush2.bf16.msra.mxu0 %v3770_v37  ;;  %1490 = vmatpush2.bf16.msra.mxu1 %v3771_v38 }
  0xfa   : > { %1450 = vmatprep.subr.bf16.mxu0 %v3772_v44  ;;  %1491 = vmatprep.subr.bf16.mxu1 %v3773_v45 }
  0xfd   : > { %1451 = vmatpush2.bf16.msra.mxu0 %v3774_v46  ;;  %1492 = vmatpush2.bf16.msra.mxu1 %v3775_v47  ;;  %v2417_v46 = vmov 1966171168  }
  0xfe   : > { %1452 = vmatprep.subr.bf16.mxu0 %v3776_v53  ;;  %1493 = vmatprep.subr.bf16.mxu1 %v3777_v55  ;;  %v1523_v47 = vunpack.c.l.s4 %v2417_v46 }
 0x101   : > { %1453 = vmatpush2.bf16.msra.mxu0 %v3778_v56  ;;  %1494 = vmatpush2.bf16.msra.mxu1 %v3779_v13 }
 0x102   : > { %1454 = vmatprep.subr.bf16.mxu0 %v3780_v15  ;;  %1495 = vmatprep.subr.bf16.mxu1 %v3781_v22 }
 0x105   : > { %1455 = vmatpush2.bf16.msra.mxu0 %v3249_v61  ;;  %1496 = vmatpush2.bf16.msra.mxu1 %v3253_v62 }
 0x106   : > { %1456 = vmatprep.subr.bf16.mxu0 %v3255_v24  ;;  %1497 = vmatprep.subr.bf16.mxu1 %v3258_v1 }
 0x109   : > { %1457 = vmatpush2.bf16.msra.mxu0 %v3273_v2  ;;  %1498 = vmatpush2.bf16.msra.mxu1 %v3277_v57 }
 0x10a   : > { %1458 = vmatprep.subr.bf16.mxu0 %v3279_v49  ;;  %1499 = vmatprep.subr.bf16.mxu1 %v3282_v52 }
 0x10d   : > { %1459 = vmatpush2.bf16.msra.mxu0 %v3285_v17  ;;  %1500 = vmatpush2.bf16.msra.mxu1 %v3289_v48 }
 0x110   : > { %1461 = vmatmul.mubr.bf16.vlgmr.msra.gmra.mxu0 %v3364_v60  ;;  %1502 = vmatmul.mubr.bf16.vlgmr.msra.gmra.mxu1 %v3364_v60  ;;  %v1185_v61 = vpop.f32.mrf.mxu0  ;;  %v1228_v24 = vpop.f32.mrf.mxu1 }
 0x111   : > { %v1571_v49 = vmul.f32 %v1185_v61, %v1185_v61  ;;  %v1573_v11 = vmul.f32 %v1228_v24, %v1228_v24 }
 0x112   : > { %v1187_v62 = vpop.f32.mrf.mxu0  ;;  %v1230_v25 = vpop.f32.mrf.mxu1 }
 0x113   : > { %v1572_v51 = vmul.f32 %v1187_v62, %v1187_v62  ;;  %v1574_v63 = vmul.f32 %v1230_v25, %v1230_v25 }
 0x114   : > { %v1189_v1 = vpop.f32.mrf.mxu0  ;;  %v1232_v57 = vpop.f32.mrf.mxu1 }
 0x115   : > { %v1579_v42 = vmul.f32 %v1189_v1, %v1189_v1  ;;  %v1703_v52 = vmax.f32 %v1185_v61, %v1189_v1  ;;  %v1759_v17 = vmin.f32 %v1185_v61, %v1189_v1  ;;  %v1581_v4 = vmul.f32 %v1232_v57, %v1232_v57 }
 0x116   : > { %v1191_v2 = vpop.f32.mrf.mxu0  ;;  %v1717_v48 = vmax.f32 %v1228_v24, %v1232_v57  ;;  %v1234_v60 = vpop.f32.mrf.mxu1  ;;  %v1773_v30 = vmin.f32 %v1228_v24, %v1232_v57 }
 0x117   : > { %v1580_v50 = vmul.f32 %v1191_v2, %v1191_v2  ;;  %v1587_v58 = vadd.f32 %v1579_v42, %v1571_v49  ;;  %v1710_v7 = vmax.f32 %v1187_v62, %v1191_v2  ;;  %v1704_v12 = vrot.slane %v1703_v52, 4 }
 0x118   : > { %v1760_v32 = vrot.slane %v1759_v17, 4  ;;  %v1601_v33 = vadd.f32 %v1581_v4, %v1573_v11  ;;  %v1718_v40 = vrot.slane %v1717_v48, 4  ;;  %v1766_v39 = vmin.f32 %v1187_v62, %v1191_v2 }
 0x119   : > { %v1594_v6 = vadd.f32 %v1580_v50, %v1572_v51  ;;  %v1588_v31 = vrot.slane %v1587_v58, 4  ;;  %v1711_v16 = vrot.slane %v1710_v7, 4  ;;  %v1582_v54 = vmul.f32 %v1234_v60, %v1234_v60 }
 0x11a   : > { %v1724_v41 = vmax.f32 %v1230_v25, %v1234_v60  ;;  %v1705_v0 = vmax.f32 %v1703_v52, %v1704_v12  ;;  %v1774_v59 = vrot.slane %v1773_v30, 4  ;;  %v1780_v43 = vmin.f32 %v1230_v25, %v1234_v60 }
 0x11b   : > { %v1595_v34 = vrot.slane %v1594_v6, 4  ;;  %v1589_v23 = vadd.f32 %v1588_v31, %v1587_v58  ;;  %v1761_v3 = vmin.f32 %v1759_v17, %v1760_v32  ;;  %v1602_v5 = vrot.slane %v1601_v33, 4 }
 0x11c   : > { %v1719_v8 = vmax.f32 %v1717_v48, %v1718_v40  ;;  %v1712_v10 = vmax.f32 %v1710_v7, %v1711_v16  ;;  %v1767_v14 = vrot.slane %v1766_v39, 4  ;;  %v1608_v18 = vadd.f32 %v1582_v54, %v1574_v63 }
 0x11d   : > { %v1596_v9 = vadd.f32 %v1595_v34, %v1594_v6  ;;  %v1725_v19 = vrot.slane %v1724_v41, 4  ;;  %v1706_v20 = vrot.slane %v1705_v0, 2  ;;  %v1775_v21 = vmin.f32 %v1773_v30, %v1774_v59  ;;  %v3782_v30 = vld [vmem:[#allocation2_spill] sm:$0xff] }
 0x11e   : > { %v1781_v26 = vrot.slane %v1780_v43, 4  ;;  %v1590_v27 = vrot.slane %v1589_v23, 2  ;;  %v1762_v28 = vrot.slane %v1761_v3, 2  ;;  %v1603_v29 = vadd.f32 %v1602_v5, %v1601_v33 }
 0x11f   : > { %v1720_v35 = vrot.slane %v1719_v8, 2  ;;  %v1597_v36 = vrot.slane %v1596_v9, 2  ;;  %v1713_v37 = vrot.slane %v1712_v10, 2  ;;  %v1768_v38 = vmin.f32 %v1766_v39, %v1767_v14 }
 0x120   : > { %v1609_v44 = vrot.slane %v1608_v18, 4  ;;  %v1726_v45 = vmax.f32 %v1724_v41, %v1725_v19  ;;  %v1707_v53 = vmax.f32 %v1705_v0, %v1706_v20  ;;  %v1776_v55 = vrot.slane %v1775_v21, 2 }
 0x121   : > { %v1782_v56 = vmin.f32 %v1780_v43, %v1781_v26  ;;  %v1591_v13 = vadd.f32 %v1590_v27, %v1589_v23  ;;  %v1763_v15 = vmin.f32 %v1761_v3, %v1762_v28  ;;  %v1604_v22 = vrot.slane %v1603_v29, 2 }
 0x122   : > { %v1721_v61 = vmax.f32 %v1719_v8, %v1720_v35  ;;  %v1598_v62 = vadd.f32 %v1597_v36, %v1596_v9  ;;  %v1714_v24 = vmax.f32 %v1712_v10, %v1713_v37  ;;  %v1769_v1 = vrot.slane %v1768_v38, 2 }
 0x123   : > { %v1610_v25 = vadd.f32 %v1609_v44, %v1608_v18  ;;  %v1727_v2 = vrot.slane %v1726_v45, 2  ;;  %v1524_v42 = vunpack.c.0.s8 %v1523_v47  ;;  %v1708_v57 = vrot.slane %v1707_v53, 1 }
 0x124   : > { %v3438_v50 = vmin.f32 %v1775_v21, %v1776_v55  ;;  %v1783_v49 = vrot.slane %v1782_v56, 2  ;;  %v1592_v51 = vrot.slane %v1591_v13, 1  ;;  %v1764_v52 = vrot.slane %v1763_v15, 1 }
 0x125   : > { %v3440_v58 = vadd.f32 %v1604_v22, %v1603_v29  ;;  %v1722_v17 = vrot.slane %v1721_v61, 1  ;;  %v1599_v4 = vrot.slane %v1598_v62, 1  ;;  %v1715_v48 = vrot.slane %v1714_v24, 1 }
 0x126   : > { %v1770_v6 = vmin.f32 %v1768_v38, %v1769_v1  ;;  %v1611_v7 = vrot.slane %v1610_v25, 2  ;;  %v1728_v60 = vmax.f32 %v1726_v45, %v1727_v2  ;;  %v3443_v31 = vsub.s32 %v1524_v42, %v3782_v30 }
 0x127   : > { %v1709_v32 = vmax.f32 %v1707_v53, %v1708_v57  ;;  %v1778_v33 = vrot.slane %v3438_v50, 1  ;;  %v1784_v40 = vmin.f32 %v1782_v56, %v1783_v49  ;;  %v1593_v16 = vadd.f32 %v1592_v51, %v1591_v13 }
 0x128   : > { %v1765_v39 = vmin.f32 %v1763_v15, %v1764_v52  ;;  %v1606_v54 = vrot.slane %v3440_v58, 1  ;;  %v3449_v41 = vmax.f32 %v1721_v61, %v1722_v17  ;;  %v1600_v0 = vadd.f32 %v1599_v4, %v1598_v62 }
 0x129   : > { %v1716_v59 = vmax.f32 %v1714_v24, %v1715_v48  ;;  %v1771_v43 = vrot.slane %v1770_v6, 1  ;;  %v1612_v23 = vadd.f32 %v1611_v7, %v1610_v25  ;;  %v1729_v5 = vrot.slane %v1728_v60, 1 }
 0x12a   : > { %v1785_v18 = vrot.slane %v1784_v40, 1  ;;  %v1651_v22 = vcombine.low %v1593_v16, %v1600_v0  ;;  %v3461_v17 = vmin.f32 %v3438_v50, %v1778_v33  ;;  %v3465_v7 = vadd.f32 %v1606_v54, %v3440_v58 }
 0x12b   : > { %v1772_v36 = vmin.f32 %v1770_v6, %v1771_v43  ;;  %v1613_v45 = vrot.slane %v1612_v23, 1  ;;  %v1826_v55 = vcombine.low %v1709_v32, %v1716_v59  ;;  %v1730_v56 = vmax.f32 %v1728_v60, %v1729_v5 }
 0x12c   : > { %v3456_v61 = vmin.f32 %v1784_v40, %v1785_v18  ;;  %v3471_v30 = vrot.slane %v1651_v22, %v3443_v31 }
 0x12d   : > { %v1885_v1 = vcombine.low %v1765_v39, %v1772_v36  ;;  %v3458_v57 = vadd.f32 %v1613_v45, %v1612_v23  ;;  %v1827_v4 = vcombine.low %v3449_v41, %v1730_v56 }
 0x12e   : > { %v1886_v32 = vcombine.low %v3461_v17, %v3456_v61 }
 0x12f   : > { %v3476_v16 = vrot.slane %v1885_v1, %v3443_v31  ;;  %v1652_v58 = vcombine.low %v3465_v7, %v3458_v57  ;;  %v3481_v41 = vrot.slane %v1827_v4, %v3443_v31 }
 0x150   : > { %v1271_v11 = vpop.f32.mrf.mxu0  ;;  %v1314_v12 = vpop.f32.mrf.mxu1 }
 0x151   : > { %v1575_v8 = vmul.f32 %v1271_v11, %v1271_v11  ;;  %v1577_v19 = vmul.f32 %v1314_v12, %v1314_v12 }
 0x152   : > { %v3446_v34 = vpop.f32.mrf.mxu0  ;;  %v3451_v63 = vpop.f32.mrf.mxu1 }
 0x153   : > { %v1576_v27 = vmul.f32 %v3446_v34, %v3446_v34  ;;  %v1578_v0 = vmul.f32 %v3451_v63, %v3451_v63 }
 0x154   : > { %v1275_v3 = vpop.f32.mrf.mxu0  ;;  %v1318_v14 = vpop.f32.mrf.mxu1 }
 0x155   : > { %v1583_v9 = vmul.f32 %v1275_v3, %v1275_v3  ;;  %v1731_v10 = vmax.f32 %v1271_v11, %v1275_v3  ;;  %v1787_v20 = vmin.f32 %v1271_v11, %v1275_v3  ;;  %v1585_v21 = vmul.f32 %v1318_v14, %v1318_v14 }
 0x156   : > { %v1277_v26 = vpop.f32.mrf.mxu0  ;;  %v1745_v29 = vmax.f32 %v1314_v12, %v1318_v14  ;;  %v1801_v38 = vmin.f32 %v1314_v12, %v1318_v14  ;;  %v3468_v11 = vrot.slane %v1826_v55, %v3443_v31  ;;  %v1320_v40 = vpop.f32.mrf.mxu1 }
 0x157   : > { %v1615_v28 = vadd.f32 %v1583_v9, %v1575_v8  ;;  %v1584_v35 = vmul.f32 %v1277_v26, %v1277_v26  ;;  %v1732_v37 = vrot.slane %v1731_v10, 4  ;;  %v1738_v44 = vmax.f32 %v3446_v34, %v1277_v26 }
 0x158   : > { %v1629_v47 = vadd.f32 %v1585_v21, %v1577_v19  ;;  %v1788_v13 = vrot.slane %v1787_v20, 4  ;;  %v1746_v62 = vrot.slane %v1745_v29, 4  ;;  %v1802_v2 = vrot.slane %v1801_v38, 4 }
 0x159   : > { %v1616_v46 = vrot.slane %v1615_v28, 4  ;;  %v1622_v53 = vadd.f32 %v1584_v35, %v1576_v27  ;;  %v1739_v15 = vrot.slane %v1738_v44, 4  ;;  %v1733_v25 = vmax.f32 %v1731_v10, %v1732_v37 }
 0x15a   : > { %v1630_v51 = vrot.slane %v1629_v47, 4  ;;  %v1789_v48 = vmin.f32 %v1787_v20, %v1788_v13  ;;  %v1747_v60 = vmax.f32 %v1745_v29, %v1746_v62  ;;  %v1803_v33 = vmin.f32 %v1801_v38, %v1802_v2 }
 0x15b   : > { %v1623_v24 = vrot.slane %v1622_v53, 4  ;;  %v1740_v42 = vmax.f32 %v1738_v44, %v1739_v15  ;;  %v1617_v49 = vadd.f32 %v1616_v46, %v1615_v28  ;;  %v1734_v50 = vrot.slane %v1733_v25, 2 }
 0x15c   : > { %v1631_v54 = vadd.f32 %v1630_v51, %v1629_v47  ;;  %v1790_v59 = vrot.slane %v1789_v48, 2  ;;  %v1748_v23 = vrot.slane %v1747_v60, 2  ;;  %v1794_v5 = vmin.f32 %v3446_v34, %v1277_v26 }
 0x15d   : > { %v1624_v52 = vadd.f32 %v1623_v24, %v1622_v53  ;;  %v1741_v6 = vrot.slane %v1740_v42, 2  ;;  %v1618_v39 = vrot.slane %v1617_v49, 2  ;;  %v1586_v8 = vmul.f32 %v1320_v40, %v1320_v40 }
 0x15e   : > { %v1735_v9 = vmax.f32 %v1733_v25, %v1734_v50  ;;  %v1804_v10 = vrot.slane %v1803_v33, 2  ;;  %v1752_v14 = vmax.f32 %v3451_v63, %v1320_v40  ;;  %v1808_v18 = vmin.f32 %v3451_v63, %v1320_v40 }
 0x15f   : > { %v1625_v12 = vrot.slane %v1624_v52, 2  ;;  %v1742_v43 = vmax.f32 %v1740_v42, %v1741_v6  ;;  %v1619_v19 = vadd.f32 %v1618_v39, %v1617_v49  ;;  %v1632_v20 = vrot.slane %v1631_v54, 2 }
 0x160   : > { %v1795_v21 = vrot.slane %v1794_v5, 4  ;;  %v1636_v27 = vadd.f32 %v1586_v8, %v1578_v0  ;;  %v1791_v28 = vmin.f32 %v1789_v48, %v1790_v59  ;;  %v1753_v35 = vrot.slane %v1752_v14, 4 }
 0x161   : > { %v1626_v3 = vadd.f32 %v1625_v12, %v1624_v52  ;;  %v1743_v29 = vrot.slane %v1742_v43, 1  ;;  %v1809_v36 = vrot.slane %v1808_v18, 4  ;;  %v1749_v37 = vmax.f32 %v1747_v60, %v1748_v23 }
 0x162   : > { %v1796_v44 = vmin.f32 %v1794_v5, %v1795_v21  ;;  %v1637_v45 = vrot.slane %v1636_v27, 4  ;;  %v1736_v34 = vrot.slane %v1735_v9, 1  ;;  %v1805_v26 = vmin.f32 %v1803_v33, %v1804_v10 }
 0x163   : > { %v1627_v38 = vrot.slane %v1626_v3, 1  ;;  %v1754_v46 = vmax.f32 %v1752_v14, %v1753_v35  ;;  %v1810_v47 = vmin.f32 %v1808_v18, %v1809_v36  ;;  %v1620_v53 = vrot.slane %v1619_v19, 1 }
 0x164   : > { %v1633_v55 = vadd.f32 %v1632_v20, %v1631_v54  ;;  %v1797_v56 = vrot.slane %v1796_v44, 2  ;;  %v1638_v63 = vadd.f32 %v1637_v45, %v1636_v27  ;;  %v1792_v13 = vrot.slane %v1791_v28, 1 }
 0x165   : > { %v1744_v15 = vmax.f32 %v1742_v43, %v1743_v29  ;;  %v1755_v22 = vrot.slane %v1754_v46, 2  ;;  %v1811_v61 = vrot.slane %v1810_v47, 2  ;;  %v1750_v62 = vrot.slane %v1749_v37, 1 }
 0x166   : > { %v1628_v24 = vadd.f32 %v1627_v38, %v1626_v3  ;;  %v1798_v1 = vmin.f32 %v1796_v44, %v1797_v56  ;;  %v1639_v25 = vrot.slane %v1638_v63, 2  ;;  %v1737_v2 = vmax.f32 %v1735_v9, %v1736_v34 }
 0x167   : > { %v1806_v42 = vrot.slane %v1805_v26, 1  ;;  %v1756_v49 = vmax.f32 %v1754_v46, %v1755_v22  ;;  %v1812_v51 = vmin.f32 %v1810_v47, %v1811_v61  ;;  %v1621_v52 = vadd.f32 %v1620_v53, %v1619_v19 }
 0x168   : > { %v1634_v17 = vrot.slane %v1633_v55, 1  ;;  %v1799_v4 = vrot.slane %v1798_v1, 1  ;;  %v1640_v48 = vadd.f32 %v1639_v25, %v1638_v63  ;;  %v1902_v6 = vrot.slane %v1886_v32, %v3443_v31 }
 0x169   : > { %v1828_v60 = vcombine.low %v1737_v2, %v1744_v15  ;;  %v1757_v12 = vrot.slane %v1756_v49, 1  ;;  %v1813_v50 = vrot.slane %v1812_v51, 1  ;;  %v1793_v33 = vmin.f32 %v1791_v28, %v1792_v13 }
 0x16a   : > { %v1653_v40 = vcombine.low %v1621_v52, %v1628_v24  ;;  %v1800_v39 = vmin.f32 %v1798_v1, %v1799_v4  ;;  %v1641_v54 = vrot.slane %v1640_v48, 1  ;;  %v1751_v0 = vmax.f32 %v1749_v37, %v1750_v62 }
 0x16b   : > { %v1807_v59 = vmin.f32 %v1805_v26, %v1806_v42  ;;  %v1758_v43 = vmax.f32 %v1756_v49, %v1757_v12  ;;  %v1814_v23 = vmin.f32 %v1812_v51, %v1813_v50  ;;  %v1668_v3 = vrot.slane %v1652_v58, %v3443_v31 }
 0x16c   : > { %v1635_v5 = vadd.f32 %v1634_v17, %v1633_v55  ;;  %v1887_v8 = vcombine.low %v1793_v33, %v1800_v39  ;;  %v1642_v32 = vadd.f32 %v1641_v54, %v1640_v48  ;;  %v1850_v9 = vrot.slane %v1828_v60, %v3443_v31 }
 0x16d   : > { %v1829_v10 = vcombine.low %v1751_v0, %v1758_v43  ;;  %v1888_v14 = vcombine.low %v1807_v59, %v1814_v23  ;;  %v1675_v18 = vrot.slane %v1653_v40, %v3443_v31  ;;  %v1858_v21 = vcombine.low %v3468_v11, %v3481_v41 }
 0x16e   : > { %v1909_v19 = vrot.slane %v1887_v8, %v3443_v31  ;;  %v1654_v20 = vcombine.low %v1635_v5, %v1642_v32  ;;  %v1917_v27 = vcombine.low %v3476_v16, %v1902_v6  ;;  %v1683_v58 = vcombine.low %v3471_v30, %v1668_v3 }
 0x16f   : > { %v1857_v57 = vrot.slane %v1829_v10, %v3443_v31  ;;  %v1916_v7 = vrot.slane %v1888_v14, %v3443_v31  ;;  %v1866_v11 = vrot.slane %v1858_v21, %v3443_v31 }
 0x170   : > { %v1682_v28 = vrot.slane %v1654_v20, %v3443_v31  ;;  %v1925_v16 = vrot.slane %v1917_v27, %v3443_v31  ;;  %v1691_v30 = vrot.slane %v1683_v58, %v3443_v31 }
 0x171   : > { %v1859_v29 = vcombine.low %v1850_v9, %v1857_v57  ;;  %v1918_v35 = vcombine.low %v1909_v19, %v1916_v7 }
 0x172   : > { %v1684_v36 = vcombine.low %v1675_v18, %v1682_v28 }
 0x173   : > { %v1873_v41 = vrot.slane %v1859_v29, %v3443_v31  ;;  %v1932_v37 = vrot.slane %v1918_v35, %v3443_v31 }
 0x174   : > { %v1698_v38 = vrot.slane %v1684_v36, %v3443_v31 }
 0x175   : > { %v1874_v44 = vcombine.low %v1866_v11, %v1873_v41  ;;  %v1933_v45 = vcombine.low %v1925_v16, %v1932_v37 }
 0x176   : > { %v1699_v34 = vcombine.low %v1691_v30, %v1698_v38 }
 0x177   : > { %1876 = vst [vmem:[%s326_s24] sm:$0xff] %v1874_v44  ;;  %1935 = vst [vmem:[%s330_s8] sm:$0xff] %v1933_v45 }
 0x178   : > { %1702 = vst [vmem:[%s338_s11] sm:$0xff] %v1699_v34 }
 0x190   : > { %v1380_v26 = vpop.f32.mrf.mxu0  ;;  %v1421_v46 = vpop.f32.mrf.mxu1 }
 0x192   : > { %v1382_v47 = vpop.f32.mrf.mxu0  ;;  %v1423_v55 = vpop.f32.mrf.mxu1 }
 0x193   : > { %v1518_v53 = vcombine.low %v1380_v26, %v1382_v47  ;;  %v1519_v56 = vcombine.low %v1421_v46, %v1423_v55 }
 0x194   : > { %v1384_v63 = vpop.f32.mrf.mxu0  ;;  %v1425_v15 = vpop.f32.mrf.mxu1 }
 0x195   : > { %v1528_v13 = vrot.slane %v1518_v53, %v3443_v31  ;;  %v1535_v22 = vrot.slane %v1519_v56, %v3443_v31 }
 0x196   : > { %v1385_v61 = vpop.f32.mrf.mxu0  ;;  %v1426_v62 = vpop.f32.mrf.mxu1 }
 0x197   : > { %v1550_v24 = vcombine.low %v1528_v13, %v1535_v22 }
 0x199   : > { %v1558_v50 = vrot.slane %v1550_v24, %v3443_v31 }
 0x1d0   : > { %v1462_v1 = vpop.f32.mrf.mxu0  ;;  %v1503_v25 = vpop.f32.mrf.mxu1 }
 0x1d2   : > { %v1464_v2 = vpop.f32.mrf.mxu0  ;;  %v1505_v49 = vpop.f32.mrf.mxu1 }
 0x1d3   : > { %v1520_v42 = vcombine.low %v1462_v1, %v1464_v2  ;;  %v1521_v51 = vcombine.low %v1503_v25, %v1505_v49 }
 0x1d4   : > { %v1466_v52 = vpop.f32.mrf.mxu0  ;;  %v1507_v4 = vpop.f32.mrf.mxu1 }
 0x1d5   : > { %v1542_v17 = vrot.slane %v1520_v42, %v3443_v31  ;;  %v1549_v48 = vrot.slane %v1521_v51, %v3443_v31 }
 0x1d6   : > { %v1467_v6 = vpop.f32.mrf.mxu0  ;;  %v1508_v60 = vpop.f32.mrf.mxu1 }
 0x1d7   : > { %v1551_v12 = vcombine.low %v1542_v17, %v1549_v48 }
 0x1d9   : > { %v1565_v33 = vrot.slane %v1551_v12, %v3443_v31 }
 0x1db   : > { %v1566_v40 = vcombine.low %v1558_v50, %v1565_v33 }
 0x1dd   : > { %1569 = vst [vmem:[%s334_s14] sm:$0xff] %v1566_v40 }
 0x1de PF: > { %s18_s26 = sadd.s32 1, %s2415_s26   ;;  %s3783_s24 = smov %s2411_s25 }
 0x1df   : > { %p15_p5 = scmp.ge.s32.totalorder %s18_s26, 4   ;;  %s3784_s25 = smov %s3786_s27 }
 0x1e1   :  { %17 = sbr.rel (!%p15_p5) target bundleno = 2 (0x2), region = 114 }

// kernel: encoder_layer_leaf.11
= control target key start
LH: loop header
LB: loop body
LE: loop exit
PB: predicated region body
PF: predicated region fallthrough
CT: control target
= control target key end

     0   :  { %s620_s15 = smov 0   ;;  %s622_s16 = smov 0   ;;  %s683_s0 = inlined_call_operand.vmem [shape: f32[2,16,3], index: 0, kind: input, shape index: {}]   ;;  %s684_s1 = inlined_call_operand.vmem [shape: f32[2,3,32], index: 1, kind: input, shape index: {}]   ;;  %s685_s2 = inlined_call_operand.vmem [shape: bf16[2,16,32], index: 2, kind: output, shape index: {0}]   ;;  %s686_s3 = inlined_call_operand.vmem [shape: f32[2,1,32], index: 3, kind: output, shape index: {1}]   ;;  %s687_s4 = inlined_call_operand.vmem [shape: f32[2,1,32], index: 4, kind: output, shape index: {2}]  }
   0x1   :  { %s624_s17 = smov 0  }
   0x2 LB: > { %s27_s18 = sadd.s32 1, %s585_s16  ;;  %p521_p0 = scmp.ge.s32.totalorder %s589_s17, 1  ;;  %s589_s17 = sphi %s624_s17, %s15_s17   ;;  %s585_s16 = sphi %s622_s16, %s689_s16   ;;  %s581_s15 = sphi %s620_s15, %s688_s15  }
   0x3   : > { %p29_p1 = scmp.ge.s32.totalorder %s27_s18, 2  ;;  %p197_p2 = scmp.lt.s32.totalorder %s589_s17, 3 }
   0x5   : > { %s691_s18 = smov (%p29_p1, %s27_s18), 0  ;;  %p198_p3 = pnand %p521_p0, %p197_p2 }
   0x6   : > { %p242_p4 = scmp.lt.s32.totalorder (!%p198_p3), %s581_s15, 1 }
   0x7   : > { %201 = sbr.rel (%p198_p3) target bundleno = 174 (0xae), region = 28 }
   0xc   : > { %v591_v0 = vmov 1   ;;  %v592_v1 = vmov 0   ;;  %s693_s15 = smov (!%p242_p4, %s581_s15), 1  ;;  %v593_v4 = vmov 2   ;;  %vm337_vm0 = vcmask 253952  }
   0xd   : > { %564 = vset.pattern.permute.xlu1 %v591_v0  ;;  %563 = vset.pattern.permute.xlu0 %v592_v1  ;;  %s531_s19 = sshll.u32 %s693_s15, 4  ;;  %s648_s25 = scalar_lea.vmem %s686_s3, %s693_s15  ;;  %v594_v5 = vmov 0.0   ;;  %v284_v6 = vlaneseq  ;;  %vm341_vm1 = vcmask 261120   ;;  %vm330_vm2 = vcmask 257024  }
   0xe   : > { %s249_s22 = scalar_lea.vmem %s683_s0, %s531_s19  ;;  %s654_s28 = scalar_lea.vmem %s687_s4, %s693_s15  ;;  %338 = vst.msk [vmem:[%s648_s25] sm:$0x1] %vm337_vm0, %v594_v5 }
   0xf   : > { %v271_v2 = vld [vmem:[%s249_s22] sm:$0xff]  ;;  %v272_v3 = vld [vmem:[%s249_s22 + $0x8] sm:$0xff]  ;;  %339 = vst.msk [vmem:[%s654_s28] sm:$0x1] %vm337_vm0, %v594_v5  ;;  %s524_s29 = sshll.u32 %s693_s15, 2  ;;  %v285_v7 = vshrl.u32 %v284_v6, 7 }
  0x10   : > { %291 = vperm.xlu1 %564, %v271_v2   ;;  %276 = vperm.xlu0 %563, %v271_v2   ;;  %s254_s6 = scalar_lea.vmem %s684_s1, %s524_s29  ;;  %s532_s7 = sshll.u32 %s693_s15, 3 }
  0x11   : > { %v300_v8 = vsub.s32 1, %v285_v7  ;;  %v286_v9 = vsub.s32 0, %v285_v7  ;;  %v273_v10 = vld [vmem:[%s254_s6] sm:$0x7]  ;;  %v316_v13 = vsub.s32 2, %v285_v7  ;;  %s263_s10 = scalar_lea.vmem %s685_s2, %s532_s7 }
  0x13   : > { %v301_v14 = vrot.slane %v273_v10, %v300_v8  ;;  %v287_v15 = vrot.slane %v273_v10, %v286_v9  ;;  %v317_v18 = vrot.slane %v273_v10, %v316_v13 }
  0x14   : > { %295 = vperm.xlu1 %564, %v272_v3   ;;  %281 = vperm.xlu0 %563, %v272_v3  }
  0x15   : > { %v340_v50 = vld [vmem:[%s648_s25] sm:$0x1] }
  0x16   : > { %v354_v53 = vld [vmem:[%s654_s28] sm:$0x1] }
  0x18   : > { %566 = vset.pattern.permute.xlu1 %v593_v4  ;;  %565 = vset.pattern.permute.xlu0 %v593_v4 }
  0x19   : > { %311 = vperm.xlu1 %566, %v272_v3   ;;  %307 = vperm.xlu0 %565, %v271_v2  }
  0x8b   : > { %v292_v11 = vpop.permute.xlu1 %291  ;;  %v277_v12 = vpop.permute.xlu0 %276 }
  0x8c   : > { %v302_v19 = vmul.f32 %v301_v14, %v292_v11  ;;  %v288_v20 = vmul.f32 %v287_v15, %v277_v12 }
  0x8e   : > { %v304_v25 = vadd.f32 %v302_v19, %v288_v20 }
  0x8f   : > { %v296_v16 = vpop.permute.xlu1 %295  ;;  %v282_v17 = vpop.permute.xlu0 %281 }
  0x90   : > { %v303_v21 = vmul.f32 %v301_v14, %v296_v16  ;;  %v289_v22 = vmul.f32 %v287_v15, %v282_v17 }
  0x92   : > { %v305_v26 = vadd.f32 %v303_v21, %v289_v22 }
  0x94   : > { %v312_v23 = vpop.permute.xlu1 %311  ;;  %v308_v24 = vpop.permute.xlu0 %307 }
  0x95   : > { %v319_v27 = vmul.f32 %v317_v18, %v312_v23  ;;  %v318_v28 = vmul.f32 %v317_v18, %v308_v24 }
  0x97   : > { %v321_v29 = vadd.f32 %v319_v27, %v305_v26  ;;  %v320_v30 = vadd.f32 %v318_v28, %v304_v25 }
  0x99   : > { %v534_v31 = vpack.c.bf16 %v321_v29, %v321_v29  ;;  %v343_v32 = vsel %vm341_vm1, %v321_v29, 0.0  ;;  %v356_v33 = vmul.f32 %v321_v29, %v321_v29  ;;  %v533_v34 = vpack.c.bf16 %v320_v30, %v320_v30 }
  0x9a   : > { %v342_v35 = vsel %vm341_vm1, %v320_v30, 0.0  ;;  %v355_v36 = vmul.f32 %v320_v30, %v320_v30 }
  0x9b   : > { %332 = vst.msk [vmem:[%s263_s10 + $0x4] sm:$0xf] %vm330_vm2, %v534_v31  ;;  %v358_v37 = vsel %vm341_vm1, %v356_v33, 0.0  ;;  %331 = vst.msk [vmem:[%s263_s10] sm:$0xf] %vm330_vm2, %v533_v34  ;;  %v344_v38 = vadd.f32 %v343_v32, %v342_v35 }
  0x9c   : > { %v357_v39 = vsel %vm341_vm1, %v355_v36, 0.0 }
  0x9d   : > { %v345_v40 = vrot.slane %v344_v38, 4  ;;  %v359_v41 = vadd.f32 %v358_v37, %v357_v39 }
  0x9f   : > { %v346_v42 = vadd.f32 %v345_v40, %v344_v38  ;;  %v360_v43 = vrot.slane %v359_v41, 4 }
  0xa1   : > { %v347_v44 = vrot.slane %v346_v42, 2  ;;  %v361_v45 = vadd.f32 %v360_v43, %v359_v41 }
  0xa3   : > { %v348_v46 = vadd.f32 %v347_v44, %v346_v42  ;;  %v362_v47 = vrot.slane %v361_v45, 2 }
  0xa5   : > { %v349_v48 = vrot.slane %v348_v46, 1  ;;  %v363_v49 = vadd.f32 %v362_v47, %v361_v45 }
  0xa7   : > { %v350_v51 = vadd.f32 %v349_v48, %v348_v46  ;;  %v364_v52 = vrot.slane %v363_v49, 1 }
  0xa9   : > { %v351_v54 = vadd.f32 %v350_v51, %v340_v50  ;;  %v365_v55 = vadd.f32 %v364_v52, %v363_v49 }
  0xab   : > { %353 = vst.msk [vmem:[%s648_s25] sm:$0x1] %vm337_vm0, %v351_v54  ;;  %v366_v56 = vadd.f32 %v365_v55, %v354_v53 }
  0xad   : > { %367 = vst.msk [vmem:[%s654_s28] sm:$0x1] %vm337_vm0, %v366_v56 }
  0xae PF: > { %s15_s17 = sadd.s32 1, %s589_s17   ;;  %s688_s15 = smov %s585_s16 }
  0xaf   : > { %p12_p5 = scmp.ge.s32.totalorder %s15_s17, 4   ;;  %s689_s16 = smov %s691_s18 }
  0xb1   :  { %14 = sbr.rel (!%p12_p5) target bundleno = 2 (0x2), region = 89 }

// kernel: encoder_layer_leaf.10
= control target key start
LH: loop header
LB: loop body
LE: loop exit
PB: predicated region body
PF: predicated region fallthrough
CT: control target
= control target key end

     0   :  { %v47_v34 = vlaneseq  ;;  %v3864_v40 = vmov 1983009808   ;;  %vm2205_vm9 = vcmask 1041408   ;;  %vm3008_vm10 = vcmask 66560   ;;  %s5245_s4 = inlined_call_operand.vmem [shape: bf16[1024,512], index: 4, kind: input, shape index: {}]   ;;  %s5246_s2 = inlined_call_operand.vmem [shape: f32[1,1024], index: 2, kind: input, shape index: {}]   ;;  %s5247_s3 = inlined_call_operand.vmem [shape: f32[1,1024], index: 3, kind: input, shape index: {}]   ;;  %s5248_s0 = inlined_call_operand.vmem [shape: f32[2,1024], index: 0, kind: input, shape index: {}]   ;;  %s5249_s1 = inlined_call_operand.vmem [shape: f32[2,1024], index: 1, kind: input, shape index: {}]   ;;  %s5250_s7 = inlined_call_operand.vmem [shape: bf16[512,256], index: 7, kind: input, shape index: {}]   ;;  %s5251_s5 = inlined_call_operand.vmem [shape: f32[1,512], index: 5, kind: input, shape index: {}]   ;;  %s5252_s6 = inlined_call_operand.vmem [shape: f32[1,512], index: 6, kind: input, shape index: {}]   ;;  %s5253_s10 = inlined_call_operand.vmem [shape: f32[256,9], index: 10, kind: input, shape index: {}]   ;;  %s5254_s8 = inlined_call_operand.vmem [shape: f32[1,256], index: 8, kind: input, shape index: {}]   ;;  %s5255_s9 = inlined_call_operand.vmem [shape: f32[1,256], index: 9, kind: input, shape index: {}]   ;;  %s5256_s11 = inlined_call_operand.vmem [shape: f32[1,9], index: 11, kind: input, shape index: {}]   ;;  %s5257_s12 = inlined_call_operand.vmem [shape: f32[2,9], index: 12, kind: output, shape index: {}]  }
   0x1   :  { %v3372_v0 = vld [vmem:[%s5245_s4 + $0xe4] ss:$16 sps:$4 sm:$0xff]   ;;  %v3376_v2 = vld [vmem:[%s5245_s4 + $0xe0] ss:$16 sps:$4 sm:$0xff]   ;;  %v82_v41 = vunpack.c.l.s4 %v3864_v40 }
   0x2   :  { %v3374_v1 = vld [vmem:[%s5245_s4 + $0x2e4] ss:$16 sps:$4 sm:$0xff]   ;;  %1875 = vmatprep.subr.bf16.mxu0 %v3372_v0  ;;  %v3377_v3 = vld [vmem:[%s5245_s4 + $0x2e0] ss:$16 sps:$4 sm:$0xff]   ;;  %v48_v39 = vshrl.u32 %v47_v34, 7 }
   0x3   :  { %1916 = vmatprep.subr.bf16.mxu1 %v3374_v1  ;;  %v3378_v4 = vld [vmem:[%s5245_s4 + $0xc4] ss:$16 sps:$4 sm:$0xff]   ;;  %1876 = vmatpush1.bf16.msra.mxu0 %v3376_v2  ;;  %v3382_v6 = vld [vmem:[%s5245_s4 + $0xc0] ss:$16 sps:$4 sm:$0xff]   ;;  %v83_v47 = vunpack.c.0.s8 %v82_v41 }
   0x4   :  { %1917 = vmatpush1.bf16.msra.mxu1 %v3377_v3  ;;  %v3380_v5 = vld [vmem:[%s5245_s4 + $0x2c4] ss:$16 sps:$4 sm:$0xff]   ;;  %1877 = vmatprep.subr.bf16.mxu0 %v3378_v4  ;;  %v3383_v7 = vld [vmem:[%s5245_s4 + $0x2c0] ss:$16 sps:$4 sm:$0xff]   ;;  %v4057_v46 = vsub.s32 0, %v48_v39  ;;  %v4065_v50 = vsub.s32 1, %v48_v39 }
   0x5   :  { %1918 = vmatprep.subr.bf16.mxu1 %v3380_v5  ;;  %v3384_v8 = vld [vmem:[%s5245_s4 + $0xa4] ss:$16 sps:$4 sm:$0xff]   ;;  %v3388_v10 = vld [vmem:[%s5245_s4 + $0xa0] ss:$16 sps:$4 sm:$0xff]   ;;  %v4067_v51 = vsub.s32 2, %v48_v39  ;;  %v4072_v53 = vsub.s32 3, %v48_v39  ;;  %v4082_v56 = vsub.s32 %v83_v47, %v48_v39 }
   0x6   :  { %v3386_v9 = vld [vmem:[%s5245_s4 + $0x2a4] ss:$16 sps:$4 sm:$0xff]   ;;  %v3389_v11 = vld [vmem:[%s5245_s4 + $0x2a0] ss:$16 sps:$4 sm:$0xff]   ;;  %v4084_v57 = vsub.s32 4, %v48_v39  ;;  %v3865_v3 = vmov 0  }
   0x7   :  { %1878 = vmatpush1.bf16.msra.mxu0 %v3382_v6  ;;  %v3390_v12 = vld [vmem:[%s5245_s4 + $0x84] ss:$16 sps:$4 sm:$0xff]   ;;  %v3394_v14 = vld [vmem:[%s5245_s4 + $0x80] ss:$16 sps:$4 sm:$0xff]  }
   0x8   :  { %1919 = vmatpush1.bf16.msra.mxu1 %v3383_v7  ;;  %1879 = vmatprep.subr.bf16.mxu0 %v3384_v8  ;;  %v3392_v13 = vld [vmem:[%s5245_s4 + $0x284] ss:$16 sps:$4 sm:$0xff]   ;;  %v3395_v15 = vld [vmem:[%s5245_s4 + $0x280] ss:$16 sps:$4 sm:$0xff]  }
   0x9   :  { %1920 = vmatprep.subr.bf16.mxu1 %v3386_v9  ;;  %v3396_v16 = vld [vmem:[%s5245_s4 + $0x64] ss:$16 sps:$4 sm:$0xff]   ;;  %v3400_v18 = vld [vmem:[%s5245_s4 + $0x60] ss:$16 sps:$4 sm:$0xff]  }
   0xa   :  { %v3398_v17 = vld [vmem:[%s5245_s4 + $0x264] ss:$16 sps:$4 sm:$0xff]   ;;  %v3401_v19 = vld [vmem:[%s5245_s4 + $0x260] ss:$16 sps:$4 sm:$0xff]  }
   0xb   :  { %1880 = vmatpush1.bf16.msra.mxu0 %v3388_v10  ;;  %v3402_v20 = vld [vmem:[%s5245_s4 + $0x44] ss:$16 sps:$4 sm:$0xff]   ;;  %v3406_v22 = vld [vmem:[%s5245_s4 + $0x40] ss:$16 sps:$4 sm:$0xff]   ;;  %v4122_v10 = vsub.s32 5, %v48_v39 }
   0xc   :  { %1921 = vmatpush1.bf16.msra.mxu1 %v3389_v11  ;;  %1881 = vmatprep.subr.bf16.mxu0 %v3390_v12  ;;  %v3404_v21 = vld [vmem:[%s5245_s4 + $0x244] ss:$16 sps:$4 sm:$0xff]   ;;  %v3407_v23 = vld [vmem:[%s5245_s4 + $0x240] ss:$16 sps:$4 sm:$0xff]  }
   0xd   :  { %1922 = vmatprep.subr.bf16.mxu1 %v3392_v13  ;;  %v3408_v24 = vld [vmem:[%s5245_s4 + $0x24] ss:$16 sps:$4 sm:$0xff]   ;;  %v3412_v26 = vld [vmem:[%s5245_s4 + $0x20] ss:$16 sps:$4 sm:$0xff]  }
   0xe   :  { %v3410_v25 = vld [vmem:[%s5245_s4 + $0x224] ss:$16 sps:$4 sm:$0xff]   ;;  %v3413_v27 = vld [vmem:[%s5245_s4 + $0x220] ss:$16 sps:$4 sm:$0xff]  }
   0xf   :  { %1882 = vmatpush1.bf16.msra.mxu0 %v3394_v14  ;;  %v3414_v28 = vld [vmem:[%s5245_s4 + $0x4] ss:$16 sps:$4 sm:$0xff]   ;;  %v3418_v30 = vld [vmem:[%s5245_s4] ss:$16 sps:$4 sm:$0xff]   ;;  %v4127_v14 = vsub.s32 6, %v48_v39 }
  0x10   :  { %1923 = vmatpush1.bf16.msra.mxu1 %v3395_v15  ;;  %1883 = vmatprep.subr.bf16.mxu0 %v3396_v16  ;;  %v3416_v29 = vld [vmem:[%s5245_s4 + $0x204] ss:$16 sps:$4 sm:$0xff]   ;;  %v3419_v31 = vld [vmem:[%s5245_s4 + $0x200] ss:$16 sps:$4 sm:$0xff]   ;;  %v4129_v15 = vsub.s32 7, %v48_v39 }
  0x11   :  { %1924 = vmatprep.subr.bf16.mxu1 %v3398_v17  ;;  %v3420_v32 = vld [vmem:[%s5245_s4 + $0x1e4] ss:$16 sps:$4 sm:$0xff]   ;;  %v3424_v35 = vld [vmem:[%s5245_s4 + $0x1e0] ss:$16 sps:$4 sm:$0xff]  }
  0x12   :  { %v3422_v33 = vld [vmem:[%s5245_s4 + $0x3e4] ss:$16 sps:$4 sm:$0xff]   ;;  %v3425_v36 = vld [vmem:[%s5245_s4 + $0x3e0] ss:$16 sps:$4 sm:$0xff]  }
  0x13   :  { %1884 = vmatpush1.bf16.msra.mxu0 %v3400_v18  ;;  %v3426_v37 = vld [vmem:[%s5245_s4 + $0x1c4] ss:$16 sps:$4 sm:$0xff]   ;;  %v3430_v42 = vld [vmem:[%s5245_s4 + $0x1c0] ss:$16 sps:$4 sm:$0xff]  }
  0x14   :  { %1925 = vmatpush1.bf16.msra.mxu1 %v3401_v19  ;;  %1885 = vmatprep.subr.bf16.mxu0 %v3402_v20  ;;  %v3428_v38 = vld [vmem:[%s5245_s4 + $0x3c4] ss:$16 sps:$4 sm:$0xff]   ;;  %v3431_v43 = vld [vmem:[%s5245_s4 + $0x3c0] ss:$16 sps:$4 sm:$0xff]  }
  0x15   :  { %1926 = vmatprep.subr.bf16.mxu1 %v3404_v21  ;;  %v3432_v44 = vld [vmem:[%s5245_s4 + $0x1a4] ss:$16 sps:$4 sm:$0xff]   ;;  %v3436_v48 = vld [vmem:[%s5245_s4 + $0x1a0] ss:$16 sps:$4 sm:$0xff]  }
  0x16   :  { %v3434_v45 = vld [vmem:[%s5245_s4 + $0x3a4] ss:$16 sps:$4 sm:$0xff]   ;;  %v3437_v49 = vld [vmem:[%s5245_s4 + $0x3a0] ss:$16 sps:$4 sm:$0xff]  }
  0x17   :  { %1886 = vmatpush1.bf16.msra.mxu0 %v3406_v22  ;;  %v3438_v52 = vld [vmem:[%s5245_s4 + $0x184] ss:$16 sps:$4 sm:$0xff]   ;;  %v3442_v62 = vld [vmem:[%s5245_s4 + $0x180] ss:$16 sps:$4 sm:$0xff]  }
  0x18   :  { %1927 = vmatpush1.bf16.msra.mxu1 %v3407_v23  ;;  %1887 = vmatprep.subr.bf16.mxu0 %v3408_v24  ;;  %v3440_v54 = vld [vmem:[%s5245_s4 + $0x384] ss:$16 sps:$4 sm:$0xff]   ;;  %v3443_v63 = vld [vmem:[%s5245_s4 + $0x380] ss:$16 sps:$4 sm:$0xff]  }
  0x19   :  { %1928 = vmatprep.subr.bf16.mxu1 %v3410_v25  ;;  %v4080_v55 = vld [vmem:[%s5246_s2] sm:$0xff] }
  0x1a   :  { %v4089_v58 = vld [vmem:[%s5247_s3] sm:$0xff]  ;;  %vm43_vm0 = vcmp.ge.f32.partialorder %v4080_v55, 0.0  ;;  %v50_v59 = vrot.slane %v4080_v55, %v4057_v46  ;;  %v54_v60 = vrot.slane %v4080_v55, %v4065_v50  ;;  %v58_v61 = vrot.slane %v4080_v55, %v4067_v51 }
  0x1b   :  { %1888 = vmatpush1.bf16.msra.mxu0 %v3412_v26  ;;  %v62_v0 = vrot.slane %v4080_v55, %v4072_v53  ;;  %v121_v1 = vrot.slane %v4089_v58, %v4057_v46  ;;  %v125_v2 = vrot.slane %v4089_v58, %v4065_v50  ;;  %v4110_v4 = vsel %vm43_vm0, 1, %v3865_v3  ;;  %v3444_v5 = vld [vmem:[%s5245_s4 + $0x164] ss:$16 sps:$4 sm:$0xff]   ;;  %v3448_v11 = vld [vmem:[%s5245_s4 + $0x160] ss:$16 sps:$4 sm:$0xff]  }
  0x1c   :  { %1929 = vmatpush1.bf16.msra.mxu1 %v3413_v27  ;;  %1889 = vmatprep.subr.bf16.mxu0 %v3414_v28  ;;  %v3446_v6 = vld [vmem:[%s5245_s4 + $0x364] ss:$16 sps:$4 sm:$0xff]   ;;  %v79_v7 = vcombine.low %v50_v59, %v54_v60  ;;  %v129_v8 = vrot.slane %v4089_v58, %v4067_v51  ;;  %v133_v9 = vrot.slane %v4089_v58, %v4072_v53  ;;  %v3449_v16 = vld [vmem:[%s5245_s4 + $0x360] ss:$16 sps:$4 sm:$0xff]  }
  0x1d   :  { %1930 = vmatprep.subr.bf16.mxu1 %v3416_v29  ;;  %v80_v12 = vcombine.low %v58_v61, %v62_v0  ;;  %v150_v13 = vcombine.low %v121_v1, %v125_v2  ;;  %v202_v19 = vrot.slane %v4110_v4, %v4065_v50  ;;  %v3450_v20 = vld [vmem:[%s5245_s4 + $0x144] ss:$16 sps:$4 sm:$0xff]   ;;  %v198_v25 = vrot.slane %v4110_v4, %v4057_v46  ;;  %v3454_v34 = vld [vmem:[%s5245_s4 + $0x140] ss:$16 sps:$4 sm:$0xff]   ;;  %v45_v2 = vld [vmem:[%s5248_s0 + $0x8] sm:$0xff] }
  0x1e   :  { %v87_v17 = vrot.slane %v79_v7, %v4082_v56  ;;  %v151_v18 = vcombine.low %v129_v8, %v133_v9  ;;  %v3452_v21 = vld [vmem:[%s5245_s4 + $0x344] ss:$16 sps:$4 sm:$0xff]   ;;  %v206_v28 = vrot.slane %v4110_v4, %v4067_v51  ;;  %v66_v29 = vrot.slane %v4080_v55, %v4084_v57  ;;  %v3455_v39 = vld [vmem:[%s5245_s4 + $0x340] ss:$16 sps:$4 sm:$0xff]   ;;  %v189_v7 = vld [vmem:[%s5249_s1 + $0x8] sm:$0xff] }
  0x1f   :  { %1890 = vmatpush1.bf16.msra.mxu0 %v3418_v30  ;;  %v44_v22 = vld [vmem:[%s5248_s0] sm:$0xff]  ;;  %v94_v23 = vrot.slane %v80_v12, %v4082_v56  ;;  %v158_v24 = vrot.slane %v150_v13, %v4082_v56  ;;  %v149_v47 = vrot.slane %v4089_v58, %v4129_v15  ;;  %vm4196_vm1 = vcmp.eq.s32.totalorder %v202_v19, 1 }
  0x20   :  { %1931 = vmatpush1.bf16.msra.mxu1 %v3419_v31  ;;  %1891 = vmatprep.subr.bf16.mxu0 %v3420_v32  ;;  %v165_v26 = vrot.slane %v151_v18, %v4082_v56  ;;  %v188_v27 = vld [vmem:[%s5249_s1] sm:$0xff]  ;;  %v70_v31 = vrot.slane %v4080_v55, %v4122_v10  ;;  %v74_v32 = vrot.slane %v4080_v55, %v4127_v14  ;;  %vm227_vm2 = vcmp.eq.s32.totalorder %v198_v25, 1 }
  0x21   :  { %1932 = vmatprep.subr.bf16.mxu1 %v3422_v33  ;;  %v95_v30 = vcombine.low %v87_v17, %v94_v23  ;;  %v78_v33 = vrot.slane %v4080_v55, %v4129_v15  ;;  %v3456_v40 = vld [vmem:[%s5245_s4 + $0x124] ss:$16 sps:$4 sm:$0xff]   ;;  %v210_v55 = vrot.slane %v4110_v4, %v4072_v53  ;;  %v3461_v60 = vld [vmem:[%s5245_s4 + $0x320] ss:$16 sps:$4 sm:$0xff]   ;;  %vm4213_vm3 = vcmp.eq.s32.totalorder %v206_v28, 1 }
  0x22   :  { %v3464_v1 = vld [vmem:[%s5245_s4 + $0x304] ss:$16 sps:$4 sm:$0xff]   ;;  %v218_v18 = vrot.slane %v4110_v4, %v4122_v10  ;;  %v3466_v19 = vld [vmem:[%s5245_s4 + $0x100] ss:$16 sps:$4 sm:$0xff]  }
  0x23   :  { %1892 = vmatpush2.bf16.msra.mxu0 %v3424_v35  ;;  %v166_v35 = vcombine.low %v158_v24, %v165_v26  ;;  %v115_v41 = vmul.f32 %v95_v30, %v44_v22  ;;  %v3467_v24 = vld [vmem:[%s5245_s4 + $0x300] ss:$16 sps:$4 sm:$0xff]   ;;  %vm230_vm4 = vcmp.eq.s32.totalorder %v210_v55, 1  ;;  %v3470_v26 = vld [vmem:[%s5245_s4 + $0x4e4] ss:$16 sps:$4 sm:$0xff]  }
  0x24   :  { %1933 = vmatpush2.bf16.msra.mxu1 %v3425_v36  ;;  %1893 = vmatprep.subr.bf16.mxu0 %v3426_v37  ;;  %v137_v36 = vrot.slane %v4089_v58, %v4084_v57  ;;  %v141_v37 = vrot.slane %v4089_v58, %v4122_v10  ;;  %vm232_vm5 = vcmp.eq.s32.totalorder %v218_v18, 1  ;;  %v3489_v9 = vld [vmem:[%s5245_s4 + $0x680] ss:$16 sps:$4 sm:$0xff]   ;;  %v3503_v18 = vld [vmem:[%s5245_s4 + $0x644] ss:$16 sps:$4 sm:$0xff]  }
  0x25   :  { %1934 = vmatprep.subr.bf16.mxu1 %v3428_v38  ;;  %v145_v38 = vrot.slane %v4089_v58, %v4127_v14  ;;  %v3462_v58 = vld [vmem:[%s5245_s4 + $0x104] ss:$16 sps:$4 sm:$0xff]  }
  0x27   :  { %1894 = vmatpush2.bf16.msra.mxu0 %v3430_v42  ;;  %v190_v42 = vmul.f32 %v188_v27, %v95_v30 }
  0x28   :  { %1935 = vmatpush2.bf16.msra.mxu1 %v3431_v43  ;;  %1895 = vmatprep.subr.bf16.mxu0 %v3432_v44  ;;  %v96_v43 = vcombine.low %v66_v29, %v70_v31  ;;  %v3458_v44 = vld [vmem:[%s5245_s4 + $0x324] ss:$16 sps:$4 sm:$0xff]  }
  0x29   :  { %1936 = vmatprep.subr.bf16.mxu1 %v3434_v45  ;;  %v97_v45 = vcombine.low %v74_v32, %v78_v33  ;;  %v3473_v31 = vld [vmem:[%s5245_s4 + $0x6e4] ss:$16 sps:$4 sm:$0xff]  }
  0x2a   :  { %v104_v59 = vrot.slane %v96_v43, %v4082_v56 }
  0x2b   :  { %1896 = vmatpush2.bf16.msra.mxu0 %v3436_v48  ;;  %v167_v48 = vcombine.low %v137_v36, %v141_v37 }
  0x2c   :  { %1937 = vmatpush2.bf16.msra.mxu1 %v3437_v49  ;;  %1897 = vmatprep.subr.bf16.mxu0 %v3438_v52  ;;  %v3460_v49 = vld [vmem:[%s5245_s4 + $0x120] ss:$16 sps:$4 sm:$0xff]   ;;  %v186_v52 = vadd.f32 %v166_v35, %v115_v41 }
  0x2d   :  { %1938 = vmatprep.subr.bf16.mxu1 %v3440_v54  ;;  %v192_v54 = vadd.f32 %v190_v42, %v166_v35  ;;  %v175_v0 = vrot.slane %v167_v48, %v4082_v56  ;;  %v214_v35 = vrot.slane %v4110_v4, %v4084_v57  ;;  %v3471_v41 = vld [vmem:[%s5245_s4 + $0x6e0] ss:$16 sps:$4 sm:$0xff]   ;;  %v3476_v42 = vld [vmem:[%s5245_s4 + $0x4c4] ss:$16 sps:$4 sm:$0xff]  }
  0x2e   :  { %v244_v3 = vrot.slane %v186_v52, %v4082_v56 }
  0x2f   :  { %1898 = vmatpush2.bf16.msra.mxu0 %v3442_v62  ;;  %v111_v62 = vrot.slane %v97_v45, %v4082_v56  ;;  %v281_v8 = vcombine.high %v192_v54, %v192_v54  ;;  %v3479_v45 = vld [vmem:[%s5245_s4 + $0x6c4] ss:$16 sps:$4 sm:$0xff]   ;;  %vm231_vm7 = vcmp.eq.s32.totalorder %v214_v35, 1 }
  0x30   :  { %1939 = vmatpush2.bf16.msra.mxu1 %v3443_v63  ;;  %1899 = vmatprep.subr.bf16.mxu0 %v3444_v5  ;;  %v168_v63 = vcombine.low %v145_v38, %v149_v47  ;;  %v288_v5 = vrot.slane %v192_v54, %v4082_v56  ;;  %v252_v13 = vcombine.high %v244_v3, %v244_v3  ;;  %v3474_v54 = vld [vmem:[%s5245_s4 + $0x4c0] ss:$16 sps:$4 sm:$0xff]  }
  0x31   :  { %1940 = vmatprep.subr.bf16.mxu1 %v3446_v6  ;;  %v237_v6 = vcombine.high %v186_v52, %v186_v52 }
  0x32   :  { %v182_v12 = vrot.slane %v168_v63, %v4082_v56 }
  0x33   :  { %1900 = vmatpush2.bf16.msra.mxu0 %v3448_v11  ;;  %v112_v11 = vcombine.low %v104_v59, %v111_v62  ;;  %v251_v17 = vrot.slane %v237_v6, %v4082_v56  ;;  %v3485_v62 = vld [vmem:[%s5245_s4 + $0x6a4] ss:$16 sps:$4 sm:$0xff]  }
  0x34   :  { %1941 = vmatpush2.bf16.msra.mxu1 %v3449_v16  ;;  %1901 = vmatprep.subr.bf16.mxu0 %v3450_v20  ;;  %v296_v16 = vcombine.high %v288_v5, %v288_v5  ;;  %v295_v20 = vrot.slane %v281_v8, %v4082_v56  ;;  %v183_v23 = vcombine.low %v175_v0, %v182_v12  ;;  %v3486_v8 = vld [vmem:[%s5245_s4 + $0x480] ss:$16 sps:$4 sm:$0xff]   ;;  %v3497_v12 = vld [vmem:[%s5245_s4 + $0x664] ss:$16 sps:$4 sm:$0xff]  }
  0x35   :  { %1942 = vmatprep.subr.bf16.mxu1 %v3452_v21  ;;  %v323_v21 = vsel %vm227_vm2, %v244_v3, %v288_v5  ;;  %v116_v22 = vmul.f32 %v112_v11, %v45_v2  ;;  %v253_v10 = vcombine.high %v251_v17, %v251_v17  ;;  %v191_v27 = vmul.f32 %v189_v7, %v112_v11  ;;  %v3483_v3 = vld [vmem:[%s5245_s4 + $0x6a0] ss:$16 sps:$4 sm:$0xff]   ;;  %v3488_v5 = vld [vmem:[%s5245_s4 + $0x484] ss:$16 sps:$4 sm:$0xff]  }
  0x36   :  { %v324_v25 = vsel %vm4196_vm1, %v252_v13, %v296_v16  ;;  %v297_v29 = vcombine.high %v295_v20, %v295_v20  ;;  %v325_v30 = vsel %vm4213_vm3, %v251_v17, %v295_v20  ;;  %v4245_v37 = vpack.c.bf16 %v323_v21, %v323_v21  ;;  %v3491_v7 = vld [vmem:[%s5245_s4 + $0x684] ss:$16 sps:$4 sm:$0xff]   ;;  %v3492_v13 = vld [vmem:[%s5245_s4 + $0x460] ss:$16 sps:$4 sm:$0xff]  }
  0x37   :  { %1902 = vmatpush2.bf16.msra.mxu0 %v3454_v34  ;;  %v4233_v28 = vpack.c.bf16 %v324_v25, %v324_v25  ;;  %v187_v32 = vadd.f32 %v183_v23, %v116_v22  ;;  %v193_v33 = vadd.f32 %v191_v27, %v183_v23  ;;  %v226_v34 = vrot.slane %v4110_v4, %v4129_v15  ;;  %v3494_v11 = vld [vmem:[%s5245_s4 + $0x464] ss:$16 sps:$4 sm:$0xff]   ;;  %v3495_v16 = vld [vmem:[%s5245_s4 + $0x660] ss:$16 sps:$4 sm:$0xff]  }
  0x38   :  { %1943 = vmatpush2.bf16.msra.mxu1 %v3455_v39  ;;  %1903 = vmatprep.subr.bf16.mxu0 %v3456_v40  ;;  %v326_v36 = vsel %vm230_vm4, %v253_v10, %v297_v29  ;;  %v4247_v38 = vpack.c.bf16 %v325_v30, %v325_v30  ;;  %v3468_v39 = vld [vmem:[%s5245_s4 + $0x4e0] ss:$16 sps:$4 sm:$0xff]   ;;  %v222_v40 = vrot.slane %v4110_v4, %v4127_v14  ;;  %v3500_v17 = vld [vmem:[%s5245_s4 + $0x444] ss:$16 sps:$4 sm:$0xff]   ;;  %v3566_v4 = vld [vmem:[%s5245_s4 + $0xec] ss:$16 sps:$4 sm:$0xff]  }
  0x39   :  { %1944 = vmatprep.subr.bf16.mxu1 %v3458_v44  ;;  %1907 = vmatprep.mubr.bf16.mxu0 %v4233_v28  ;;  %v4254_v15 = vpack.c.bf16 %v326_v36, %v326_v36  ;;  %v4263_v43 = vrot.slane %v187_v32, %v4082_v56  ;;  %v4266_v44 = vrot.slane %v193_v33, %v4082_v56  ;;  %vm234_vm6 = vcmp.eq.s32.totalorder %v226_v34, 1  ;;  %v3501_v20 = vld [vmem:[%s5245_s4 + $0x640] ss:$16 sps:$4 sm:$0xff]   ;;  %v3506_v21 = vld [vmem:[%s5245_s4 + $0x424] ss:$16 sps:$4 sm:$0xff]  }
  0x3a   :  { %v254_v47 = vcombine.high %v187_v32, %v187_v32  ;;  %v298_v48 = vcombine.high %v193_v33, %v193_v33  ;;  %v3509_v22 = vld [vmem:[%s5245_s4 + $0x624] ss:$16 sps:$4 sm:$0xff]   ;;  %v3504_v23 = vld [vmem:[%s5245_s4 + $0x420] ss:$16 sps:$4 sm:$0xff]   ;;  %vm233_vm8 = vcmp.eq.s32.totalorder %v222_v40, 1 }
  0x3b   :  { %1904 = vmatpush2.bf16.msra.mxu0 %v3460_v49  ;;  %1948 = vmatprep.mubr.bf16.mxu1 %v4254_v15  ;;  %v269_v49 = vcombine.high %v4263_v43, %v4263_v43  ;;  %v313_v52 = vcombine.high %v4266_v44, %v4266_v44  ;;  %v3512_v25 = vld [vmem:[%s5245_s4 + $0x404] ss:$16 sps:$4 sm:$0xff]   ;;  %v3513_v27 = vld [vmem:[%s5245_s4 + $0x600] ss:$16 sps:$4 sm:$0xff]   ;;  %v3569_v14 = vld [vmem:[%s5245_s4 + $0x2ec] ss:$16 sps:$4 sm:$0xff]  }
  0x3c   :  { %1945 = vmatpush2.bf16.msra.mxu1 %v3461_v60  ;;  %1905 = vmatprep.subr.bf16.mxu0 %v3462_v58  ;;  %v4282_v55 = vrot.slane %v254_v47, %v4082_v56  ;;  %v4285_v59 = vrot.slane %v298_v48, %v4082_v56  ;;  %v3477_v60 = vld [vmem:[%s5245_s4 + $0x6c0] ss:$16 sps:$4 sm:$0xff]   ;;  %v3482_v58 = vld [vmem:[%s5245_s4 + $0x4a4] ss:$16 sps:$4 sm:$0xff]  }
  0x3d   :  { %1946 = vmatprep.subr.bf16.mxu1 %v3464_v1  ;;  %v328_v61 = vsel %vm232_vm5, %v269_v49, %v313_v52  ;;  %v3480_v1 = vld [vmem:[%s5245_s4 + $0x4a0] ss:$16 sps:$4 sm:$0xff]   ;;  %v3515_v10 = vld [vmem:[%s5245_s4 + $0x604] ss:$16 sps:$4 sm:$0xff]  }
  0x3e   :  { %v4296_v56 = vpack.c.bf16 %v328_v61, %v328_v61  ;;  %v270_v63 = vcombine.high %v4282_v55, %v4282_v55  ;;  %v314_v0 = vcombine.high %v4285_v59, %v4285_v59  ;;  %v3518_v29 = vld [vmem:[%s5245_s4 + $0x5e4] ss:$16 sps:$4 sm:$0xff]   ;;  %v3519_v32 = vld [vmem:[%s5245_s4 + $0x7e0] ss:$16 sps:$4 sm:$0xff]   ;;  %v329_v57 = vsel %vm233_vm8, %v4282_v55, %v4285_v59  ;;  %v3572_v55 = vld [vmem:[%s5245_s4 + $0xcc] ss:$16 sps:$4 sm:$0xff]  }
  0x3f   :  { %1906 = vmatpush2.bf16.msra.mxu0 %v3466_v19  ;;  %v3498_v19 = vld [vmem:[%s5245_s4 + $0x440] ss:$16 sps:$4 sm:$0xff]   ;;  %v3521_v30 = vld [vmem:[%s5245_s4 + $0x7e4] ss:$16 sps:$4 sm:$0xff]   ;;  %v4486_v40 = vpack.c.bf16 %v329_v57, %v329_v57  ;;  %v3575_v59 = vld [vmem:[%s5245_s4 + $0x2cc] ss:$16 sps:$4 sm:$0xff]  }
  0x40   :  { %1947 = vmatpush2.bf16.msra.mxu1 %v3467_v24  ;;  %1957 = vmatprep.subr.bf16.mxu0 %v3470_v26  ;;  %v330_v2 = vsel %vm234_vm6, %v270_v63, %v314_v0  ;;  %v3507_v24 = vld [vmem:[%s5245_s4 + $0x620] ss:$16 sps:$4 sm:$0xff]   ;;  %v3524_v33 = vld [vmem:[%s5245_s4 + $0x5c4] ss:$16 sps:$4 sm:$0xff]   ;;  %v3647_v57 = vld [vmem:[%s5245_s4 + $0x34c] ss:$16 sps:$4 sm:$0xff]  }
  0x41   :  { %1998 = vmatprep.subr.bf16.mxu1 %v3473_v31  ;;  %v4312_v6 = vpack.c.bf16 %v330_v2, %v330_v2  ;;  %v3510_v26 = vld [vmem:[%s5245_s4 + $0x400] ss:$16 sps:$4 sm:$0xff]   ;;  %v3527_v34 = vld [vmem:[%s5245_s4 + $0x7c4] ss:$16 sps:$4 sm:$0xff]  }
  0x42   :  { %1908 = vmatmul.mubr.bf16.vlgmr.msra.gmra.mxu0 %v4245_v37  ;;  %v3516_v31 = vld [vmem:[%s5245_s4 + $0x5e0] ss:$16 sps:$4 sm:$0xff]   ;;  %v3536_v48 = vld [vmem:[%s5245_s4 + $0x584] ss:$16 sps:$4 sm:$0xff]  }
  0x43   :  { %1949 = vmatmul.mubr.bf16.vlgmr.msra.gmra.mxu1 %v4247_v38  ;;  %1958 = vmatpush1.bf16.msra.mxu0 %v3468_v39  ;;  %v3522_v36 = vld [vmem:[%s5245_s4 + $0x5c0] ss:$16 sps:$4 sm:$0xff]   ;;  %v3539_v49 = vld [vmem:[%s5245_s4 + $0x784] ss:$16 sps:$4 sm:$0xff]  }
  0x44   :  { %1999 = vmatpush1.bf16.msra.mxu1 %v3471_v41  ;;  %1959 = vmatprep.subr.bf16.mxu0 %v3476_v42  ;;  %v3525_v39 = vld [vmem:[%s5245_s4 + $0x7c0] ss:$16 sps:$4 sm:$0xff]   ;;  %v3530_v41 = vld [vmem:[%s5245_s4 + $0x5a4] ss:$16 sps:$4 sm:$0xff]  }
  0x45   :  { %2000 = vmatprep.subr.bf16.mxu1 %v3479_v45  ;;  %1989 = vmatprep.mubr.bf16.mxu0 %v4296_v56  ;;  %v3533_v42 = vld [vmem:[%s5245_s4 + $0x7a4] ss:$16 sps:$4 sm:$0xff]   ;;  %v3528_v45 = vld [vmem:[%s5245_s4 + $0x5a0] ss:$16 sps:$4 sm:$0xff]  }
  0x46   :  { %2030 = vmatprep.mubr.bf16.mxu1 %v4312_v6  ;;  %v3531_v47 = vld [vmem:[%s5245_s4 + $0x7a0] ss:$16 sps:$4 sm:$0xff]   ;;  %v3548_v63 = vld [vmem:[%s5245_s4 + $0x544] ss:$16 sps:$4 sm:$0xff]  }
  0x47   :  { %1960 = vmatpush1.bf16.msra.mxu0 %v3474_v54  ;;  %v3534_v52 = vld [vmem:[%s5245_s4 + $0x580] ss:$16 sps:$4 sm:$0xff]   ;;  %v3551_v0 = vld [vmem:[%s5245_s4 + $0x744] ss:$16 sps:$4 sm:$0xff]  }
  0x48   :  { %2001 = vmatpush1.bf16.msra.mxu1 %v3477_v60  ;;  %1961 = vmatprep.subr.bf16.mxu0 %v3482_v58  ;;  %v3537_v54 = vld [vmem:[%s5245_s4 + $0x780] ss:$16 sps:$4 sm:$0xff]   ;;  %v3542_v60 = vld [vmem:[%s5245_s4 + $0x564] ss:$16 sps:$4 sm:$0xff]  }
  0x49   :  { %2002 = vmatprep.subr.bf16.mxu1 %v3485_v62  ;;  %v3545_v58 = vld [vmem:[%s5245_s4 + $0x764] ss:$16 sps:$4 sm:$0xff]   ;;  %v3540_v61 = vld [vmem:[%s5245_s4 + $0x560] ss:$16 sps:$4 sm:$0xff]  }
  0x4a   :  { %v3543_v62 = vld [vmem:[%s5245_s4 + $0x760] ss:$16 sps:$4 sm:$0xff]  }
  0x4b   :  { %1962 = vmatpush1.bf16.msra.mxu0 %v3480_v1  ;;  %v3546_v1 = vld [vmem:[%s5245_s4 + $0x540] ss:$16 sps:$4 sm:$0xff]  }
  0x4c   :  { %2003 = vmatpush1.bf16.msra.mxu1 %v3483_v3  ;;  %1963 = vmatprep.subr.bf16.mxu0 %v3488_v5  ;;  %v3549_v2 = vld [vmem:[%s5245_s4 + $0x740] ss:$16 sps:$4 sm:$0xff]   ;;  %v3554_v3 = vld [vmem:[%s5245_s4 + $0x524] ss:$16 sps:$4 sm:$0xff]  }
  0x4d   :  { %2004 = vmatprep.subr.bf16.mxu1 %v3491_v7  ;;  %v3557_v5 = vld [vmem:[%s5245_s4 + $0x724] ss:$16 sps:$4 sm:$0xff]   ;;  %v3552_v7 = vld [vmem:[%s5245_s4 + $0x520] ss:$16 sps:$4 sm:$0xff]  }
  0x4f   :  { %1964 = vmatpush1.bf16.msra.mxu0 %v3486_v8  ;;  %v3555_v8 = vld [vmem:[%s5245_s4 + $0x720] ss:$16 sps:$4 sm:$0xff]  }
  0x50   :  { %2005 = vmatpush1.bf16.msra.mxu1 %v3489_v9  ;;  %1965 = vmatprep.subr.bf16.mxu0 %v3494_v11  ;;  %v3560_v9 = vld [vmem:[%s5245_s4 + $0x504] ss:$16 sps:$4 sm:$0xff]  }
  0x51   :  { %2006 = vmatprep.subr.bf16.mxu1 %v3497_v12  ;;  %v3563_v11 = vld [vmem:[%s5245_s4 + $0x704] ss:$16 sps:$4 sm:$0xff]   ;;  %v3558_v12 = vld [vmem:[%s5245_s4 + $0x500] ss:$16 sps:$4 sm:$0xff]  }
  0x53   :  { %1966 = vmatpush1.bf16.msra.mxu0 %v3492_v13  ;;  %v3561_v13 = vld [vmem:[%s5245_s4 + $0x700] ss:$16 sps:$4 sm:$0xff]  }
  0x54   :  { %2007 = vmatpush1.bf16.msra.mxu1 %v3495_v16  ;;  %1967 = vmatprep.subr.bf16.mxu0 %v3500_v17  ;;  %v327_v16 = vsel %vm231_vm7, %v4263_v43, %v4266_v44  ;;  %v3564_v43 = vld [vmem:[%s5245_s4 + $0xe8] ss:$16 sps:$4 sm:$0xff]  }
  0x55   :  { %2008 = vmatprep.subr.bf16.mxu1 %v3503_v18  ;;  %v4484_v35 = vpack.c.bf16 %v327_v16, %v327_v16  ;;  %v3567_v44 = vld [vmem:[%s5245_s4 + $0x2e8] ss:$16 sps:$4 sm:$0xff]   ;;  %v3644_v16 = vld [vmem:[%s5245_s4 + $0x14c] ss:$16 sps:$4 sm:$0xff]  }
  0x56   :  { %v3570_v17 = vld [vmem:[%s5245_s4 + $0xc8] ss:$16 sps:$4 sm:$0xff]  }
  0x57   :  { %1968 = vmatpush1.bf16.msra.mxu0 %v3498_v19  ;;  %v3573_v18 = vld [vmem:[%s5245_s4 + $0x2c8] ss:$16 sps:$4 sm:$0xff]   ;;  %v3578_v19 = vld [vmem:[%s5245_s4 + $0xac] ss:$16 sps:$4 sm:$0xff]  }
  0x58   :  { %2009 = vmatpush1.bf16.msra.mxu1 %v3501_v20  ;;  %1969 = vmatprep.subr.bf16.mxu0 %v3506_v21  ;;  %v3581_v20 = vld [vmem:[%s5245_s4 + $0x2ac] ss:$16 sps:$4 sm:$0xff]   ;;  %v3576_v21 = vld [vmem:[%s5245_s4 + $0xa8] ss:$16 sps:$4 sm:$0xff]  }
  0x59   :  { %2010 = vmatprep.subr.bf16.mxu1 %v3509_v22  ;;  %v3579_v22 = vld [vmem:[%s5245_s4 + $0x2a8] ss:$16 sps:$4 sm:$0xff]  }
  0x5b   :  { %1970 = vmatpush1.bf16.msra.mxu0 %v3504_v23  ;;  %v3584_v23 = vld [vmem:[%s5245_s4 + $0x8c] ss:$16 sps:$4 sm:$0xff]  }
  0x5c   :  { %2011 = vmatpush1.bf16.msra.mxu1 %v3507_v24  ;;  %1971 = vmatprep.subr.bf16.mxu0 %v3512_v25  ;;  %v3585_v24 = vld [vmem:[%s5245_s4 + $0x288] ss:$16 sps:$4 sm:$0xff]   ;;  %v3590_v25 = vld [vmem:[%s5245_s4 + $0x6c] ss:$16 sps:$4 sm:$0xff]  }
  0x5d   :  { %2012 = vmatprep.subr.bf16.mxu1 %v3515_v10  ;;  %v3593_v10 = vld [vmem:[%s5245_s4 + $0x26c] ss:$16 sps:$4 sm:$0xff]  }
  0x5f   :  { %1972 = vmatpush1.bf16.msra.mxu0 %v3510_v26  ;;  %v3588_v26 = vld [vmem:[%s5245_s4 + $0x68] ss:$16 sps:$4 sm:$0xff]  }
  0x60   :  { %2013 = vmatpush1.bf16.msra.mxu1 %v3513_v27  ;;  %1973 = vmatprep.subr.bf16.mxu0 %v3518_v29  ;;  %v3591_v27 = vld [vmem:[%s5245_s4 + $0x268] ss:$16 sps:$4 sm:$0xff]   ;;  %v3596_v29 = vld [vmem:[%s5245_s4 + $0x4c] ss:$16 sps:$4 sm:$0xff]  }
  0x61   :  { %2014 = vmatprep.subr.bf16.mxu1 %v3521_v30  ;;  %v3599_v30 = vld [vmem:[%s5245_s4 + $0x24c] ss:$16 sps:$4 sm:$0xff]  }
  0x63   :  { %1974 = vmatpush2.bf16.msra.mxu0 %v3516_v31  ;;  %v3594_v31 = vld [vmem:[%s5245_s4 + $0x48] ss:$16 sps:$4 sm:$0xff]  }
  0x64   :  { %2015 = vmatpush2.bf16.msra.mxu1 %v3519_v32  ;;  %1975 = vmatprep.subr.bf16.mxu0 %v3524_v33  ;;  %v3597_v32 = vld [vmem:[%s5245_s4 + $0x248] ss:$16 sps:$4 sm:$0xff]   ;;  %v3602_v33 = vld [vmem:[%s5245_s4 + $0x2c] ss:$16 sps:$4 sm:$0xff]  }
  0x65   :  { %2016 = vmatprep.subr.bf16.mxu1 %v3527_v34  ;;  %v3605_v34 = vld [vmem:[%s5245_s4 + $0x22c] ss:$16 sps:$4 sm:$0xff]  }
  0x67   :  { %1976 = vmatpush2.bf16.msra.mxu0 %v3522_v36  ;;  %v3600_v36 = vld [vmem:[%s5245_s4 + $0x28] ss:$16 sps:$4 sm:$0xff]  }
  0x68   :  { %2017 = vmatpush2.bf16.msra.mxu1 %v3525_v39  ;;  %1977 = vmatprep.subr.bf16.mxu0 %v3530_v41  ;;  %v3603_v39 = vld [vmem:[%s5245_s4 + $0x228] ss:$16 sps:$4 sm:$0xff]   ;;  %v3608_v41 = vld [vmem:[%s5245_s4 + $0xc] ss:$16 sps:$4 sm:$0xff]  }
  0x69   :  { %2018 = vmatprep.subr.bf16.mxu1 %v3533_v42  ;;  %v3611_v42 = vld [vmem:[%s5245_s4 + $0x20c] ss:$16 sps:$4 sm:$0xff]  }
  0x6b   :  { %1978 = vmatpush2.bf16.msra.mxu0 %v3528_v45  ;;  %v3606_v45 = vld [vmem:[%s5245_s4 + $0x8] ss:$16 sps:$4 sm:$0xff]  }
  0x6c   :  { %2019 = vmatpush2.bf16.msra.mxu1 %v3531_v47  ;;  %1979 = vmatprep.subr.bf16.mxu0 %v3536_v48  ;;  %v3609_v47 = vld [vmem:[%s5245_s4 + $0x208] ss:$16 sps:$4 sm:$0xff]   ;;  %v3614_v48 = vld [vmem:[%s5245_s4 + $0x1ec] ss:$16 sps:$4 sm:$0xff]  }
  0x6d   :  { %2020 = vmatprep.subr.bf16.mxu1 %v3539_v49  ;;  %v3617_v49 = vld [vmem:[%s5245_s4 + $0x3ec] ss:$16 sps:$4 sm:$0xff]  }
  0x6f   :  { %1980 = vmatpush2.bf16.msra.mxu0 %v3534_v52  ;;  %v3612_v52 = vld [vmem:[%s5245_s4 + $0x1e8] ss:$16 sps:$4 sm:$0xff]  }
  0x70   :  { %2021 = vmatpush2.bf16.msra.mxu1 %v3537_v54  ;;  %1981 = vmatprep.subr.bf16.mxu0 %v3542_v60  ;;  %v3615_v54 = vld [vmem:[%s5245_s4 + $0x3e8] ss:$16 sps:$4 sm:$0xff]   ;;  %v3620_v60 = vld [vmem:[%s5245_s4 + $0x1cc] ss:$16 sps:$4 sm:$0xff]  }
  0x71   :  { %2022 = vmatprep.subr.bf16.mxu1 %v3545_v58  ;;  %v3623_v58 = vld [vmem:[%s5245_s4 + $0x3cc] ss:$16 sps:$4 sm:$0xff]  }
  0x73   :  { %1982 = vmatpush2.bf16.msra.mxu0 %v3540_v61  ;;  %v3618_v61 = vld [vmem:[%s5245_s4 + $0x1c8] ss:$16 sps:$4 sm:$0xff]  }
  0x74   :  { %2023 = vmatpush2.bf16.msra.mxu1 %v3543_v62  ;;  %1983 = vmatprep.subr.bf16.mxu0 %v3548_v63  ;;  %v3621_v62 = vld [vmem:[%s5245_s4 + $0x3c8] ss:$16 sps:$4 sm:$0xff]   ;;  %v3626_v63 = vld [vmem:[%s5245_s4 + $0x1ac] ss:$16 sps:$4 sm:$0xff]  }
  0x75   :  { %2024 = vmatprep.subr.bf16.mxu1 %v3551_v0  ;;  %v3629_v0 = vld [vmem:[%s5245_s4 + $0x3ac] ss:$16 sps:$4 sm:$0xff]  }
  0x77   :  { %1984 = vmatpush2.bf16.msra.mxu0 %v3546_v1  ;;  %v3624_v1 = vld [vmem:[%s5245_s4 + $0x1a8] ss:$16 sps:$4 sm:$0xff]  }
  0x78   :  { %2025 = vmatpush2.bf16.msra.mxu1 %v3549_v2  ;;  %1985 = vmatprep.subr.bf16.mxu0 %v3554_v3  ;;  %v3627_v2 = vld [vmem:[%s5245_s4 + $0x3a8] ss:$16 sps:$4 sm:$0xff]   ;;  %v3632_v3 = vld [vmem:[%s5245_s4 + $0x18c] ss:$16 sps:$4 sm:$0xff]  }
  0x79   :  { %2026 = vmatprep.subr.bf16.mxu1 %v3557_v5  ;;  %v3635_v5 = vld [vmem:[%s5245_s4 + $0x38c] ss:$16 sps:$4 sm:$0xff]  }
  0x7b   :  { %1986 = vmatpush2.bf16.msra.mxu0 %v3552_v7  ;;  %v3630_v7 = vld [vmem:[%s5245_s4 + $0x188] ss:$16 sps:$4 sm:$0xff]  }
  0x7c   :  { %2027 = vmatpush2.bf16.msra.mxu1 %v3555_v8  ;;  %1987 = vmatprep.subr.bf16.mxu0 %v3560_v9  ;;  %v3633_v8 = vld [vmem:[%s5245_s4 + $0x388] ss:$16 sps:$4 sm:$0xff]   ;;  %v3638_v9 = vld [vmem:[%s5245_s4 + $0x16c] ss:$16 sps:$4 sm:$0xff]  }
  0x7d   :  { %2028 = vmatprep.subr.bf16.mxu1 %v3563_v11  ;;  %v3641_v11 = vld [vmem:[%s5245_s4 + $0x36c] ss:$16 sps:$4 sm:$0xff]  }
  0x7f   :  { %1988 = vmatpush2.bf16.msra.mxu0 %v3558_v12  ;;  %v3636_v12 = vld [vmem:[%s5245_s4 + $0x168] ss:$16 sps:$4 sm:$0xff]  }
  0x80   :  { %2029 = vmatpush2.bf16.msra.mxu1 %v3561_v13  ;;  %2039 = vmatprep.subr.bf16.mxu0 %v3566_v4  ;;  %v3639_v13 = vld [vmem:[%s5245_s4 + $0x368] ss:$16 sps:$4 sm:$0xff]  }
  0x81   :  { %2080 = vmatprep.subr.bf16.mxu1 %v3569_v14  ;;  %v3642_v4 = vld [vmem:[%s5245_s4 + $0x148] ss:$16 sps:$4 sm:$0xff]  }
  0x82   :  { %1990 = vmatmul.mubr.bf16.vlgmr.msra.gmra.mxu0 %v4484_v35  ;;  %v3645_v14 = vld [vmem:[%s5245_s4 + $0x348] ss:$16 sps:$4 sm:$0xff]  }
  0x83   :  { %2031 = vmatmul.mubr.bf16.vlgmr.msra.gmra.mxu1 %v4486_v40  ;;  %2040 = vmatpush1.bf16.msra.mxu0 %v3564_v43  ;;  %v3650_v43 = vld [vmem:[%s5245_s4 + $0x12c] ss:$16 sps:$4 sm:$0xff]  }
  0x84   :  { %2081 = vmatpush1.bf16.msra.mxu1 %v3567_v44  ;;  %2041 = vmatprep.subr.bf16.mxu0 %v3572_v55  ;;  %v3653_v44 = vld [vmem:[%s5245_s4 + $0x32c] ss:$16 sps:$4 sm:$0xff]   ;;  %v3648_v55 = vld [vmem:[%s5245_s4 + $0x128] ss:$16 sps:$4 sm:$0xff]  }
  0x85   :  { %2082 = vmatprep.subr.bf16.mxu1 %v3575_v59  ;;  %2071 = vmatprep.mubr.bf16.mxu0 %v4233_v28  ;;  %v3587_v28 = vld [vmem:[%s5245_s4 + $0x28c] ss:$16 sps:$4 sm:$0xff]   ;;  %v3651_v59 = vld [vmem:[%s5245_s4 + $0x328] ss:$16 sps:$4 sm:$0xff]  }
  0x86   :  { %2112 = vmatprep.mubr.bf16.mxu1 %v4254_v15  ;;  %v3582_v15 = vld [vmem:[%s5245_s4 + $0x88] ss:$16 sps:$4 sm:$0xff]  }
  0x87   :  { %2042 = vmatpush1.bf16.msra.mxu0 %v3570_v17  ;;  %v3656_v17 = vld [vmem:[%s5245_s4 + $0x10c] ss:$16 sps:$4 sm:$0xff]  }
  0x88   :  { %2083 = vmatpush1.bf16.msra.mxu1 %v3573_v18  ;;  %2043 = vmatprep.subr.bf16.mxu0 %v3578_v19  ;;  %v3659_v18 = vld [vmem:[%s5245_s4 + $0x30c] ss:$16 sps:$4 sm:$0xff]   ;;  %v3654_v19 = vld [vmem:[%s5245_s4 + $0x108] ss:$16 sps:$4 sm:$0xff]  }
  0x89   :  { %2084 = vmatprep.subr.bf16.mxu1 %v3581_v20  ;;  %v3657_v20 = vld [vmem:[%s5245_s4 + $0x308] ss:$16 sps:$4 sm:$0xff]  }
  0x8b   :  { %2044 = vmatpush1.bf16.msra.mxu0 %v3576_v21  ;;  %v3662_v21 = vld [vmem:[%s5245_s4 + $0x4ec] ss:$16 sps:$4 sm:$0xff]  }
  0x8c   :  { %2085 = vmatpush1.bf16.msra.mxu1 %v3579_v22  ;;  %2045 = vmatprep.subr.bf16.mxu0 %v3584_v23  ;;  %v3665_v22 = vld [vmem:[%s5245_s4 + $0x6ec] ss:$16 sps:$4 sm:$0xff]   ;;  %v3660_v23 = vld [vmem:[%s5245_s4 + $0x4e8] ss:$16 sps:$4 sm:$0xff]  }
  0x8d   :  { %2086 = vmatprep.subr.bf16.mxu1 %v3587_v28  ;;  %v3663_v28 = vld [vmem:[%s5245_s4 + $0x6e8] ss:$16 sps:$4 sm:$0xff]  }
  0x8f   :  { %2046 = vmatpush1.bf16.msra.mxu0 %v3582_v15  ;;  %v3668_v15 = vld [vmem:[%s5245_s4 + $0x4cc] ss:$16 sps:$4 sm:$0xff]  }
  0x90   :  { %2087 = vmatpush1.bf16.msra.mxu1 %v3585_v24  ;;  %2047 = vmatprep.subr.bf16.mxu0 %v3590_v25  ;;  %v3671_v24 = vld [vmem:[%s5245_s4 + $0x6cc] ss:$16 sps:$4 sm:$0xff]   ;;  %v3666_v25 = vld [vmem:[%s5245_s4 + $0x4c8] ss:$16 sps:$4 sm:$0xff]  }
  0x91   :  { %2088 = vmatprep.subr.bf16.mxu1 %v3593_v10  ;;  %v3669_v10 = vld [vmem:[%s5245_s4 + $0x6c8] ss:$16 sps:$4 sm:$0xff]  }
  0x93   :  { %2048 = vmatpush1.bf16.msra.mxu0 %v3588_v26  ;;  %v3674_v26 = vld [vmem:[%s5245_s4 + $0x4ac] ss:$16 sps:$4 sm:$0xff]  }
  0x94   :  { %2089 = vmatpush1.bf16.msra.mxu1 %v3591_v27  ;;  %2049 = vmatprep.subr.bf16.mxu0 %v3596_v29  ;;  %v3677_v27 = vld [vmem:[%s5245_s4 + $0x6ac] ss:$16 sps:$4 sm:$0xff]  }
  0x95   :  { %2090 = vmatprep.subr.bf16.mxu1 %v3599_v30  ;;  %v3680_v29 = vld [vmem:[%s5245_s4 + $0x48c] ss:$16 sps:$4 sm:$0xff]   ;;  %v3681_v30 = vld [vmem:[%s5245_s4 + $0x688] ss:$16 sps:$4 sm:$0xff]  }
  0x97   :  { %2050 = vmatpush1.bf16.msra.mxu0 %v3594_v31  ;;  %v3686_v31 = vld [vmem:[%s5245_s4 + $0x46c] ss:$16 sps:$4 sm:$0xff]  }
  0x98   :  { %2091 = vmatpush1.bf16.msra.mxu1 %v3597_v32  ;;  %2051 = vmatprep.subr.bf16.mxu0 %v3602_v33  ;;  %v3689_v32 = vld [vmem:[%s5245_s4 + $0x66c] ss:$16 sps:$4 sm:$0xff]   ;;  %v3684_v33 = vld [vmem:[%s5245_s4 + $0x468] ss:$16 sps:$4 sm:$0xff]  }
  0x99   :  { %2092 = vmatprep.subr.bf16.mxu1 %v3605_v34  ;;  %v3687_v34 = vld [vmem:[%s5245_s4 + $0x668] ss:$16 sps:$4 sm:$0xff]  }
  0x9b   :  { %2052 = vmatpush1.bf16.msra.mxu0 %v3600_v36  ;;  %v3692_v36 = vld [vmem:[%s5245_s4 + $0x44c] ss:$16 sps:$4 sm:$0xff]  }
  0x9c   :  { %2093 = vmatpush1.bf16.msra.mxu1 %v3603_v39  ;;  %2053 = vmatprep.subr.bf16.mxu0 %v3608_v41  ;;  %v3695_v39 = vld [vmem:[%s5245_s4 + $0x64c] ss:$16 sps:$4 sm:$0xff]   ;;  %v3690_v41 = vld [vmem:[%s5245_s4 + $0x448] ss:$16 sps:$4 sm:$0xff]  }
  0x9d   :  { %2094 = vmatprep.subr.bf16.mxu1 %v3611_v42  ;;  %v3693_v42 = vld [vmem:[%s5245_s4 + $0x648] ss:$16 sps:$4 sm:$0xff]  }
  0x9f   :  { %2054 = vmatpush1.bf16.msra.mxu0 %v3606_v45  ;;  %v3698_v45 = vld [vmem:[%s5245_s4 + $0x42c] ss:$16 sps:$4 sm:$0xff]  }
  0xa0   :  { %2095 = vmatpush1.bf16.msra.mxu1 %v3609_v47  ;;  %2055 = vmatprep.subr.bf16.mxu0 %v3614_v48  ;;  %v3701_v47 = vld [vmem:[%s5245_s4 + $0x62c] ss:$16 sps:$4 sm:$0xff]   ;;  %v3696_v48 = vld [vmem:[%s5245_s4 + $0x428] ss:$16 sps:$4 sm:$0xff]  }
  0xa1   :  { %2096 = vmatprep.subr.bf16.mxu1 %v3617_v49  ;;  %v3699_v49 = vld [vmem:[%s5245_s4 + $0x628] ss:$16 sps:$4 sm:$0xff]  }
  0xa3   :  { %2056 = vmatpush2.bf16.msra.mxu0 %v3612_v52  ;;  %v3704_v52 = vld [vmem:[%s5245_s4 + $0x40c] ss:$16 sps:$4 sm:$0xff]  }
  0xa4   :  { %2097 = vmatpush2.bf16.msra.mxu1 %v3615_v54  ;;  %2057 = vmatprep.subr.bf16.mxu0 %v3620_v60  ;;  %v3707_v54 = vld [vmem:[%s5245_s4 + $0x60c] ss:$16 sps:$4 sm:$0xff]   ;;  %v3702_v60 = vld [vmem:[%s5245_s4 + $0x408] ss:$16 sps:$4 sm:$0xff]  }
  0xa5   :  { %2098 = vmatprep.subr.bf16.mxu1 %v3623_v58  ;;  %v3705_v58 = vld [vmem:[%s5245_s4 + $0x608] ss:$16 sps:$4 sm:$0xff]  }
  0xa7   :  { %2058 = vmatpush2.bf16.msra.mxu0 %v3618_v61  ;;  %v3710_v61 = vld [vmem:[%s5245_s4 + $0x5ec] ss:$16 sps:$4 sm:$0xff]  }
  0xa8   :  { %2099 = vmatpush2.bf16.msra.mxu1 %v3621_v62  ;;  %2059 = vmatprep.subr.bf16.mxu0 %v3626_v63  ;;  %v3713_v62 = vld [vmem:[%s5245_s4 + $0x7ec] ss:$16 sps:$4 sm:$0xff]   ;;  %v3708_v63 = vld [vmem:[%s5245_s4 + $0x5e8] ss:$16 sps:$4 sm:$0xff]  }
  0xa9   :  { %2100 = vmatprep.subr.bf16.mxu1 %v3629_v0  ;;  %v3711_v0 = vld [vmem:[%s5245_s4 + $0x7e8] ss:$16 sps:$4 sm:$0xff]  }
  0xab   :  { %2060 = vmatpush2.bf16.msra.mxu0 %v3624_v1  ;;  %v3716_v1 = vld [vmem:[%s5245_s4 + $0x5cc] ss:$16 sps:$4 sm:$0xff]  }
  0xac   :  { %2101 = vmatpush2.bf16.msra.mxu1 %v3627_v2  ;;  %2061 = vmatprep.subr.bf16.mxu0 %v3632_v3  ;;  %v3719_v2 = vld [vmem:[%s5245_s4 + $0x7cc] ss:$16 sps:$4 sm:$0xff]   ;;  %v3714_v3 = vld [vmem:[%s5245_s4 + $0x5c8] ss:$16 sps:$4 sm:$0xff]  }
  0xad   :  { %2102 = vmatprep.subr.bf16.mxu1 %v3635_v5  ;;  %v3717_v5 = vld [vmem:[%s5245_s4 + $0x7c8] ss:$16 sps:$4 sm:$0xff]  }
  0xaf   :  { %2062 = vmatpush2.bf16.msra.mxu0 %v3630_v7  ;;  %v3722_v7 = vld [vmem:[%s5245_s4 + $0x5ac] ss:$16 sps:$4 sm:$0xff]  }
  0xb0   :  { %2103 = vmatpush2.bf16.msra.mxu1 %v3633_v8  ;;  %2063 = vmatprep.subr.bf16.mxu0 %v3638_v9  ;;  %v3725_v8 = vld [vmem:[%s5245_s4 + $0x7ac] ss:$16 sps:$4 sm:$0xff]   ;;  %v3720_v9 = vld [vmem:[%s5245_s4 + $0x5a8] ss:$16 sps:$4 sm:$0xff]  }
  0xb1   :  { %2104 = vmatprep.subr.bf16.mxu1 %v3641_v11  ;;  %v3723_v11 = vld [vmem:[%s5245_s4 + $0x7a8] ss:$16 sps:$4 sm:$0xff]  }
  0xb3   :  { %2064 = vmatpush2.bf16.msra.mxu0 %v3636_v12  ;;  %v3728_v12 = vld [vmem:[%s5245_s4 + $0x58c] ss:$16 sps:$4 sm:$0xff]  }
  0xb4   :  { %2105 = vmatpush2.bf16.msra.mxu1 %v3639_v13  ;;  %2065 = vmatprep.subr.bf16.mxu0 %v3644_v16  ;;  %v3731_v13 = vld [vmem:[%s5245_s4 + $0x78c] ss:$16 sps:$4 sm:$0xff]   ;;  %v3726_v16 = vld [vmem:[%s5245_s4 + $0x588] ss:$16 sps:$4 sm:$0xff]  }
  0xb5   :  { %2106 = vmatprep.subr.bf16.mxu1 %v3647_v57  ;;  %v3729_v57 = vld [vmem:[%s5245_s4 + $0x788] ss:$16 sps:$4 sm:$0xff]  }
  0xb7   :  { %2066 = vmatpush2.bf16.msra.mxu0 %v3642_v4  ;;  %v3734_v4 = vld [vmem:[%s5245_s4 + $0x56c] ss:$16 sps:$4 sm:$0xff]  }
  0xb8   :  { %2107 = vmatpush2.bf16.msra.mxu1 %v3645_v14  ;;  %2067 = vmatprep.subr.bf16.mxu0 %v3650_v43  ;;  %v3737_v14 = vld [vmem:[%s5245_s4 + $0x76c] ss:$16 sps:$4 sm:$0xff]   ;;  %v3732_v43 = vld [vmem:[%s5245_s4 + $0x568] ss:$16 sps:$4 sm:$0xff]  }
  0xb9   :  { %2108 = vmatprep.subr.bf16.mxu1 %v3653_v44  ;;  %v3735_v44 = vld [vmem:[%s5245_s4 + $0x768] ss:$16 sps:$4 sm:$0xff]  }
  0xbb   :  { %2068 = vmatpush2.bf16.msra.mxu0 %v3648_v55  ;;  %v3740_v55 = vld [vmem:[%s5245_s4 + $0x54c] ss:$16 sps:$4 sm:$0xff]  }
  0xbc   :  { %2109 = vmatpush2.bf16.msra.mxu1 %v3651_v59  ;;  %2069 = vmatprep.subr.bf16.mxu0 %v3656_v17  ;;  %v3743_v59 = vld [vmem:[%s5245_s4 + $0x74c] ss:$16 sps:$4 sm:$0xff]   ;;  %v3738_v17 = vld [vmem:[%s5245_s4 + $0x548] ss:$16 sps:$4 sm:$0xff]  }
  0xbd   :  { %2110 = vmatprep.subr.bf16.mxu1 %v3659_v18  ;;  %v3741_v18 = vld [vmem:[%s5245_s4 + $0x748] ss:$16 sps:$4 sm:$0xff]  }
  0xbf   :  { %2070 = vmatpush2.bf16.msra.mxu0 %v3654_v19  ;;  %v3746_v19 = vld [vmem:[%s5245_s4 + $0x52c] ss:$16 sps:$4 sm:$0xff]  }
  0xc0   :  { %2111 = vmatpush2.bf16.msra.mxu1 %v3657_v20  ;;  %2121 = vmatprep.subr.bf16.mxu0 %v3662_v21  ;;  %v3749_v20 = vld [vmem:[%s5245_s4 + $0x72c] ss:$16 sps:$4 sm:$0xff]   ;;  %v3744_v21 = vld [vmem:[%s5245_s4 + $0x528] ss:$16 sps:$4 sm:$0xff]  }
  0xc1   :  { %2162 = vmatprep.subr.bf16.mxu1 %v3665_v22  ;;  %v3747_v22 = vld [vmem:[%s5245_s4 + $0x728] ss:$16 sps:$4 sm:$0xff]  }
  0xc2   :  { %2072 = vmatmul.mubr.bf16.vlgmr.msra.gmra.mxu0 %v4245_v37  ;;  %v3672_v37 = vld [vmem:[%s5245_s4 + $0x4a8] ss:$16 sps:$4 sm:$0xff]  }
  0xc3   :  { %2113 = vmatmul.mubr.bf16.vlgmr.msra.gmra.mxu1 %v4247_v38  ;;  %2122 = vmatpush1.bf16.msra.mxu0 %v3660_v23  ;;  %v3675_v38 = vld [vmem:[%s5245_s4 + $0x6a8] ss:$16 sps:$4 sm:$0xff]   ;;  %v3752_v23 = vld [vmem:[%s5245_s4 + $0x50c] ss:$16 sps:$4 sm:$0xff]  }
  0xc4   :  { %2163 = vmatpush1.bf16.msra.mxu1 %v3663_v28  ;;  %2123 = vmatprep.subr.bf16.mxu0 %v3668_v15  ;;  %v3755_v28 = vld [vmem:[%s5245_s4 + $0x70c] ss:$16 sps:$4 sm:$0xff]   ;;  %v3750_v15 = vld [vmem:[%s5245_s4 + $0x508] ss:$16 sps:$4 sm:$0xff]  }
  0xc5   :  { %2164 = vmatprep.subr.bf16.mxu1 %v3671_v24  ;;  %2153 = vmatprep.mubr.bf16.mxu0 %v4296_v56  ;;  %v3683_v56 = vld [vmem:[%s5245_s4 + $0x68c] ss:$16 sps:$4 sm:$0xff]   ;;  %v3753_v24 = vld [vmem:[%s5245_s4 + $0x708] ss:$16 sps:$4 sm:$0xff]  }
  0xc6   :  { %2194 = vmatprep.mubr.bf16.mxu1 %v4312_v6  ;;  %v3678_v6 = vld [vmem:[%s5245_s4 + $0x488] ss:$16 sps:$4 sm:$0xff]  }
  0xc7   :  { %2124 = vmatpush1.bf16.msra.mxu0 %v3666_v25  ;;  %v3758_v25 = vld [vmem:[%s5250_s7 + $0x74] ss:$8 sps:$4 sm:$0xff]  }
  0xc8   :  { %2165 = vmatpush1.bf16.msra.mxu1 %v3669_v10  ;;  %2125 = vmatprep.subr.bf16.mxu0 %v3674_v26  ;;  %v3756_v10 = vld [vmem:[%s5250_s7 + $0x70] ss:$8 sps:$4 sm:$0xff]   ;;  %v3761_v26 = vld [vmem:[%s5250_s7 + $0x64] ss:$8 sps:$4 sm:$0xff]  }
  0xc9   :  { %2166 = vmatprep.subr.bf16.mxu1 %v3677_v27 }
  0xcb   :  { %2126 = vmatpush1.bf16.msra.mxu0 %v3672_v37 }
  0xcc   :  { %2167 = vmatpush1.bf16.msra.mxu1 %v3675_v38  ;;  %2127 = vmatprep.subr.bf16.mxu0 %v3680_v29  ;;  %v3759_v29 = vld [vmem:[%s5250_s7 + $0x60] ss:$8 sps:$4 sm:$0xff]  }
  0xcd   :  { %2168 = vmatprep.subr.bf16.mxu1 %v3683_v56 }
  0xcf   :  { %2128 = vmatpush1.bf16.msra.mxu0 %v3678_v6 }
  0xd0   :  { %2169 = vmatpush1.bf16.msra.mxu1 %v3681_v30  ;;  %2129 = vmatprep.subr.bf16.mxu0 %v3686_v31  ;;  %v3764_v30 = vld [vmem:[%s5250_s7 + $0x54] ss:$8 sps:$4 sm:$0xff]  }
  0xd1   :  { %2170 = vmatprep.subr.bf16.mxu1 %v3689_v32 }
  0xd3   :  { %2130 = vmatpush1.bf16.msra.mxu0 %v3684_v33 }
  0xd4   :  { %2171 = vmatpush1.bf16.msra.mxu1 %v3687_v34  ;;  %2131 = vmatprep.subr.bf16.mxu0 %v3692_v36  ;;  %v3767_v34 = vld [vmem:[%s5250_s7 + $0x44] ss:$8 sps:$4 sm:$0xff]   ;;  %v3804_v36 = vld [vmem:[%s5250_s7 + $0x170] ss:$8 sps:$4 sm:$0xff]  }
  0xd5   :  { %2172 = vmatprep.subr.bf16.mxu1 %v3695_v39  ;;  %v3806_v39 = vld [vmem:[%s5250_s7 + $0x174] ss:$8 sps:$4 sm:$0xff]  }
  0xd7   :  { %2132 = vmatpush1.bf16.msra.mxu0 %v3690_v41  ;;  %v3809_v41 = vld [vmem:[%s5250_s7 + $0x164] ss:$8 sps:$4 sm:$0xff]  }
  0xd8   :  { %2173 = vmatpush1.bf16.msra.mxu1 %v3693_v42  ;;  %2133 = vmatprep.subr.bf16.mxu0 %v3698_v45  ;;  %v3765_v42 = vld [vmem:[%s5250_s7 + $0x40] ss:$8 sps:$4 sm:$0xff]  }
  0xd9   :  { %2174 = vmatprep.subr.bf16.mxu1 %v3701_v47  ;;  %v3807_v45 = vld [vmem:[%s5250_s7 + $0x160] ss:$8 sps:$4 sm:$0xff]   ;;  %v3770_v47 = vld [vmem:[%s5250_s7 + $0x34] ss:$8 sps:$4 sm:$0xff]  }
  0xdb   :  { %2134 = vmatpush1.bf16.msra.mxu0 %v3696_v48  ;;  %v3812_v48 = vld [vmem:[%s5250_s7 + $0x154] ss:$8 sps:$4 sm:$0xff]  }
  0xdc   :  { %2175 = vmatpush1.bf16.msra.mxu1 %v3699_v49  ;;  %2135 = vmatprep.subr.bf16.mxu0 %v3704_v52  ;;  %v3768_v49 = vld [vmem:[%s5250_s7 + $0x30] ss:$8 sps:$4 sm:$0xff]  }
  0xdd   :  { %2176 = vmatprep.subr.bf16.mxu1 %v3707_v54  ;;  %v3810_v52 = vld [vmem:[%s5250_s7 + $0x150] ss:$8 sps:$4 sm:$0xff]   ;;  %v3773_v54 = vld [vmem:[%s5250_s7 + $0x24] ss:$8 sps:$4 sm:$0xff]  }
  0xdf   :  { %2136 = vmatpush1.bf16.msra.mxu0 %v3702_v60  ;;  %v3771_v60 = vld [vmem:[%s5250_s7 + $0x20] ss:$8 sps:$4 sm:$0xff]  }
  0xe0   :  { %2177 = vmatpush1.bf16.msra.mxu1 %v3705_v58  ;;  %2137 = vmatprep.subr.bf16.mxu0 %v3710_v61  ;;  %v3776_v58 = vld [vmem:[%s5250_s7 + $0x14] ss:$8 sps:$4 sm:$0xff]   ;;  %v3774_v61 = vld [vmem:[%s5250_s7 + $0x10] ss:$8 sps:$4 sm:$0xff]  }
  0xe1   :  { %2178 = vmatprep.subr.bf16.mxu1 %v3713_v62  ;;  %v3779_v62 = vld [vmem:[%s5250_s7 + $0x4] ss:$8 sps:$4 sm:$0xff]  }
  0xe3   :  { %2138 = vmatpush2.bf16.msra.mxu0 %v3708_v63  ;;  %v3777_v63 = vld [vmem:[%s5250_s7] ss:$8 sps:$4 sm:$0xff]  }
  0xe4   :  { %2179 = vmatpush2.bf16.msra.mxu1 %v3711_v0  ;;  %2139 = vmatprep.subr.bf16.mxu0 %v3716_v1  ;;  %v3782_v0 = vld [vmem:[%s5250_s7 + $0xf4] ss:$8 sps:$4 sm:$0xff]   ;;  %v3780_v1 = vld [vmem:[%s5250_s7 + $0xf0] ss:$8 sps:$4 sm:$0xff]  }
  0xe5   :  { %2180 = vmatprep.subr.bf16.mxu1 %v3719_v2  ;;  %v3785_v2 = vld [vmem:[%s5250_s7 + $0xe4] ss:$8 sps:$4 sm:$0xff]  }
  0xe7   :  { %2140 = vmatpush2.bf16.msra.mxu0 %v3714_v3  ;;  %v3783_v3 = vld [vmem:[%s5250_s7 + $0xe0] ss:$8 sps:$4 sm:$0xff]  }
  0xe8   :  { %2181 = vmatpush2.bf16.msra.mxu1 %v3717_v5  ;;  %2141 = vmatprep.subr.bf16.mxu0 %v3722_v7  ;;  %v3788_v5 = vld [vmem:[%s5250_s7 + $0xd4] ss:$8 sps:$4 sm:$0xff]   ;;  %v3786_v7 = vld [vmem:[%s5250_s7 + $0xd0] ss:$8 sps:$4 sm:$0xff]  }
  0xe9   :  { %2182 = vmatprep.subr.bf16.mxu1 %v3725_v8  ;;  %v3791_v8 = vld [vmem:[%s5250_s7 + $0xc4] ss:$8 sps:$4 sm:$0xff]  }
  0xeb   :  { %2142 = vmatpush2.bf16.msra.mxu0 %v3720_v9  ;;  %v3789_v9 = vld [vmem:[%s5250_s7 + $0xc0] ss:$8 sps:$4 sm:$0xff]  }
  0xec   :  { %2183 = vmatpush2.bf16.msra.mxu1 %v3723_v11  ;;  %2143 = vmatprep.subr.bf16.mxu0 %v3728_v12  ;;  %v3794_v11 = vld [vmem:[%s5250_s7 + $0xb4] ss:$8 sps:$4 sm:$0xff]   ;;  %v3792_v12 = vld [vmem:[%s5250_s7 + $0xb0] ss:$8 sps:$4 sm:$0xff]  }
  0xed   :  { %2184 = vmatprep.subr.bf16.mxu1 %v3731_v13  ;;  %v3797_v13 = vld [vmem:[%s5250_s7 + $0xa4] ss:$8 sps:$4 sm:$0xff]  }
  0xef   :  { %2144 = vmatpush2.bf16.msra.mxu0 %v3726_v16  ;;  %v3795_v16 = vld [vmem:[%s5250_s7 + $0xa0] ss:$8 sps:$4 sm:$0xff]  }
  0xf0   :  { %2185 = vmatpush2.bf16.msra.mxu1 %v3729_v57  ;;  %2145 = vmatprep.subr.bf16.mxu0 %v3734_v4  ;;  %v3800_v57 = vld [vmem:[%s5250_s7 + $0x94] ss:$8 sps:$4 sm:$0xff]   ;;  %v3798_v4 = vld [vmem:[%s5250_s7 + $0x90] ss:$8 sps:$4 sm:$0xff]  }
  0xf1   :  { %2186 = vmatprep.subr.bf16.mxu1 %v3737_v14  ;;  %v3803_v14 = vld [vmem:[%s5250_s7 + $0x84] ss:$8 sps:$4 sm:$0xff]  }
  0xf3   :  { %2146 = vmatpush2.bf16.msra.mxu0 %v3732_v43  ;;  %v3801_v43 = vld [vmem:[%s5250_s7 + $0x80] ss:$8 sps:$4 sm:$0xff]  }
  0xf4   :  { %2187 = vmatpush2.bf16.msra.mxu1 %v3735_v44  ;;  %2147 = vmatprep.subr.bf16.mxu0 %v3740_v55 }
  0xf5   :  { %2188 = vmatprep.subr.bf16.mxu1 %v3743_v59  ;;  %v3815_v59 = vld [vmem:[%s5250_s7 + $0x144] ss:$8 sps:$4 sm:$0xff]  }
  0xf7   :  { %2148 = vmatpush2.bf16.msra.mxu0 %v3738_v17 }
  0xf8   :  { %2189 = vmatpush2.bf16.msra.mxu1 %v3741_v18  ;;  %2149 = vmatprep.subr.bf16.mxu0 %v3746_v19  ;;  %v3813_v19 = vld [vmem:[%s5250_s7 + $0x140] ss:$8 sps:$4 sm:$0xff]  }
  0xf9   :  { %2190 = vmatprep.subr.bf16.mxu1 %v3749_v20 }
  0xfb   :  { %2150 = vmatpush2.bf16.msra.mxu0 %v3744_v21 }
  0xfc   :  { %2191 = vmatpush2.bf16.msra.mxu1 %v3747_v22  ;;  %2151 = vmatprep.subr.bf16.mxu0 %v3752_v23 }
  0xfd   :  { %2192 = vmatprep.subr.bf16.mxu1 %v3755_v28 }
  0xff   :  { %2152 = vmatpush2.bf16.msra.mxu0 %v3750_v15 }
 0x100   :  { %2193 = vmatpush2.bf16.msra.mxu1 %v3753_v24  ;;  %2741 = vmatprep.subr.bf16.mxu0 %v3758_v25  ;;  %v3818_v24 = vld [vmem:[%s5250_s7 + $0x134] ss:$8 sps:$4 sm:$0xff]  }
 0x101   :  { %2782 = vmatprep.subr.bf16.mxu1 %v3806_v39 }
 0x102   :  { %v1909_v27 = vpop.f32.mrf.mxu0  ;;  %2154 = vmatmul.mubr.bf16.vlgmr.msra.gmra.mxu0 %v4484_v35 }
 0x103   :  { %v1950_v37 = vpop.f32.mrf.mxu1  ;;  %2195 = vmatmul.mubr.bf16.vlgmr.msra.gmra.mxu1 %v4486_v40  ;;  %2742 = vmatpush1.bf16.msra.mxu0 %v3756_v10  ;;  %v3762_v40 = vld [vmem:[%s5250_s7 + $0x50] ss:$8 sps:$4 sm:$0xff]  }
 0x104   :  { %v4885_v38 = vadd.f32 %v1950_v37, %v1909_v27  ;;  %v4890_v56 = vpop.f32.mrf.mxu0  ;;  %2743 = vmatprep.subr.bf16.mxu0 %v3761_v26  ;;  %2783 = vmatpush1.bf16.msra.mxu1 %v3804_v36  ;;  %v3816_v27 = vld [vmem:[%s5250_s7 + $0x130] ss:$8 sps:$4 sm:$0xff]  }
 0x105   :  { %v4892_v6 = vpop.f32.mrf.mxu1  ;;  %2784 = vmatprep.subr.bf16.mxu1 %v3809_v41 }
 0x106   :  { %v1913_v31 = vpop.f32.mrf.mxu0  ;;  %v1953_v17 = vadd.f32 %v4892_v6, %v4890_v56 }
 0x107   :  { %v1954_v35 = vpop.f32.mrf.mxu1  ;;  %2744 = vmatpush1.bf16.msra.mxu0 %v3759_v29 }
 0x108   :  { %v1914_v32 = vpop.f32.mrf.mxu0  ;;  %2745 = vmatprep.subr.bf16.mxu0 %v3764_v30  ;;  %2785 = vmatpush1.bf16.msra.mxu1 %v3807_v45 }
 0x109   :  { %v1955_v33 = vpop.f32.mrf.mxu1  ;;  %2786 = vmatprep.subr.bf16.mxu1 %v3812_v48  ;;  %v3821_v32 = vld [vmem:[%s5250_s7 + $0x124] ss:$8 sps:$4 sm:$0xff]  }
 0x10b   :  { %2746 = vmatpush1.bf16.msra.mxu0 %v3762_v40 }
 0x10c   :  { %2747 = vmatprep.subr.bf16.mxu0 %v3767_v34  ;;  %2787 = vmatpush1.bf16.msra.mxu1 %v3810_v52  ;;  %v3819_v34 = vld [vmem:[%s5250_s7 + $0x120] ss:$8 sps:$4 sm:$0xff]   ;;  %v3824_v52 = vld [vmem:[%s5250_s7 + $0x114] ss:$8 sps:$4 sm:$0xff]  }
 0x10d   :  { %2788 = vmatprep.subr.bf16.mxu1 %v3815_v59 }
 0x10f   :  { %2748 = vmatpush1.bf16.msra.mxu0 %v3765_v42 }
 0x110   :  { %2749 = vmatprep.subr.bf16.mxu0 %v3770_v47  ;;  %2789 = vmatpush1.bf16.msra.mxu1 %v3813_v19  ;;  %v3831_v19 = vld [vmem:[%s5250_s7 + $0x1e0] ss:$8 sps:$4 sm:$0xff]  }
 0x111   :  { %2790 = vmatprep.subr.bf16.mxu1 %v3818_v24  ;;  %v5070_v24 = vld [vmem:[%s5251_s5] sm:$0xf] }
 0x113   :  { %2750 = vmatpush1.bf16.msra.mxu0 %v3768_v49 }
 0x114   :  { %2751 = vmatprep.subr.bf16.mxu0 %v3773_v54  ;;  %2791 = vmatpush1.bf16.msra.mxu1 %v3816_v27  ;;  %v3822_v54 = vld [vmem:[%s5250_s7 + $0x110] ss:$8 sps:$4 sm:$0xff]  }
 0x115   :  { %2792 = vmatprep.subr.bf16.mxu1 %v3821_v32  ;;  %v3840_v27 = vld [vmem:[%s5250_s7 + $0x1b0] ss:$8 sps:$4 sm:$0xff]  }
 0x117   :  { %2752 = vmatpush1.bf16.msra.mxu0 %v3771_v60 }
 0x118   :  { %2753 = vmatprep.subr.bf16.mxu0 %v3776_v58  ;;  %2793 = vmatpush1.bf16.msra.mxu1 %v3819_v34 }
 0x119   :  { %2794 = vmatprep.subr.bf16.mxu1 %v3824_v52 }
 0x11b   :  { %2754 = vmatpush1.bf16.msra.mxu0 %v3774_v61 }
 0x11c   :  { %2755 = vmatprep.subr.bf16.mxu0 %v3779_v62  ;;  %2795 = vmatpush1.bf16.msra.mxu1 %v3822_v54 }
 0x11f   :  { %2756 = vmatpush1.bf16.msra.mxu0 %v3777_v63 }
 0x120   :  { %2757 = vmatprep.subr.bf16.mxu0 %v3782_v0 }
 0x123   :  { %2758 = vmatpush2.bf16.msra.mxu0 %v3780_v1 }
 0x124   :  { %2759 = vmatprep.subr.bf16.mxu0 %v3785_v2 }
 0x127   :  { %2760 = vmatpush2.bf16.msra.mxu0 %v3783_v3  ;;  %v3827_v3 = vld [vmem:[%s5250_s7 + $0x104] ss:$8 sps:$4 sm:$0xff]  }
 0x128   :  { %2761 = vmatprep.subr.bf16.mxu0 %v3788_v5  ;;  %v3825_v5 = vld [vmem:[%s5250_s7 + $0x100] ss:$8 sps:$4 sm:$0xff]   ;;  %2796 = vmatprep.subr.bf16.mxu1 %v3827_v3 }
 0x129   :  { %2797 = vmatpush1.bf16.msra.mxu1 %v3825_v5 }
 0x12b   :  { %2762 = vmatpush2.bf16.msra.mxu0 %v3786_v7 }
 0x12c   :  { %2763 = vmatprep.subr.bf16.mxu0 %v3791_v8 }
 0x12f   :  { %2764 = vmatpush2.bf16.msra.mxu0 %v3789_v9 }
 0x130   :  { %2765 = vmatprep.subr.bf16.mxu0 %v3794_v11 }
 0x133   :  { %2766 = vmatpush2.bf16.msra.mxu0 %v3792_v12 }
 0x134   :  { %2767 = vmatprep.subr.bf16.mxu0 %v3797_v13 }
 0x137   :  { %2768 = vmatpush2.bf16.msra.mxu0 %v3795_v16 }
 0x138   :  { %2769 = vmatprep.subr.bf16.mxu0 %v3800_v57  ;;  %v3830_v57 = vld [vmem:[%s5250_s7 + $0x1f4] ss:$8 sps:$4 sm:$0xff]  }
 0x139   :  { %2798 = vmatprep.subr.bf16.mxu1 %v3830_v57 }
 0x13b   :  { %2770 = vmatpush2.bf16.msra.mxu0 %v3798_v4 }
 0x13c   :  { %2771 = vmatprep.subr.bf16.mxu0 %v3803_v14  ;;  %v3828_v14 = vld [vmem:[%s5250_s7 + $0x1f0] ss:$8 sps:$4 sm:$0xff]  }
 0x13d   :  { %2799 = vmatpush2.bf16.msra.mxu1 %v3828_v14 }
 0x13f   :  { %2772 = vmatpush2.bf16.msra.mxu0 %v3801_v43 }
 0x142   :  { %v1991_v44 = vpop.f32.mrf.mxu0 }
 0x143   :  { %v2032_v55 = vpop.f32.mrf.mxu1  ;;  %v1992_v18 = vadd.f32 %v1991_v44, %v4885_v38 }
 0x144   :  { %v1993_v20 = vpop.f32.mrf.mxu0 }
 0x145   :  { %v2034_v21 = vpop.f32.mrf.mxu1  ;;  %v5005_v22 = vadd.f32 %v2032_v55, %v1992_v18  ;;  %v1994_v23 = vadd.f32 %v1993_v20, %v1953_v17  ;;  %v3833_v17 = vld [vmem:[%s5250_s7 + $0x1e4] ss:$8 sps:$4 sm:$0xff]  }
 0x146   :  { %v1995_v28 = vpop.f32.mrf.mxu0  ;;  %2800 = vmatprep.subr.bf16.mxu1 %v3833_v17 }
 0x147   :  { %v2036_v15 = vpop.f32.mrf.mxu1  ;;  %v2206_v25 = vsel %vm2205_vm9, %v5005_v22, 0.0  ;;  %v2234_v10 = vmul.f32 %v5005_v22, %v5005_v22  ;;  %v5014_v26 = vadd.f32 %v2034_v21, %v1994_v23  ;;  %2801 = vmatpush2.bf16.msra.mxu1 %v3831_v19  ;;  %v3836_v21 = vld [vmem:[%s5250_s7 + $0x1d4] ss:$8 sps:$4 sm:$0xff]   ;;  %v3834_v23 = vld [vmem:[%s5250_s7 + $0x1d0] ss:$8 sps:$4 sm:$0xff]  }
 0x148   :  { %v2207_v37 = vrot.slane %v2206_v25, 4  ;;  %v1996_v38 = vpop.f32.mrf.mxu0  ;;  %2802 = vmatprep.subr.bf16.mxu1 %v3836_v21  ;;  %v3839_v28 = vld [vmem:[%s5250_s7 + $0x1c4] ss:$8 sps:$4 sm:$0xff]   ;;  %v3837_v15 = vld [vmem:[%s5250_s7 + $0x1c0] ss:$8 sps:$4 sm:$0xff]  }
 0x149   :  { %v2037_v29 = vpop.f32.mrf.mxu1  ;;  %v2238_v56 = vsel %vm2205_vm9, %v2234_v10, 0.0  ;;  %v2213_v6 = vsel %vm2205_vm9, %v5014_v26, 0.0  ;;  %v2235_v30 = vmul.f32 %v5014_v26, %v5014_v26  ;;  %v5078_v10 = vld [vmem:[%s5252_s6] sm:$0xf]  ;;  %v2303_v38 = vrot.slane %v5070_v24, %v4057_v46 }
 0x14a   :  { %v2208_v31 = vadd.f32 %v2207_v37, %v2206_v25  ;;  %v2239_v35 = vrot.slane %v2238_v56, 4  ;;  %v2214_v40 = vrot.slane %v2213_v6, 4  ;;  %v3842_v25 = vld [vmem:[%s5250_s7 + $0x1b4] ss:$8 sps:$4 sm:$0xff]   ;;  %v2332_v34 = vrot.slane %v5078_v10, %v4065_v50 }
 0x14b   :  { %v2245_v33 = vsel %vm2205_vm9, %v2235_v30, 0.0  ;;  %2803 = vmatpush2.bf16.msra.mxu1 %v3834_v23  ;;  %v3845_v30 = vld [vmem:[%s5250_s7 + $0x1a4] ss:$8 sps:$4 sm:$0xff]  }
 0x14c   :  { %v2209_v36 = vrot.slane %v2208_v31, 2  ;;  %v2240_v39 = vadd.f32 %v2239_v35, %v2238_v56  ;;  %v2215_v41 = vadd.f32 %v2214_v40, %v2213_v6  ;;  %v2246_v42 = vrot.slane %v2245_v33, 4  ;;  %2804 = vmatprep.subr.bf16.mxu1 %v3839_v28 }
 0x14d   :  { %v2328_v6 = vrot.slane %v5078_v10, %v4057_v46  ;;  %v2307_v35 = vrot.slane %v5070_v24, %v4065_v50 }
 0x14e   :  { %v2210_v45 = vadd.f32 %v2209_v36, %v2208_v31  ;;  %v2241_v47 = vrot.slane %v2240_v39, 2  ;;  %v2216_v48 = vrot.slane %v2215_v41, 2  ;;  %v2247_v49 = vadd.f32 %v2246_v42, %v2245_v33  ;;  %v3846_v36 = vld [vmem:[%s5250_s7 + $0x190] ss:$8 sps:$4 sm:$0xff]  }
 0x14f   :  { %2805 = vmatpush2.bf16.msra.mxu1 %v3837_v15 }
 0x150   :  { %v2211_v60 = vrot.slane %v2210_v45, 1  ;;  %v2242_v58 = vadd.f32 %v2241_v47, %v2240_v39  ;;  %v2217_v61 = vadd.f32 %v2216_v48, %v2215_v41  ;;  %v2248_v62 = vrot.slane %v2247_v49, 2  ;;  %2806 = vmatprep.subr.bf16.mxu1 %v3842_v25  ;;  %v3851_v41 = vld [vmem:[%s5250_s7 + $0x184] ss:$8 sps:$4 sm:$0xff]   ;;  %v3849_v47 = vld [vmem:[%s5250_s7 + $0x180] ss:$8 sps:$4 sm:$0xff]  }
 0x152   :  { %v2212_v63 = vadd.f32 %v2211_v60, %v2210_v45  ;;  %v2243_v0 = vrot.slane %v2242_v58, 1  ;;  %v2218_v1 = vrot.slane %v2217_v61, 1  ;;  %v2249_v2 = vadd.f32 %v2248_v62, %v2247_v49 }
 0x153   :  { %2807 = vmatpush2.bf16.msra.mxu1 %v3840_v27 }
 0x154   :  { %v2244_v7 = vadd.f32 %v2243_v0, %v2242_v58  ;;  %v2267_v8 = vmul.f32 0.5, %v2212_v63  ;;  %v2219_v9 = vadd.f32 %v2218_v1, %v2217_v61  ;;  %v2250_v11 = vrot.slane %v2249_v2, 1  ;;  %2808 = vmatprep.subr.bf16.mxu1 %v3845_v30 }
 0x156   :  { %v2271_v12 = vmul.f32 0.5, %v2244_v7  ;;  %v2275_v13 = vmul.f32 %v2267_v8, %v2267_v8  ;;  %v2251_v16 = vadd.f32 %v2250_v11, %v2249_v2  ;;  %v2268_v4 = vmul.f32 0.5, %v2219_v9 }
 0x157   :  { %v2283_v37 = vsub.f32 %v5005_v22, %v2267_v8  ;;  %v3843_v22 = vld [vmem:[%s5250_s7 + $0x1a0] ss:$8 sps:$4 sm:$0xff]  }
 0x158   :  { %v2279_v43 = vsub.f32 %v2271_v12, %v2275_v13  ;;  %v2272_v44 = vmul.f32 0.5, %v2251_v16  ;;  %v2276_v55 = vmul.f32 %v2268_v4, %v2268_v4  ;;  %v2284_v31 = vsub.f32 %v5014_v26, %v2268_v4  ;;  %2809 = vmatpush2.bf16.msra.mxu1 %v3843_v22  ;;  %v3848_v26 = vld [vmem:[%s5250_s7 + $0x194] ss:$8 sps:$4 sm:$0xff]  }
 0x159   :  { %2810 = vmatprep.subr.bf16.mxu1 %v3848_v26 }
 0x15a   :  { %v2287_v59 = vadd.f32 1e-05, %v2279_v43  ;;  %v2280_v18 = vsub.f32 %v2272_v44, %v2276_v55 }
 0x15c   :  { %3852 = vrsqrt.f32 %v2287_v59  ;;  %v2288_v20 = vadd.f32 1e-05, %v2280_v18  ;;  %2811 = vmatpush2.bf16.msra.mxu1 %v3846_v36 }
 0x15d   :  { %2812 = vmatprep.subr.bf16.mxu1 %v3851_v41 }
 0x15e   :  { %3854 = vrsqrt.f32 %v2288_v20 }
 0x160   :  { %2813 = vmatpush2.bf16.msra.mxu1 %v3849_v47 }
 0x169   :  { %v3853_v29 = vpop.eup %3852 }
 0x16a   :  { %v2295_v56 = vmul.f32 %v3853_v29, %v2283_v37 }
 0x16b   :  { %v3855_v40 = vpop.eup %3854 }
 0x16c   :  { %v2320_v32 = vmul.f32 %v2303_v38, %v2295_v56  ;;  %v2296_v33 = vmul.f32 %v3855_v40, %v2284_v31 }
 0x16e   :  { %v2345_v39 = vadd.f32 %v2328_v6, %v2320_v32  ;;  %v2321_v42 = vmul.f32 %v2307_v35, %v2296_v33 }
 0x170   :  { %v2346_v45 = vadd.f32 %v2332_v34, %v2321_v42  ;;  %v2349_v48 = vmax.f32 %v2345_v39, 0.0 }
 0x172   :  { %v2350_v49 = vmax.f32 %v2346_v45, 0.0  ;;  %v2353_v54 = vpack.c.bf16 %v2349_v48, %v2349_v48 }
 0x174   :  { %v2354_v52 = vpack.c.bf16 %v2350_v49, %v2350_v49 }
 0x176   :  { %2773 = vmatprep.mubr.bf16.mxu0 %v2354_v52 }
 0x177   :  { %2774 = vmatmul.mubr.bf16.vlgmr.msra.gmra.mxu0 %v2353_v54 }
 0x182   :  { %v2073_v60 = vpop.f32.mrf.mxu0 }
 0x183   :  { %v2114_v58 = vpop.f32.mrf.mxu1 }
 0x184   :  { %v2115_v61 = vadd.f32 %v2114_v58, %v2073_v60  ;;  %v2075_v62 = vpop.f32.mrf.mxu0 }
 0x185   :  { %v2116_v63 = vpop.f32.mrf.mxu1 }
 0x186   :  { %v2077_v0 = vpop.f32.mrf.mxu0  ;;  %v2117_v8 = vadd.f32 %v2116_v63, %v2075_v62 }
 0x187   :  { %v2118_v1 = vpop.f32.mrf.mxu1  ;;  %v2311_v0 = vrot.slane %v5070_v24, %v4067_v51 }
 0x188   :  { %v2078_v2 = vpop.f32.mrf.mxu0 }
 0x189   :  { %v2119_v3 = vpop.f32.mrf.mxu1 }
 0x18a   :  { %v2336_v3 = vrot.slane %v5078_v10, %v4067_v51 }
 0x1c2   :  { %v2155_v5 = vpop.f32.mrf.mxu0 }
 0x1c3   :  { %v2196_v7 = vpop.f32.mrf.mxu1  ;;  %v2156_v9 = vadd.f32 %v2155_v5, %v2115_v61 }
 0x1c4   :  { %v2157_v11 = vpop.f32.mrf.mxu0 }
 0x1c5   :  { %v2198_v12 = vpop.f32.mrf.mxu1  ;;  %v2197_v13 = vadd.f32 %v2196_v7, %v2156_v9  ;;  %v2158_v16 = vadd.f32 %v2157_v11, %v2117_v8  ;;  %v2315_v7 = vrot.slane %v5070_v24, %v4072_v53 }
 0x1c6   :  { %v2159_v57 = vpop.f32.mrf.mxu0 }
 0x1c7   :  { %v2200_v4 = vpop.f32.mrf.mxu1  ;;  %v2220_v14 = vsel %vm2205_vm9, %v2197_v13, 0.0  ;;  %v2236_v43 = vmul.f32 %v2197_v13, %v2197_v13  ;;  %v2199_v44 = vadd.f32 %v2198_v12, %v2158_v16  ;;  %v2340_v12 = vrot.slane %v5078_v10, %v4072_v53  ;;  %v2914_v53 = vld [vmem:[%s5253_s10 + $0x78] sm:$0xff]  ;;  %v2929_v10 = vld [vmem:[%s5253_s10 + $0xf0] sm:$0xff] }
 0x1c8   :  { %v2221_v55 = vrot.slane %v2220_v14, 4  ;;  %v2160_v59 = vpop.f32.mrf.mxu0 }
 0x1c9   :  { %v2201_v17 = vpop.f32.mrf.mxu1  ;;  %v2252_v18 = vsel %vm2205_vm9, %v2236_v43, 0.0  ;;  %v2227_v19 = vsel %vm2205_vm9, %v2199_v44, 0.0  ;;  %v2237_v20 = vmul.f32 %v2199_v44, %v2199_v44 }
 0x1ca   :  { %v2222_v21 = vadd.f32 %v2221_v55, %v2220_v14  ;;  %v2253_v23 = vrot.slane %v2252_v18, 4  ;;  %v2228_v28 = vrot.slane %v2227_v19, 4  ;;  %v2930_v17 = vld [vmem:[%s5253_s10 + $0xf8] sm:$0xff] }
 0x1cb   :  { %v2259_v15 = vsel %vm2205_vm9, %v2237_v20, 0.0  ;;  %3335 = vmatprep.subr.mxu0 %v2930_v17  ;;  %v2912_v20 = vld [vmem:[%s5253_s10 + $0x68] sm:$0xff] }
 0x1cc   :  { %v2223_v25 = vrot.slane %v2222_v21, 2  ;;  %v2254_v27 = vadd.f32 %v2253_v23, %v2252_v18  ;;  %v2229_v37 = vadd.f32 %v2228_v28, %v2227_v19  ;;  %v2260_v38 = vrot.slane %v2259_v15, 4  ;;  %3336 = vmatpush3.msra.mxu0 %v2914_v53  ;;  %v2913_v18 = vld [vmem:[%s5253_s10 + $0x70] sm:$0xff]  ;;  %v2928_v19 = vld [vmem:[%s5253_s10 + $0xe8] sm:$0xff]  ;;  %v2911_v23 = vld [vmem:[%s5253_s10 + $0x60] sm:$0xff] }
 0x1cd   :  { %3337 = vmatprep.subr.mxu0 %v2929_v10  ;;  %v2926_v28 = vld [vmem:[%s5253_s10 + $0xd8] sm:$0xff] }
 0x1ce   :  { %v2224_v29 = vadd.f32 %v2223_v25, %v2222_v21  ;;  %v2255_v56 = vrot.slane %v2254_v27, 2  ;;  %v2230_v6 = vrot.slane %v2229_v37, 2  ;;  %v2261_v30 = vadd.f32 %v2260_v38, %v2259_v15  ;;  %3338 = vmatpush3.msra.mxu0 %v2913_v18  ;;  %v2927_v21 = vld [vmem:[%s5253_s10 + $0xe0] sm:$0xff]  ;;  %v2910_v15 = vld [vmem:[%s5253_s10 + $0x58] sm:$0xff]  ;;  %v2925_v25 = vld [vmem:[%s5253_s10 + $0xd0] sm:$0xff] }
 0x1cf   :  { %3339 = vmatprep.subr.mxu0 %v2928_v19  ;;  %v2908_v38 = vld [vmem:[%s5253_s10 + $0x48] sm:$0xff] }
 0x1d0   :  { %v2225_v31 = vrot.slane %v2224_v29, 1  ;;  %v2256_v35 = vadd.f32 %v2255_v56, %v2254_v27  ;;  %v2231_v22 = vadd.f32 %v2230_v6, %v2229_v37  ;;  %v2262_v40 = vrot.slane %v2261_v30, 2  ;;  %3340 = vmatpush3.msra.mxu0 %v2912_v20  ;;  %v2909_v27 = vld [vmem:[%s5253_s10 + $0x50] sm:$0xff]  ;;  %v2924_v37 = vld [vmem:[%s5253_s10 + $0xc8] sm:$0xff]  ;;  %v2907_v56 = vld [vmem:[%s5253_s10 + $0x40] sm:$0xff] }
 0x1d1   :  { %3341 = vmatprep.subr.mxu0 %v2927_v21  ;;  %v2922_v6 = vld [vmem:[%s5253_s10 + $0xb8] sm:$0xff] }
 0x1d2   :  { %v2226_v32 = vadd.f32 %v2225_v31, %v2224_v29  ;;  %v2257_v33 = vrot.slane %v2256_v35, 1  ;;  %v2232_v34 = vrot.slane %v2231_v22, 1  ;;  %v2263_v36 = vadd.f32 %v2262_v40, %v2261_v30  ;;  %3342 = vmatpush3.msra.mxu0 %v2911_v23  ;;  %v2923_v29 = vld [vmem:[%s5253_s10 + $0xc0] sm:$0xff]  ;;  %v2906_v30 = vld [vmem:[%s5253_s10 + $0x38] sm:$0xff]  ;;  %v2921_v31 = vld [vmem:[%s5253_s10 + $0xb0] sm:$0xff] }
 0x1d3   :  { %3343 = vmatprep.subr.mxu0 %v2926_v28  ;;  %v2904_v40 = vld [vmem:[%s5253_s10 + $0x28] sm:$0xff] }
 0x1d4   :  { %v2258_v26 = vadd.f32 %v2257_v33, %v2256_v35  ;;  %v2269_v39 = vmul.f32 0.5, %v2226_v32  ;;  %v2233_v41 = vadd.f32 %v2232_v34, %v2231_v22  ;;  %v2264_v42 = vrot.slane %v2263_v36, 1  ;;  %3344 = vmatpush3.msra.mxu0 %v2910_v15  ;;  %v2905_v35 = vld [vmem:[%s5253_s10 + $0x30] sm:$0xff]  ;;  %v2920_v22 = vld [vmem:[%s5253_s10 + $0xa8] sm:$0xff]  ;;  %v2919_v32 = vld [vmem:[%s5253_s10 + $0xa0] sm:$0xff] }
 0x1d5   :  { %3345 = vmatprep.subr.mxu0 %v2925_v25  ;;  %v2903_v33 = vld [vmem:[%s5253_s10 + $0x20] sm:$0xff]  ;;  %v2918_v34 = vld [vmem:[%s5253_s10 + $0x98] sm:$0xff] }
 0x1d6   :  { %v2273_v45 = vmul.f32 0.5, %v2258_v26  ;;  %v2277_v47 = vmul.f32 %v2269_v39, %v2269_v39  ;;  %v2265_v48 = vadd.f32 %v2264_v42, %v2263_v36  ;;  %v2270_v49 = vmul.f32 0.5, %v2233_v41  ;;  %3346 = vmatpush3.msra.mxu0 %v2909_v27  ;;  %v2902_v36 = vld [vmem:[%s5253_s10 + $0x18] sm:$0xff]  ;;  %v2917_v26 = vld [vmem:[%s5253_s10 + $0x90] sm:$0xff]  ;;  %v2916_v41 = vld [vmem:[%s5253_s10 + $0x88] sm:$0xff] }
 0x1d7   :  { %v2285_v63 = vsub.f32 %v2197_v13, %v2269_v39  ;;  %3347 = vmatprep.subr.mxu0 %v2924_v37  ;;  %v2901_v39 = vld [vmem:[%s5253_s10 + $0x10] sm:$0xff]  ;;  %v2900_v42 = vld [vmem:[%s5253_s10 + $0x8] sm:$0xff] }
 0x1d8   :  { %v2281_v52 = vsub.f32 %v2273_v45, %v2277_v47  ;;  %v2274_v54 = vmul.f32 0.5, %v2265_v48  ;;  %v2278_v60 = vmul.f32 %v2270_v49, %v2270_v49  ;;  %v2286_v5 = vsub.f32 %v2199_v44, %v2270_v49  ;;  %3348 = vmatpush3.msra.mxu0 %v2908_v38  ;;  %v2915_v45 = vld [vmem:[%s5253_s10 + $0x80] sm:$0xff] }
 0x1d9   :  { %3349 = vmatprep.subr.mxu0 %v2923_v29  ;;  %v2899_v47 = vld [vmem:[%s5253_s10] sm:$0xff] }
 0x1da   :  { %v2289_v58 = vadd.f32 1e-05, %v2281_v52  ;;  %v2282_v61 = vsub.f32 %v2274_v54, %v2278_v60  ;;  %3350 = vmatpush3.msra.mxu0 %v2907_v56 }
 0x1db   :  { %3351 = vmatprep.subr.mxu0 %v2922_v6  ;;  %v2823_v6 = vld [vmem:[%s5254_s8] sm:$0x3] }
 0x1dc   :  { %3856 = vrsqrt.f32 %v2289_v58  ;;  %v2290_v62 = vadd.f32 1e-05, %v2282_v61  ;;  %3352 = vmatpush3.msra.mxu0 %v2906_v30 }
 0x1dd   :  { %3353 = vmatprep.subr.mxu0 %v2921_v31  ;;  %v2875_v31 = vrot.slane %v2823_v6, %v4057_v46 }
 0x1de   :  { %3858 = vrsqrt.f32 %v2290_v62  ;;  %3354 = vmatpush3.msra.mxu0 %v2905_v35 }
 0x1df   :  { %3355 = vmatprep.subr.mxu0 %v2920_v22  ;;  %v2824_v22 = vld [vmem:[%s5255_s9] sm:$0x3] }
 0x1e0   :  { %3356 = vmatpush3.msra.mxu0 %v2904_v40 }
 0x1e1   :  { %3357 = vmatprep.subr.mxu0 %v2919_v32 }
 0x1e2   :  { %3358 = vmatpush3.msra.mxu0 %v2903_v33  ;;  %v2879_v33 = vrot.slane %v2823_v6, %v4065_v50 }
 0x1e3   :  { %3359 = vmatprep.subr.mxu0 %v2918_v34 }
 0x1e4   :  { %3360 = vmatpush3.msra.mxu0 %v2902_v36 }
 0x1e5   :  { %3361 = vmatprep.subr.mxu0 %v2917_v26  ;;  %v2888_v26 = vrot.slane %v2824_v22, %v4057_v46 }
 0x1e6   :  { %3362 = vmatpush3.msra.mxu0 %v2901_v39 }
 0x1e7   :  { %3363 = vmatprep.subr.mxu0 %v2916_v41  ;;  %v2892_v41 = vrot.slane %v2824_v22, %v4065_v50 }
 0x1e8   :  { %3364 = vmatpush3.msra.mxu0 %v2900_v42 }
 0x1e9   :  { %v3857_v1 = vpop.eup %3856  ;;  %3365 = vmatprep.subr.mxu0 %v2915_v45 }
 0x1ea   :  { %v2297_v2 = vmul.f32 %v3857_v1, %v2285_v63  ;;  %3366 = vmatpush3.msra.mxu0 %v2899_v47 }
 0x1eb   :  { %v3859_v8 = vpop.eup %3858 }
 0x1ec   :  { %v2322_v9 = vmul.f32 %v2311_v0, %v2297_v2  ;;  %v2298_v11 = vmul.f32 %v3859_v8, %v2286_v5 }
 0x1ee   :  { %v2347_v16 = vadd.f32 %v2336_v3, %v2322_v9  ;;  %v2323_v13 = vmul.f32 %v2315_v7, %v2298_v11 }
 0x1f0   :  { %v2348_v57 = vadd.f32 %v2340_v12, %v2323_v13  ;;  %v2351_v4 = vmax.f32 %v2347_v16, 0.0 }
 0x1f2   :  { %v2352_v14 = vmax.f32 %v2348_v57, 0.0  ;;  %v2355_v55 = vpack.c.bf16 %v2351_v4, %v2351_v4 }
 0x1f4   :  { %v2356_v43 = vpack.c.bf16 %v2352_v14, %v2352_v14 }
 0x1f6   :  { %2814 = vmatprep.mubr.bf16.mxu1 %v2356_v43 }
 0x1f7   :  { %2815 = vmatmul.mubr.bf16.vlgmr.msra.gmra.mxu1 %v2355_v55 }
 0x237   :  { %v5123_v51 = vpop.f32.mrf.mxu0 }
 0x239   :  { %v5125_v44 = vpop.f32.mrf.mxu0 }
 0x23b   :  { %v2779_v24 = vpop.f32.mrf.mxu0 }
 0x23d   :  { %v2780_v59 = vpop.f32.mrf.mxu0 }
 0x2b7   :  { %v2816_v48 = vpop.f32.mrf.mxu1 }
 0x2b8   :  { %v2817_v49 = vadd.f32 %v2816_v48, %v5123_v51 }
 0x2b9   :  { %v2818_v52 = vpop.f32.mrf.mxu1 }
 0x2ba   :  { %v2825_v54 = vsel %vm2205_vm9, %v2817_v49, 0.0  ;;  %v2839_v60 = vmul.f32 %v2817_v49, %v2817_v49  ;;  %v2819_v58 = vadd.f32 %v2818_v52, %v5125_v44 }
 0x2bb   :  { %v2826_v61 = vrot.slane %v2825_v54, 4  ;;  %v2820_v62 = vpop.f32.mrf.mxu1 }
 0x2bc   :  { %v2841_v63 = vsel %vm2205_vm9, %v2839_v60, 0.0  ;;  %v2832_v0 = vsel %vm2205_vm9, %v2819_v58, 0.0  ;;  %v2840_v1 = vmul.f32 %v2819_v58, %v2819_v58 }
 0x2bd   :  { %v2827_v2 = vadd.f32 %v2826_v61, %v2825_v54  ;;  %v2842_v3 = vrot.slane %v2841_v63, 4  ;;  %v2833_v5 = vrot.slane %v2832_v0, 4  ;;  %v2821_v7 = vpop.f32.mrf.mxu1  ;;  %v3334_v54 = vld [vmem:[%s5256_s11] ss:$0 sm:$0xff] }
 0x2be   :  { %v2848_v8 = vsel %vm2205_vm9, %v2840_v1, 0.0 }
 0x2bf   :  { %v2828_v9 = vrot.slane %v2827_v2, 2  ;;  %v2843_v11 = vadd.f32 %v2842_v3, %v2841_v63  ;;  %v2834_v12 = vadd.f32 %v2833_v5, %v2832_v0  ;;  %v2849_v16 = vrot.slane %v2848_v8, 4 }
 0x2c1   :  { %v2829_v13 = vadd.f32 %v2828_v9, %v2827_v2  ;;  %v2844_v57 = vrot.slane %v2843_v11, 2  ;;  %v2835_v4 = vrot.slane %v2834_v12, 2  ;;  %v2850_v14 = vadd.f32 %v2849_v16, %v2848_v8 }
 0x2c3   :  { %v2830_v43 = vrot.slane %v2829_v13, 1  ;;  %v2845_v55 = vadd.f32 %v2844_v57, %v2843_v11  ;;  %v2836_v51 = vadd.f32 %v2835_v4, %v2834_v12  ;;  %v2851_v44 = vrot.slane %v2850_v14, 2 }
 0x2c5   :  { %v2831_v24 = vadd.f32 %v2830_v43, %v2829_v13  ;;  %v2846_v59 = vrot.slane %v2845_v55, 1  ;;  %v2837_v17 = vrot.slane %v2836_v51, 1  ;;  %v2852_v53 = vadd.f32 %v2851_v44, %v2850_v14 }
 0x2c7   :  { %v2847_v10 = vadd.f32 %v2846_v59, %v2845_v55  ;;  %v2855_v18 = vmul.f32 0.5, %v2831_v24  ;;  %v2838_v19 = vadd.f32 %v2837_v17, %v2836_v51  ;;  %v2853_v20 = vrot.slane %v2852_v53, 1 }
 0x2c9   :  { %v2857_v21 = vmul.f32 0.5, %v2847_v10  ;;  %v2859_v23 = vmul.f32 %v2855_v18, %v2855_v18  ;;  %v2854_v28 = vadd.f32 %v2853_v20, %v2852_v53  ;;  %v2856_v15 = vmul.f32 0.5, %v2838_v19 }
 0x2ca   :  { %v2863_v30 = vsub.f32 %v2817_v49, %v2855_v18 }
 0x2cb   :  { %v2861_v25 = vsub.f32 %v2857_v21, %v2859_v23  ;;  %v2858_v27 = vmul.f32 0.5, %v2854_v28  ;;  %v2860_v37 = vmul.f32 %v2856_v15, %v2856_v15  ;;  %v2864_v32 = vsub.f32 %v2819_v58, %v2856_v15 }
 0x2cd   :  { %v2865_v38 = vadd.f32 1e-05, %v2861_v25  ;;  %v2862_v29 = vsub.f32 %v2858_v27, %v2860_v37 }
 0x2cf   :  { %3860 = vrsqrt.f32 %v2865_v38  ;;  %v2866_v56 = vadd.f32 1e-05, %v2862_v29 }
 0x2d1   :  { %3862 = vrsqrt.f32 %v2866_v56 }
 0x2dc   :  { %v3861_v35 = vpop.eup %3860 }
 0x2dd   :  { %v2869_v40 = vmul.f32 %v3861_v35, %v2863_v30 }
 0x2de   :  { %v3863_v34 = vpop.eup %3862 }
 0x2df   :  { %v2882_v36 = vmul.f32 %v2875_v31, %v2869_v40  ;;  %v2870_v39 = vmul.f32 %v3863_v34, %v2864_v32 }
 0x2e1   :  { %v2883_v42 = vmul.f32 %v2879_v33, %v2870_v39  ;;  %v2895_v45 = vadd.f32 %v2888_v26, %v2882_v36 }
 0x2e3   :  { %v2896_v47 = vadd.f32 %v2892_v41, %v2883_v42  ;;  %v2897_v49 = vmax.f32 %v2895_v45, 0.0 }
 0x2e5   :  { %v2898_v48 = vmax.f32 %v2896_v47, 0.0 }
 0x2e7   :  { %3002 = vmatprep.mubr.f32.mxu0 %v2898_v48 }
 0x2e8   :  { %3003 = vmatmul.mubr.f32.vlgmr.msra.gmra.mxu0 %v2897_v49 }
 0x3a8   :  { %v3367_v52 = vpop.f32.mrf.mxu0 }
 0x3aa   :  { %v3368_v60 = vpop.f32.mrf.mxu0 }
 0x3ab   :  { %v3369_v58 = vadd.f32 %v3368_v60, %v3367_v52 }
 0x3ad   :  { %v3005_v61 = vadd.f32 %v3369_v58, %v3334_v54 }
 0x3af   :  { %3009 = vst.msk [vmem:[%s5257_s12] sm:$0x3] %vm3008_vm10, %v3005_v61 }

// kernel: encoder_layer_leaf.12
= control target key start
LH: loop header
LB: loop body
LE: loop exit
PB: predicated region body
PF: predicated region fallthrough
CT: control target
= control target key end

     0   :  { %s746_s26 = smov 0   ;;  %s748_s27 = smov 0   ;;  %s816_s0 = inlined_call_operand.<no memory space> [shape: f32[1], index: 0, kind: input, shape index: {}]   ;;  %s817_s1 = inlined_call_operand.vmem [shape: bf16[2,16,32], index: 1, kind: input, shape index: {}]   ;;  %s818_s2 = inlined_call_operand.vmem [shape: f32[1,32], index: 2, kind: input, shape index: {}]   ;;  %s819_s3 = inlined_call_operand.vmem [shape: f32[1,32], index: 3, kind: input, shape index: {}]   ;;  %s820_s4 = inlined_call_operand.vmem [shape: bf16[32,8], index: 4, kind: input, shape index: {}]   ;;  %s821_s5 = inlined_call_operand.vmem [shape: bf16[2,16,8], index: 5, kind: output, shape index: {0}]   ;;  %s822_s6 = inlined_call_operand.vmem [shape: f32[2,1,8], index: 6, kind: output, shape index: {1}]   ;;  %s823_s7 = inlined_call_operand.vmem [shape: f32[2,1,8], index: 7, kind: output, shape index: {2}]  }
   0x1   :  { %13 = sst [smem:[#allocation2]] %s816_s0  ;;  %s750_s28 = smov 0  }
   0x2 LB: > { %s31_s0 = sadd.s32 1, %s695_s27  ;;  %p616_p0 = scmp.ge.s32.totalorder %s699_s28, 1  ;;  %s699_s28 = sphi %s750_s28, %s19_s28   ;;  %s695_s27 = sphi %s748_s27, %s825_s27   ;;  %s691_s26 = sphi %s746_s26, %s824_s26  }
   0x3   : > { %p33_p1 = scmp.ge.s32.totalorder %s31_s0, 2  ;;  %p264_p2 = scmp.lt.s32.totalorder %s699_s28, 3 }
   0x5   : > { %s827_s0 = smov (%p33_p1, %s31_s0), 0  ;;  %p265_p3 = pnand %p616_p0, %p264_p2 }
   0x6   : > { %p311_p4 = scmp.lt.s32.totalorder (!%p265_p3), %s691_s26, 1  ;;  %s359_s10 = sld [smem:[#allocation2]] (!%p265_p3) }
   0x7   : > { %268 = sbr.rel (%p265_p3) target bundleno = 245 (0xf5), region = 40 }
   0xc   : > { %v675_v0 = vld [vmem:[%s820_s4 + $0x8] sm:$0xff]   ;;  %v701_v1 = vmov 0.0   ;;  %s829_s26 = smov (!%p311_p4, %s691_s26), 1  ;;  %vm444_vm0 = vcmask 57344   ;;  %v676_v2 = vld [vmem:[%s820_s4] sm:$0xff]   ;;  %vm702_vm1 = vmmov 0   ;;  %v362_v10 = vstv %s359_s10 }
   0xd   : > { %641 = vmatprep.subr.bf16.mxu0 %v701_v1  ;;  %645 = vmatprep.mubr.msk.bf16.mxu0 %vm702_vm1, %v701_v1  ;;  %s776_s13 = scalar_lea.vmem %s822_s6, %s829_s26  ;;  %s782_s16 = scalar_lea.vmem %s823_s7, %s829_s26  ;;  %v621_v4 = vld [vmem:[%s818_s2] ss:$0 sm:$0xff]  ;;  %vm384_vm4 = vcmask 261120   ;;  %vm437_vm5 = vcmask 60416   ;;  %vm448_vm6 = vcmask 64512  }
   0xe   : > { %642 = vmatpush3.bf16.msra.mxu0 %v675_v0  ;;  %445 = vst.msk [vmem:[%s776_s13] sm:$0x1] %vm444_vm0, %v701_v1  ;;  %446 = vst.msk [vmem:[%s782_s16] sm:$0x1] %vm444_vm0, %v701_v1  ;;  %s630_s17 = sshll.u32 %s829_s26, 3 }
   0xf   : > { %643 = vmatprep.subr.bf16.mxu0 %v701_v1  ;;  %s318_s20 = scalar_lea.vmem %s817_s1, %s630_s17  ;;  %v622_v7 = vld [vmem:[%s819_s3] ss:$0 sm:$0xff]  ;;  %s328_s29 = scalar_lea.vmem %s821_s5, %s630_s17 }
  0x10   : > { %v635_v3 = vld [vmem:[%s318_s20] sm:$0xff]  }
  0x11   : > { %v636_v5 = vunpack.c.l.bf16 %v635_v3  ;;  %v637_v6 = vunpack.c.h.bf16 %v635_v3 }
  0x12   : > { %644 = vmatpush3.bf16.msra.mxu0 %v676_v2 }
  0x13   : > { %v348_v8 = vmul.f32 %v636_v5, %v621_v4  ;;  %v349_v9 = vmul.f32 %v637_v6, %v621_v4 }
  0x15   : > { %v357_v11 = vadd.f32 %v622_v7, %v348_v8  ;;  %v358_v12 = vadd.f32 %v622_v7, %v349_v9  ;;  %v447_v41 = vld [vmem:[%s776_s13] sm:$0x1] }
  0x16   : > { %v461_v44 = vld [vmem:[%s782_s16] sm:$0x1] }
  0x17   : > { %vm360_vm2 = vcmp.ge.f32.partialorder %v357_v11, 0.0  ;;  %vm361_vm3 = vcmp.ge.f32.partialorder %v358_v12, 0.0  ;;  %v363_v13 = vmul.f32 %v362_v10, %v357_v11  ;;  %v364_v14 = vmul.f32 %v362_v10, %v358_v12 }
  0x19   : > { %v365_v15 = vsel %vm360_vm2, %v357_v11, %v363_v13  ;;  %v366_v16 = vsel %vm361_vm3, %v358_v12, %v364_v14 }
  0x1a   : > { %v367_v17 = vpack.c.bf16 %v366_v16, %v365_v15 }
  0x1c   : > { %646 = vmatmul.mubr.msk.bf16.vlgmr.msra.gmra.mxu0 %vm384_vm4, %v367_v17 }
  0xdc   : > { %v422_v18 = vpop.f32.mrf.mxu0 }
  0xdd   : > { %v632_v19 = vpack.c.bf16 %v422_v18, %v422_v18  ;;  %v462_v21 = vmul.f32 %v422_v18, %v422_v18  ;;  %v449_v23 = vsel %vm448_vm6, %v422_v18, 0.0 }
  0xde   : > { %v647_v20 = vpop.f32.mrf.mxu0 }
  0xdf   : > { %438 = vst.msk [vmem:[%s328_s29] sm:$0xf] %vm437_vm5, %v632_v19  ;;  %v464_v29 = vsel %vm448_vm6, %v462_v21, 0.0 }
  0xe0   : > { %v425_v22 = vpop.f32.mrf.mxu0 }
  0xe1   : > { %v633_v24 = vpack.c.bf16 %v425_v22, %v425_v22  ;;  %v450_v25 = vsel %vm448_vm6, %v425_v22, 0.0  ;;  %v463_v26 = vmul.f32 %v425_v22, %v425_v22 }
  0xe2   : > { %v451_v27 = vadd.f32 %v450_v25, %v449_v23  ;;  %v648_v28 = vpop.f32.mrf.mxu0 }
  0xe3   : > { %439 = vst.msk [vmem:[%s328_s29 + $0x4] sm:$0xf] %vm437_vm5, %v633_v24  ;;  %v465_v30 = vsel %vm448_vm6, %v463_v26, 0.0 }
  0xe4   : > { %v452_v31 = vrot.slane %v451_v27, 4  ;;  %v466_v32 = vadd.f32 %v465_v30, %v464_v29 }
  0xe6   : > { %v453_v33 = vadd.f32 %v452_v31, %v451_v27  ;;  %v467_v34 = vrot.slane %v466_v32, 4 }
  0xe8   : > { %v454_v35 = vrot.slane %v453_v33, 2  ;;  %v468_v36 = vadd.f32 %v467_v34, %v466_v32 }
  0xea   : > { %v455_v37 = vadd.f32 %v454_v35, %v453_v33  ;;  %v469_v38 = vrot.slane %v468_v36, 2 }
  0xec   : > { %v456_v39 = vrot.slane %v455_v37, 1  ;;  %v470_v40 = vadd.f32 %v469_v38, %v468_v36 }
  0xee   : > { %v457_v42 = vadd.f32 %v456_v39, %v455_v37  ;;  %v471_v43 = vrot.slane %v470_v40, 1 }
  0xf0   : > { %v458_v45 = vadd.f32 %v457_v42, %v447_v41  ;;  %v472_v46 = vadd.f32 %v471_v43, %v470_v40 }
  0xf2   : > { %460 = vst.msk [vmem:[%s776_s13] sm:$0x1] %vm444_vm0, %v458_v45  ;;  %v473_v47 = vadd.f32 %v472_v46, %v461_v44 }
  0xf4   : > { %474 = vst.msk [vmem:[%s782_s16] sm:$0x1] %vm444_vm0, %v473_v47 }
  0xf5 PF: > { %s19_s28 = sadd.s32 1, %s699_s28   ;;  %s824_s26 = smov %s695_s27 }
  0xf6   : > { %p16_p5 = scmp.ge.s32.totalorder %s19_s28, 4   ;;  %s825_s27 = smov %s827_s0 }
  0xf8   :  { %18 = sbr.rel (!%p16_p5) target bundleno = 2 (0x2), region = 98 }

// kernel: encoder_layer_leaf.13
= control target key start
LH: loop header
LB: loop body
LE: loop exit
PB: predicated region body
PF: predicated region fallthrough
CT: control target
= control target key end

     0   :  { %s409_s12 = smov 0   ;;  %s411_s13 = smov 0   ;;  %s445_s0 = inlined_call_operand.vmem [shape: bf16[2,16,8], index: 0, kind: input, shape index: {}]   ;;  %s446_s1 = inlined_call_operand.vmem [shape: f32[1,8], index: 1, kind: input, shape index: {}]   ;;  %s447_s2 = inlined_call_operand.vmem [shape: f32[1,8], index: 2, kind: input, shape index: {}]   ;;  %s448_s3 = inlined_call_operand.vmem [shape: f32[2,16,8], index: 3, kind: output, shape index: {}]  }
   0x1   :  { %s413_s14 = smov 0  }
   0x2 LB: > { %s25_s15 = sadd.s32 1, %s383_s13  ;;  %p326_p0 = scmp.ge.s32.totalorder %s387_s14, 1  ;;  %s387_s14 = sphi %s413_s14, %s13_s14   ;;  %s383_s13 = sphi %s411_s13, %s450_s13   ;;  %s379_s12 = sphi %s409_s12, %s449_s12  }
   0x3   : > { %p27_p1 = scmp.ge.s32.totalorder %s25_s15, 2  ;;  %p158_p2 = scmp.lt.s32.totalorder %s387_s14, 3 }
   0x5   : > { %s452_s15 = smov (%p27_p1, %s25_s15), 0  ;;  %p159_p3 = pnand %p326_p0, %p158_p2 }
   0x6   : > { %p191_p4 = scmp.lt.s32.totalorder (!%p159_p3), %s379_s12, 1 }
   0x7   : > { %162 = sbr.rel (%p159_p3) target bundleno = 23 (0x17), region = 32 }
   0xc   : > { %s454_s12 = smov (!%p191_p4, %s379_s12), 1  ;;  %v331_v1 = vld [vmem:[%s446_s1] ss:$0 sm:$0xff]  ;;  %vm232_vm0 = vcmask 64512  }
   0xd   : > { %s335_s16 = sshll.u32 %s454_s12, 3  ;;  %s336_s22 = sshll.u32 %s454_s12, 4  ;;  %v332_v4 = vld [vmem:[%s447_s2] ss:$0 sm:$0xff] }
   0xe   : > { %s198_s19 = scalar_lea.vmem %s445_s0, %s335_s16  ;;  %s208_s27 = scalar_lea.vmem %s448_s3, %s336_s22 }
   0xf   : > { %v338_v0 = vld [vmem:[%s198_s19] sm:$0xff]  }
  0x10   : > { %v339_v2 = vunpack.c.l.bf16 %v338_v0  ;;  %v340_v3 = vunpack.c.h.bf16 %v338_v0 }
  0x12   : > { %v221_v5 = vmul.f32 %v339_v2, %v331_v1  ;;  %v222_v6 = vmul.f32 %v340_v3, %v331_v1 }
  0x14   : > { %v230_v7 = vadd.f32 %v332_v4, %v221_v5  ;;  %v231_v8 = vadd.f32 %v332_v4, %v222_v6 }
  0x16   : > { %233 = vst.msk [vmem:[%s208_s27] sm:$0xff] %vm232_vm0, %v230_v7  ;;  %234 = vst.msk [vmem:[%s208_s27 + $0x8] sm:$0xff] %vm232_vm0, %v231_v8 }
  0x17 PF: > { %s13_s14 = sadd.s32 1, %s387_s14   ;;  %s449_s12 = smov %s383_s13 }
  0x18   : > { %p10_p5 = scmp.ge.s32.totalorder %s13_s14, 4   ;;  %s450_s13 = smov %s452_s15 }
  0x1a   :  { %12 = sbr.rel (!%p10_p5) target bundleno = 2 (0x2), region = 62 }

</bundles_post_ra>
